<compile_context>
chip_gen: v5e
topology: v5e:2x2
jax: 0.10.0
libtpu: 0.0.40
codegen_flags: <defaults>
</compile_context>

<pallas_src>
import functools

import jax
import jax.numpy as jnp
import numpy as np
from jax import lax
from jax.experimental import pallas as pl
from jax.experimental.pallas import tpu as pltpu

_EPS = 1e-5
_LANES = 128
_HALO = 8          # left halo width -> sublane-aligned interior store
_VMEM_LIMIT = 48 * 1024 * 1024


def _round_up(v, m):
    return ((v + m - 1) // m) * m


def _sigmoid(t):
    # tanh formulation -> EUP slot (avoids a VPU divide)
    return 0.5 * jnp.tanh(0.5 * t) + 0.5


# --------------------------------------------------------------------------
# Kernel 1/2: 3x3 conv (pad=1) of one image as 9 accumulating matmuls,
# optionally fusing the previous BN scale/shift + ReLU into its input, and
# emitting per-image partial BN statistics (sum, sum of squares) in f32.
# --------------------------------------------------------------------------
def _conv3x3_stats_kernel(x_ref, scale_ref, shift_ref, w_ref,
                          y_ref, stats_ref, pad_ref, *, fuse_bn_relu):
    _, H, W, Cp = x_ref.shape
    Wh = pad_ref.shape[1]
    M = H * W

    h_in = x_ref[0].astype(jnp.float32)                      # (H, W, Cp)
    if fuse_bn_relu:
        h2 = h_in.reshape(M, Cp)
        h2 = jnp.maximum(h2 * scale_ref[...] + shift_ref[...], 0.0)
        h_in = h2.reshape(H, W, Cp)

    # Border-only zeroing of the halo scratch (interior fully overwritten).
    zdt = pad_ref.dtype
    pad_ref[0:1, :, :] = jnp.zeros((1, Wh, Cp), zdt)
    pad_ref[H + 1:H + 2, :, :] = jnp.zeros((1, Wh, Cp), zdt)
    pad_ref[:, 0:_HALO, :] = jnp.zeros((H + 2, _HALO, Cp), zdt)
    pad_ref[:, _HALO + W:Wh, :] = jnp.zeros((H + 2, Wh - _HALO - W, Cp), zdt)
    # Sublane-aligned interior store (left halo = 8).
    pad_ref[1:H + 1, _HALO:_HALO + W, :] = h_in.astype(zdt)

    # 3x3 conv as 9 accumulating (M, Cp) x (Cp, Cp) MXU matmuls (K = Cp each).
    acc = jnp.zeros((M, Cp), jnp.float32)
    for kh in range(3):
        for kw in range(3):
            win = pad_ref[kh:kh + H, _HALO - 1 + kw:_HALO - 1 + kw + W, :]
            acc = acc + jnp.dot(win.reshape(M, Cp), w_ref[kh * 3 + kw],
                                preferred_element_type=jnp.float32)

    y_bf = acc.astype(y_ref.dtype)
    y_ref[0] = y_bf.reshape(H, W, Cp)

    # Per-image partial BN statistics, kept in f32 and computed from the
    # values actually stored (bf16-rounded) so normalization is consistent.
    # TODO(synk): a shifted / Welford-style variance would be more robust when
    #   |mean| >> std; E[x^2]-E[x]^2 in f32 is adequate at these scales.
    yf = y_bf.astype(jnp.float32)
    s1 = jnp.sum(yf, axis=0, keepdims=True)
    s2 = jnp.sum(yf * yf, axis=0, keepdims=True)
    stats_ref[0] = jnp.concatenate([s1, s2], axis=0)          # (2, Cp)


# --------------------------------------------------------------------------
# Kernel 3: bn2 (fused scale/shift) + channel attention + spatial attention +
# residual add + relu, one image per grid step.
# --------------------------------------------------------------------------
def _bn_cbam_residual_kernel(y_ref, scale_ref, shift_ref, res_ref,
                             wca1_ref, wca2_ref, wsa_ref, out_ref, *, c_real):
    _, H, W, Cp = y_ref.shape
    M = H * W

    h2 = y_ref[0].astype(jnp.float32).reshape(M, Cp)
    h2 = h2 * scale_ref[...] + shift_ref[...]                 # bn2 (no relu)

    # ---- channel attention: shared MLP on stacked [avg; max] ----------------
    avg_c = jnp.mean(h2, axis=0, keepdims=True)               # (1, Cp)
    max_c = jnp.max(h2, axis=0, keepdims=True)                # (1, Cp)
    pooled = jnp.concatenate([avg_c, max_c], axis=0)          # (2, Cp)
    hid = jnp.maximum(jnp.dot(pooled, wca1_ref[...],
                              preferred_element_type=jnp.float32), 0.0)
    att = jnp.dot(hid, wca2_ref[...], preferred_element_type=jnp.float32)
    ca = _sigmoid(att[0:1] + att[1:2])                        # (1, Cp)
    h = (h2 * ca).reshape(H, W, Cp)

    # ---- spatial attention: 9 shifted FMAs, scalar weights from SMEM --------
    lane = lax.broadcasted_iota(jnp.int32, (1, 1, Cp), 2)
    cmask = lane < c_real
    avg_s = jnp.sum(h, axis=-1, keepdims=True) * (1.0 / c_real)   # padded lanes = 0
    max_s = jnp.max(jnp.where(cmask, h, -jnp.inf), axis=-1, keepdims=True)

    def pad_hw(p):                                            # (H, W, 1) -> (H+2, W+2, 1)
        zr = jnp.zeros((1, W, 1), jnp.float32)
        p = jnp.concatenate([zr, p, zr], axis=0)
        zc = jnp.zeros((H + 2, 1, 1), jnp.float32)
        return jnp.concatenate([zc, p, zc], axis=1)

    avg_p = pad_hw(avg_s)
    max_p = pad_hw(max_s)
    acc = jnp.zeros((H, W, 1), jnp.float32)
    for kh in range(3):
        for kw in range(3):
            acc = acc + wsa_ref[kh * 3 + kw] * avg_p[kh:kh + H, kw:kw + W, :] \
                      + wsa_ref[9 + kh * 3 + kw] * max_p[kh:kh + H, kw:kw + W, :]
    h = h * _sigmoid(acc)

    # ---- residual add + relu (inplanes == planes, stride 1) ----------------
    out = jnp.maximum(h + res_ref[0].astype(jnp.float32), 0.0)
    out_ref[0] = out.astype(out_ref.dtype)


# --------------------------------------------------------------------------
# Wrappers
# --------------------------------------------------------------------------
def _conv3x3_pass(inp, scale, shift, w_taps, *, fuse_bn_relu):
    N, H, W, Cp = inp.shape
    Wh = _HALO + _round_up(W + 1, 8)
    kernel = functools.partial(_conv3x3_stats_kernel, fuse_bn_relu=fuse_bn_relu)
    y, stats = pl.pallas_call(
        kernel,
        grid=(N,),
        in_specs=[
            pl.BlockSpec((1, H, W, Cp), lambda n: (n, 0, 0, 0)),     # input image
            pl.BlockSpec((1, Cp), lambda n: (0, 0)),                 # bn scale
            pl.BlockSpec((1, Cp), lambda n: (0, 0)),                 # bn shift
            pl.BlockSpec((9, Cp, Cp), lambda n: (0, 0, 0)),          # conv taps
        ],
        out_specs=[
            pl.BlockSpec((1, H, W, Cp), lambda n: (n, 0, 0, 0)),     # pre-BN out
            pl.BlockSpec((1, 2, Cp), lambda n: (n, 0, 0)),           # partial stats
        ],
        out_shape=[
            jax.ShapeDtypeStruct((N, H, W, Cp), jnp.bfloat16),
            jax.ShapeDtypeStruct((N, 2, Cp), jnp.float32),
        ],
        scratch_shapes=[pltpu.VMEM((H + 2, Wh, Cp), jnp.bfloat16)],
        compiler_params=pltpu.CompilerParams(
            dimension_semantics=("parallel",),
            vmem_limit_bytes=_VMEM_LIMIT),
    )(inp, scale, shift, w_taps)
    return y, stats


def _bn_cbam_residual_pass(y2, scale2, shift2, x, wca1, wca2, wsa, *, c_real):
    N, H, W, Cp = y2.shape
    hidden = wca1.shape[1]
    kernel = functools.partial(_bn_cbam_residual_kernel, c_real=c_real)
    return pl.pallas_call(
        kernel,
        grid=(N,),
        in_specs=[
            pl.BlockSpec((1, H, W, Cp), lambda n: (n, 0, 0, 0)),     # bn2 input
            pl.BlockSpec((1, Cp), lambda n: (0, 0)),
            pl.BlockSpec((1, Cp), lambda n: (0, 0)),
            pl.BlockSpec((1, H, W, Cp), lambda n: (n, 0, 0, 0)),     # residual x
            pl.BlockSpec((Cp, hidden), lambda n: (0, 0)),
            pl.BlockSpec((hidden, Cp), lambda n: (0, 0)),
            pl.BlockSpec(memory_space=pltpu.MemorySpace.SMEM),       # sa scalars
        ],
        out_specs=pl.BlockSpec((1, H, W, Cp), lambda n: (n, 0, 0, 0)),
        out_shape=jax.ShapeDtypeStruct((N, H, W, Cp), jnp.bfloat16),
        compiler_params=pltpu.CompilerParams(
            dimension_semantics=("parallel",),
            vmem_limit_bytes=_VMEM_LIMIT),
    )(y2, scale2, shift2, x, wca1, wca2, wsa)


def _bn_scale_shift(stats, gamma, beta, count):
    """Global reduction of the per-image partial BN stats -> fused scale/shift."""
    tot = jnp.sum(stats, axis=0)                              # (2, Cp) f32
    mean = tot[0:1] / count
    var = tot[1:2] / count - mean * mean
    scale = gamma * lax.rsqrt(var + _EPS)
    shift = beta - mean * scale
    return scale, shift


def prepare_block_params(p):
    """Pad / transpose the PyTorch-layout parameters ONCE per model (hoisted
    out of the forward path).  Padded channels get zero weights/gamma/beta so
    they stay exactly zero end-to-end."""
    planes = p["w1"].shape[0]
    inplanes = p["w1"].shape[1]
    Cp = _round_up(max(planes, inplanes), _LANES)
    hidden = p["wca1"].shape[0]

    def conv3x3_taps(w):
        co, ci = w.shape[0], w.shape[1]
        taps = jnp.transpose(w.astype(jnp.float32), (2, 3, 1, 0)).reshape(9, ci, co)
        taps = jnp.pad(taps, ((0, 0), (0, Cp - ci), (0, Cp - co)))
        return taps.astype(jnp.bfloat16)                      # (9, Cp, Cp)

    def row(a):
        return jnp.pad(a.astype(jnp.float32).reshape(1, -1),
                       ((0, 0), (0, Cp - a.shape[0])))

    wca1 = jnp.pad(p["wca1"].reshape(hidden, planes).T.astype(jnp.float32),
                   ((0, Cp - planes), (0, 0)))                # (Cp, hidden) - hidden NOT padded
    wca2 = jnp.pad(p["wca2"].reshape(planes, hidden).T.astype(jnp.float32),
                   ((0, 0), (0, Cp - planes)))                # (hidden, Cp)

    return {
        "Cp": Cp, "planes": planes,
        "w1": conv3x3_taps(p["w1"]), "w2": conv3x3_taps(p["w2"]),
        "g1": row(p["g1"]), "b1": row(p["b1"]),
        "g2": row(p["g2"]), "b2": row(p["b2"]),
        "wca1": wca1, "wca2": wca2,
        "wsa": p["wsa"].reshape(-1).astype(jnp.float32),      # (18,) [ci, kh, kw]
    }


def basic_block_forward(x_nchw, pp):
    """CBAM BasicBlock forward (stride=1, no downsample), training-mode BN."""
    N, C, H, W = x_nchw.shape
    planes, Cp = pp["planes"], pp["Cp"]
    if C != planes:
        raise ValueError("residual path requires inplanes == planes")

    x = jnp.transpose(x_nchw, (0, 2, 3, 1))                   # NCHW -> NHWC
    x = jnp.pad(x, ((0, 0), (0, 0), (0, 0), (0, Cp - C))).astype(jnp.bfloat16)

    count = float(N * H * W)
    one = jnp.ones((1, Cp), jnp.float32)
    zero = jnp.zeros((1, Cp), jnp.float32)

    # conv1 + per-image partial bn1 stats (scale/shift unused here)
    y1, st1 = _conv3x3_pass(x, one, zero, pp["w1"], fuse_bn_relu=False)
    scale1, shift1 = _bn_scale_shift(st1, pp["g1"], pp["b1"], count)

    # bn1+relu fused into conv2's input; conv2 + per-image partial bn2 stats
    y2, st2 = _conv3x3_pass(y1, scale1, shift1, pp["w2"], fuse_bn_relu=True)
    scale2, shift2 = _bn_scale_shift(st2, pp["g2"], pp["b2"], count)

    # bn2 + channel attention + spatial attention + residual + relu
    out = _bn_cbam_residual_pass(y2, scale2, shift2, x, pp["wca1"], pp["wca2"],
                                 pp["wsa"], c_real=planes)

    out = out[..., :planes].astype(jnp.float32)
    return jnp.transpose(out, (0, 3, 1, 2))                   # back to NCHW


# ------------------------- pure-JAX reference (NCHW) -------------------------
def _ref_basic_block(x, p):
    def conv(xx, w, pad):
        return lax.conv_general_dilated(
            xx, w, (1, 1), [(pad, pad), (pad, pad)],
            dimension_numbers=("NCHW", "OIHW", "NCHW"),
            precision=lax.Precision.HIGHEST)

    def bn(xx, g, b):
        m = xx.mean(axis=(0, 2, 3), keepdims=True)
        v = ((xx - m) ** 2).mean(axis=(0, 2, 3), keepdims=True)
        return (xx - m) * lax.rsqrt(v + _EPS) * g.reshape(1, -1, 1, 1) \
            + b.reshape(1, -1, 1, 1)

    relu = lambda t: jnp.maximum(t, 0.0)
    sigmoid = jax.nn.sigmoid

    out = relu(bn(conv(x, p["w1"], 1), p["g1"], p["b1"]))
    out = bn(conv(out, p["w2"], 1), p["g2"], p["b2"])

    avg = out.mean(axis=(2, 3), keepdims=True)
    mx = out.max(axis=(2, 3), keepdims=True)
    fc = lambda v: conv(relu(conv(v, p["wca1"], 0)), p["wca2"], 0)
    ca = sigmoid(fc(avg) + fc(mx))
    out = ca * out

    avg_s = out.mean(axis=1, keepdims=True)
    max_s = out.max(axis=1, keepdims=True)
    sa = sigmoid(conv(jnp.concatenate([avg_s, max_s], axis=1), p["wsa"], 1))
    out = sa * out

    return relu(out + x)


def _init_params(key, inplanes, planes, ca_hidden=8):
    ks = jax.random.split(key, 9)
    w = lambda k, s: (0.2 * jax.random.normal(k, s)).astype(jnp.float32)
    return {
        "w1": w(ks[0], (planes, inplanes, 3, 3)),
        "g1": (1.0 + 0.1 * jax.random.normal(ks[1], (planes,))).astype(jnp.float32),
        "b1": (0.1 * jax.random.normal(ks[2], (planes,))).astype(jnp.float32),
        "w2": w(ks[3], (planes, planes, 3, 3)),
        "g2": (1.0 + 0.1 * jax.random.normal(ks[4], (planes,))).astype(jnp.float32),
        "b2": (0.1 * jax.random.normal(ks[5], (planes,))).astype(jnp.float32),
        "wca1": w(ks[6], (ca_hidden, inplanes, 1, 1)),
        "wca2": w(ks[7], (inplanes, ca_hidden, 1, 1)),
        "wsa": w(ks[8], (1, 2, 3, 3)),
    }


if __name__ == "__main__":
    key = jax.random.PRNGKey(0)
    kx, kp = jax.random.split(key)

    # small deterministic example: N=2, inplanes=planes=4, 16x16 spatial
    N, C, H, W = 2, 4, 16, 16
    inplanes = planes = C       # required for the `out += residual` add

    x = jax.random.normal(kx, (N, C, H, W), jnp.float32)
    params = _init_params(kp, inplanes, planes)
    prepped = prepare_block_params(params)     # once per model, not per call

    out = jax.block_until_ready(basic_block_forward(x, prepped))
    ref = _ref_basic_block(x, params)

    # Kernel stores activations in bf16 and runs matmuls at default MXU
    # precision (bf16 operands, f32 accumulation); the f32 HIGHEST-precision
    # reference therefore differs at roughly the 1e-2 level, hence 5e-2 tol.
    np.testing.assert_allclose(np.asarray(out), np.asarray(ref),
                               atol=5e-2, rtol=5e-2)
    print("KERNEL_OK")
</pallas_src>

<mosaic_0001>
module attributes {stable_mosaic.version = 11 : i64} {
  func.func @_conv3x3_stats_kernel(%arg0: i32, %arg1: memref<1x16x16x128xbf16, #tpu.memory_space<vmem>>, %arg2: memref<1x128xf32, #tpu.memory_space<vmem>>, %arg3: memref<1x128xf32, #tpu.memory_space<vmem>>, %arg4: memref<9x128x128xbf16, #tpu.memory_space<vmem>>, %arg5: memref<1x16x16x128xbf16, #tpu.memory_space<vmem>>, %arg6: memref<1x2x128xf32, #tpu.memory_space<vmem>>, %arg7: memref<18x32x128xbf16, #tpu.memory_space<vmem>>) attributes {dimension_semantics = [#tpu.dimension_semantics<parallel>], iteration_bounds = array<i64: 2>, scalar_prefetch = 0 : i64, scratch_operands = 1 : i64, tpu.core_type = #tpu.core_type<tc>, window_params = [{transform_indices = @transform_0, window_bounds = array<i64: 1, 16, 16, 128>}, {pipeline_mode = #tpu.pipeline_mode<synchronous>, transform_indices = @transform_1, window_bounds = array<i64: 1, 128>}, {pipeline_mode = #tpu.pipeline_mode<synchronous>, transform_indices = @transform_2, window_bounds = array<i64: 1, 128>}, {pipeline_mode = #tpu.pipeline_mode<synchronous>, transform_indices = @transform_3, window_bounds = array<i64: 9, 128, 128>}, {transform_indices = @transform_4, window_bounds = array<i64: 1, 16, 16, 128>}, {transform_indices = @transform_5, window_bounds = array<i64: 1, 2, 128>}]} {
    %c0 = arith.constant 0 : index
    %c0_0 = arith.constant 0 : index
    %c0_1 = arith.constant 0 : index
    %c0_2 = arith.constant 0 : index
    %0 = vector.load %arg1[%c0, %c0_0, %c0_1, %c0_2] : memref<1x16x16x128xbf16, #tpu.memory_space<vmem>>, vector<1x16x16x128xbf16>
    %1 = vector.shape_cast %0 : vector<1x16x16x128xbf16> to vector<16x16x128xbf16>
    %2 = arith.extf %1 : vector<16x16x128xbf16> to vector<16x16x128xf32>
    %cst = arith.constant 0.000000e+00 : bf16
    %3 = vector.broadcast %cst : bf16 to vector<1x32x128xbf16>
    %c0_3 = arith.constant 0 : index
    %c0_4 = arith.constant 0 : index
    %c0_5 = arith.constant 0 : index
    %4 = vector.load %arg7[%c0_3, %c0_4, %c0_5] : memref<18x32x128xbf16, #tpu.memory_space<vmem>>, vector<1x32x128xbf16>
    tpu.vector_store %arg7[%c0_3, %c0_4, %c0_5], %3 {strides = array<i32>} : memref<18x32x128xbf16, #tpu.memory_space<vmem>>, vector<1x32x128xbf16>,
    %cst_6 = arith.constant 0.000000e+00 : bf16
    %5 = vector.broadcast %cst_6 : bf16 to vector<1x32x128xbf16>
    %c17 = arith.constant 17 : index
    %c0_7 = arith.constant 0 : index
    %c0_8 = arith.constant 0 : index
    %6 = vector.load %arg7[%c17, %c0_7, %c0_8] : memref<18x32x128xbf16, #tpu.memory_space<vmem>>, vector<1x32x128xbf16>
    tpu.vector_store %arg7[%c17, %c0_7, %c0_8], %5 {strides = array<i32>} : memref<18x32x128xbf16, #tpu.memory_space<vmem>>, vector<1x32x128xbf16>,
    %cst_9 = arith.constant 0.000000e+00 : bf16
    %7 = vector.broadcast %cst_9 : bf16 to vector<18x8x128xbf16>
    %c0_10 = arith.constant 0 : index
    %c0_11 = arith.constant 0 : index
    %c0_12 = arith.constant 0 : index
    %8 = vector.load %arg7[%c0_10, %c0_11, %c0_12] : memref<18x32x128xbf16, #tpu.memory_space<vmem>>, vector<18x8x128xbf16>
    tpu.vector_store %arg7[%c0_10, %c0_11, %c0_12], %7 {strides = array<i32>} : memref<18x32x128xbf16, #tpu.memory_space<vmem>>, vector<18x8x128xbf16>,
    %cst_13 = arith.constant 0.000000e+00 : bf16
    %9 = vector.broadcast %cst_13 : bf16 to vector<18x8x128xbf16>
    %c0_14 = arith.constant 0 : index
    %c24 = arith.constant 24 : index
    %c0_15 = arith.constant 0 : index
    %10 = vector.load %arg7[%c0_14, %c24, %c0_15] : memref<18x32x128xbf16, #tpu.memory_space<vmem>>, vector<18x8x128xbf16>
    tpu.vector_store %arg7[%c0_14, %c24, %c0_15], %9 {strides = array<i32>} : memref<18x32x128xbf16, #tpu.memory_space<vmem>>, vector<18x8x128xbf16>,
    %11 = arith.truncf %2 : vector<16x16x128xf32> to vector<16x16x128xbf16>
    %c1 = arith.constant 1 : index
    %c8 = arith.constant 8 : index
    %c0_16 = arith.constant 0 : index
    %12 = vector.load %arg7[%c1, %c8, %c0_16] : memref<18x32x128xbf16, #tpu.memory_space<vmem>>, vector<16x16x128xbf16>
    tpu.vector_store %arg7[%c1, %c8, %c0_16], %11 {strides = array<i32>} : memref<18x32x128xbf16, #tpu.memory_space<vmem>>, vector<16x16x128xbf16>,
    %cst_17 = arith.constant 0.000000e+00 : f32
    %13 = vector.broadcast %cst_17 : f32 to vector<256x128xf32>
    %c0_18 = arith.constant 0 : index
    %c7 = arith.constant 7 : index
    %c0_19 = arith.constant 0 : index
    %14 = vector.load %arg7[%c0_18, %c7, %c0_19] : memref<18x32x128xbf16, #tpu.memory_space<vmem>>, vector<16x16x128xbf16>
    %15 = vector.shape_cast %14 : vector<16x16x128xbf16> to vector<256x128xbf16>
    %c0_20 = arith.constant 0 : index
    %c0_21 = arith.constant 0 : index
    %c0_22 = arith.constant 0 : index
    %16 = vector.load %arg4[%c0_20, %c0_21, %c0_22] : memref<9x128x128xbf16, #tpu.memory_space<vmem>>, vector<1x128x128xbf16>
    %17 = vector.shape_cast %16 : vector<1x128x128xbf16> to vector<128x128xbf16>
    %cst_23 = arith.constant dense<0.000000e+00> : vector<256x128xf32>
    %18 = tpu.matmul %15, %17, %cst_23 {dimension_numbers = #tpu.dot_dimension_numbers<[1], [0], [0], [1], [0, 0, 1, 1], [], []>} : vector<256x128xbf16>, vector<128x128xbf16>, vector<256x128xf32> -> vector<256x128xf32>
    %19 = arith.addf %13, %18 : vector<256x128xf32>
    %c0_24 = arith.constant 0 : index
    %c8_25 = arith.constant 8 : index
    %c0_26 = arith.constant 0 : index
    %20 = vector.load %arg7[%c0_24, %c8_25, %c0_26] : memref<18x32x128xbf16, #tpu.memory_space<vmem>>, vector<16x16x128xbf16>
    %21 = vector.shape_cast %20 : vector<16x16x128xbf16> to vector<256x128xbf16>
    %c1_27 = arith.constant 1 : index
    %c0_28 = arith.constant 0 : index
    %c0_29 = arith.constant 0 : index
    %22 = vector.load %arg4[%c1_27, %c0_28, %c0_29] : memref<9x128x128xbf16, #tpu.memory_space<vmem>>, vector<1x128x128xbf16>
    %23 = vector.shape_cast %22 : vector<1x128x128xbf16> to vector<128x128xbf16>
    %cst_30 = arith.constant dense<0.000000e+00> : vector<256x128xf32>
    %24 = tpu.matmul %21, %23, %cst_30 {dimension_numbers = #tpu.dot_dimension_numbers<[1], [0], [0], [1], [0, 0, 1, 1], [], []>} : vector<256x128xbf16>, vector<128x128xbf16>, vector<256x128xf32> -> vector<256x128xf32>
    %25 = arith.addf %19, %24 : vector<256x128xf32>
    %c0_31 = arith.constant 0 : index
    %c9 = arith.constant 9 : index
    %c0_32 = arith.constant 0 : index
    %26 = vector.load %arg7[%c0_31, %c9, %c0_32] : memref<18x32x128xbf16, #tpu.memory_space<vmem>>, vector<16x16x128xbf16>
    %27 = vector.shape_cast %26 : vector<16x16x128xbf16> to vector<256x128xbf16>
    %c2 = arith.constant 2 : index
    %c0_33 = arith.constant 0 : index
    %c0_34 = arith.constant 0 : index
    %28 = vector.load %arg4[%c2, %c0_33, %c0_34] : memref<9x128x128xbf16, #tpu.memory_space<vmem>>, vector<1x128x128xbf16>
    %29 = vector.shape_cast %28 : vector<1x128x128xbf16> to vector<128x128xbf16>
    %cst_35 = arith.constant dense<0.000000e+00> : vector<256x128xf32>
    %30 = tpu.matmul %27, %29, %cst_35 {dimension_numbers = #tpu.dot_dimension_numbers<[1], [0], [0], [1], [0, 0, 1, 1], [], []>} : vector<256x128xbf16>, vector<128x128xbf16>, vector<256x128xf32> -> vector<256x128xf32>
    %31 = arith.addf %25, %30 : vector<256x128xf32>
    %c1_36 = arith.constant 1 : index
    %c7_37 = arith.constant 7 : index
    %c0_38 = arith.constant 0 : index
    %32 = vector.load %arg7[%c1_36, %c7_37, %c0_38] : memref<18x32x128xbf16, #tpu.memory_space<vmem>>, vector<16x16x128xbf16>
    %33 = vector.shape_cast %32 : vector<16x16x128xbf16> to vector<256x128xbf16>
    %c3 = arith.constant 3 : index
    %c0_39 = arith.constant 0 : index
    %c0_40 = arith.constant 0 : index
    %34 = vector.load %arg4[%c3, %c0_39, %c0_40] : memref<9x128x128xbf16, #tpu.memory_space<vmem>>, vector<1x128x128xbf16>
    %35 = vector.shape_cast %34 : vector<1x128x128xbf16> to vector<128x128xbf16>
    %cst_41 = arith.constant dense<0.000000e+00> : vector<256x128xf32>
    %36 = tpu.matmul %33, %35, %cst_41 {dimension_numbers = #tpu.dot_dimension_numbers<[1], [0], [0], [1], [0, 0, 1, 1], [], []>} : vector<256x128xbf16>, vector<128x128xbf16>, vector<256x128xf32> -> vector<256x128xf32>
    %37 = arith.addf %31, %36 : vector<256x128xf32>
    %c1_42 = arith.constant 1 : index
    %c8_43 = arith.constant 8 : index
    %c0_44 = arith.constant 0 : index
    %38 = vector.load %arg7[%c1_42, %c8_43, %c0_44] : memref<18x32x128xbf16, #tpu.memory_space<vmem>>, vector<16x16x128xbf16>
    %39 = vector.shape_cast %38 : vector<16x16x128xbf16> to vector<256x128xbf16>
    %c4 = arith.constant 4 : index
    %c0_45 = arith.constant 0 : index
    %c0_46 = arith.constant 0 : index
    %40 = vector.load %arg4[%c4, %c0_45, %c0_46] : memref<9x128x128xbf16, #tpu.memory_space<vmem>>, vector<1x128x128xbf16>
    %41 = vector.shape_cast %40 : vector<1x128x128xbf16> to vector<128x128xbf16>
    %cst_47 = arith.constant dense<0.000000e+00> : vector<256x128xf32>
    %42 = tpu.matmul %39, %41, %cst_47 {dimension_numbers = #tpu.dot_dimension_numbers<[1], [0], [0], [1], [0, 0, 1, 1], [], []>} : vector<256x128xbf16>, vector<128x128xbf16>, vector<256x128xf32> -> vector<256x128xf32>
    %43 = arith.addf %37, %42 : vector<256x128xf32>
    %c1_48 = arith.constant 1 : index
    %c9_49 = arith.constant 9 : index
    %c0_50 = arith.constant 0 : index
    %44 = vector.load %arg7[%c1_48, %c9_49, %c0_50] : memref<18x32x128xbf16, #tpu.memory_space<vmem>>, vector<16x16x128xbf16>
    %45 = vector.shape_cast %44 : vector<16x16x128xbf16> to vector<256x128xbf16>
    %c5 = arith.constant 5 : index
    %c0_51 = arith.constant 0 : index
    %c0_52 = arith.constant 0 : index
    %46 = vector.load %arg4[%c5, %c0_51, %c0_52] : memref<9x128x128xbf16, #tpu.memory_space<vmem>>, vector<1x128x128xbf16>
    %47 = vector.shape_cast %46 : vector<1x128x128xbf16> to vector<128x128xbf16>
    %cst_53 = arith.constant dense<0.000000e+00> : vector<256x128xf32>
    %48 = tpu.matmul %45, %47, %cst_53 {dimension_numbers = #tpu.dot_dimension_numbers<[1], [0], [0], [1], [0, 0, 1, 1], [], []>} : vector<256x128xbf16>, vector<128x128xbf16>, vector<256x128xf32> -> vector<256x128xf32>
    %49 = arith.addf %43, %48 : vector<256x128xf32>
    %c2_54 = arith.constant 2 : index
    %c7_55 = arith.constant 7 : index
    %c0_56 = arith.constant 0 : index
    %50 = vector.load %arg7[%c2_54, %c7_55, %c0_56] : memref<18x32x128xbf16, #tpu.memory_space<vmem>>, vector<16x16x128xbf16>
    %51 = vector.shape_cast %50 : vector<16x16x128xbf16> to vector<256x128xbf16>
    %c6 = arith.constant 6 : index
    %c0_57 = arith.constant 0 : index
    %c0_58 = arith.constant 0 : index
    %52 = vector.load %arg4[%c6, %c0_57, %c0_58] : memref<9x128x128xbf16, #tpu.memory_space<vmem>>, vector<1x128x128xbf16>
    %53 = vector.shape_cast %52 : vector<1x128x128xbf16> to vector<128x128xbf16>
    %cst_59 = arith.constant dense<0.000000e+00> : vector<256x128xf32>
    %54 = tpu.matmul %51, %53, %cst_59 {dimension_numbers = #tpu.dot_dimension_numbers<[1], [0], [0], [1], [0, 0, 1, 1], [], []>} : vector<256x128xbf16>, vector<128x128xbf16>, vector<256x128xf32> -> vector<256x128xf32>
    %55 = arith.addf %49, %54 : vector<256x128xf32>
    %c2_60 = arith.constant 2 : index
    %c8_61 = arith.constant 8 : index
    %c0_62 = arith.constant 0 : index
    %56 = vector.load %arg7[%c2_60, %c8_61, %c0_62] : memref<18x32x128xbf16, #tpu.memory_space<vmem>>, vector<16x16x128xbf16>
    %57 = vector.shape_cast %56 : vector<16x16x128xbf16> to vector<256x128xbf16>
    %c7_63 = arith.constant 7 : index
    %c0_64 = arith.constant 0 : index
    %c0_65 = arith.constant 0 : index
    %58 = vector.load %arg4[%c7_63, %c0_64, %c0_65] : memref<9x128x128xbf16, #tpu.memory_space<vmem>>, vector<1x128x128xbf16>
    %59 = vector.shape_cast %58 : vector<1x128x128xbf16> to vector<128x128xbf16>
    %cst_66 = arith.constant dense<0.000000e+00> : vector<256x128xf32>
    %60 = tpu.matmul %57, %59, %cst_66 {dimension_numbers = #tpu.dot_dimension_numbers<[1], [0], [0], [1], [0, 0, 1, 1], [], []>} : vector<256x128xbf16>, vector<128x128xbf16>, vector<256x128xf32> -> vector<256x128xf32>
    %61 = arith.addf %55, %60 : vector<256x128xf32>
    %c2_67 = arith.constant 2 : index
    %c9_68 = arith.constant 9 : index
    %c0_69 = arith.constant 0 : index
    %62 = vector.load %arg7[%c2_67, %c9_68, %c0_69] : memref<18x32x128xbf16, #tpu.memory_space<vmem>>, vector<16x16x128xbf16>
    %63 = vector.shape_cast %62 : vector<16x16x128xbf16> to vector<256x128xbf16>
    %c8_70 = arith.constant 8 : index
    %c0_71 = arith.constant 0 : index
    %c0_72 = arith.constant 0 : index
    %64 = vector.load %arg4[%c8_70, %c0_71, %c0_72] : memref<9x128x128xbf16, #tpu.memory_space<vmem>>, vector<1x128x128xbf16>
    %65 = vector.shape_cast %64 : vector<1x128x128xbf16> to vector<128x128xbf16>
    %cst_73 = arith.constant dense<0.000000e+00> : vector<256x128xf32>
    %66 = tpu.matmul %63, %65, %cst_73 {dimension_numbers = #tpu.dot_dimension_numbers<[1], [0], [0], [1], [0, 0, 1, 1], [], []>} : vector<256x128xbf16>, vector<128x128xbf16>, vector<256x128xf32> -> vector<256x128xf32>
    %67 = arith.addf %61, %66 : vector<256x128xf32>
    %68 = arith.truncf %67 : vector<256x128xf32> to vector<256x128xbf16>
    %69 = vector.shape_cast %68 : vector<256x128xbf16> to vector<16x16x128xbf16>
    %c0_74 = arith.constant 0 : index
    %c0_75 = arith.constant 0 : index
    %c0_76 = arith.constant 0 : index
    %c0_77 = arith.constant 0 : index
    %70 = vector.load %arg5[%c0_74, %c0_75, %c0_76, %c0_77] : memref<1x16x16x128xbf16, #tpu.memory_space<vmem>>, vector<1x16x16x128xbf16>
    %71 = vector.shape_cast %70 : vector<1x16x16x128xbf16> to vector<16x16x128xbf16>
    %72 = vector.shape_cast %69 : vector<16x16x128xbf16> to vector<1x16x16x128xbf16>
    tpu.vector_store %arg5[%c0_74, %c0_75, %c0_76, %c0_77], %72 {strides = array<i32>} : memref<1x16x16x128xbf16, #tpu.memory_space<vmem>>, vector<1x16x16x128xbf16>,
    %73 = arith.extf %68 : vector<256x128xbf16> to vector<256x128xf32>
    %cst_78 = arith.constant dense<0.000000e+00> : vector<128xf32>
    %74 = vector.multi_reduction <add>, %73, %cst_78 [0] : vector<256x128xf32> to vector<128xf32>
    %75 = vector.shape_cast %74 : vector<128xf32> to vector<1x128xf32>
    %76 = arith.mulf %73, %73 : vector<256x128xf32>
    %cst_79 = arith.constant dense<0.000000e+00> : vector<128xf32>
    %77 = vector.multi_reduction <add>, %76, %cst_79 [0] : vector<256x128xf32> to vector<128xf32>
    %78 = vector.shape_cast %77 : vector<128xf32> to vector<1x128xf32>
    %79 = tpu.concatenate %75, %78 in 0 : vector<1x128xf32>, vector<1x128xf32> -> vector<2x128xf32>
    %c0_80 = arith.constant 0 : index
    %c0_81 = arith.constant 0 : index
    %c0_82 = arith.constant 0 : index
    %80 = vector.load %arg6[%c0_80, %c0_81, %c0_82] : memref<1x2x128xf32, #tpu.memory_space<vmem>>, vector<1x2x128xf32>
    %81 = vector.shape_cast %80 : vector<1x2x128xf32> to vector<2x128xf32>
    %82 = vector.shape_cast %79 : vector<2x128xf32> to vector<1x2x128xf32>
    tpu.vector_store %arg6[%c0_80, %c0_81, %c0_82], %82 {strides = array<i32>} : memref<1x2x128xf32, #tpu.memory_space<vmem>>, vector<1x2x128xf32>,
    return
  }
  func.func @transform_0(%arg0: i32) -> (i32, i32, i32, i32) {
    %c0_i32 = arith.constant 0 : i32
    %c0_i32_0 = arith.constant 0 : i32
    %c0_i32_1 = arith.constant 0 : i32
    %c0_i32_2 = arith.constant 0 : i32
    return %arg0, %c0_i32, %c0_i32_0, %c0_i32_1 : i32, i32, i32, i32
  }
  func.func @transform_1(%arg0: i32) -> (i32, i32) {
    %c0_i32 = arith.constant 0 : i32
    %c0_i32_0 = arith.constant 0 : i32
    %c0_i32_1 = arith.constant 0 : i32
    return %c0_i32, %c0_i32_0 : i32, i32
  }
  func.func @transform_2(%arg0: i32) -> (i32, i32) {
    %c0_i32 = arith.constant 0 : i32
    %c0_i32_0 = arith.constant 0 : i32
    %c0_i32_1 = arith.constant 0 : i32
    return %c0_i32, %c0_i32_0 : i32, i32
  }
  func.func @transform_3(%arg0: i32) -> (i32, i32, i32) {
    %c0_i32 = arith.constant 0 : i32
    %c0_i32_0 = arith.constant 0 : i32
    %c0_i32_1 = arith.constant 0 : i32
    %c0_i32_2 = arith.constant 0 : i32
    return %c0_i32, %c0_i32_0, %c0_i32_1 : i32, i32, i32
  }
  func.func @transform_4(%arg0: i32) -> (i32, i32, i32, i32) {
    %c0_i32 = arith.constant 0 : i32
    %c0_i32_0 = arith.constant 0 : i32
    %c0_i32_1 = arith.constant 0 : i32
    %c0_i32_2 = arith.constant 0 : i32
    return %arg0, %c0_i32, %c0_i32_0, %c0_i32_1 : i32, i32, i32, i32
  }
  func.func @transform_5(%arg0: i32) -> (i32, i32, i32) {
    %c0_i32 = arith.constant 0 : i32
    %c0_i32_0 = arith.constant 0 : i32
    %c0_i32_1 = arith.constant 0 : i32
    return %arg0, %c0_i32, %c0_i32_0 : i32, i32, i32
  }
}

</mosaic_0001>

<bundles_post_ra>
// kernel: tpu_custom_call.1
= control target key start
LH: loop header
LB: loop body
LE: loop exit
PB: predicated region body
PF: predicated region fallthrough
CT: control target
= control target key end

     0   :  { %s8035_s0 = inlined_call_operand.hbm [shape: bf16[2,16,16,128], index: 0, kind: input, shape index: {}]   ;;  %s8036_s1 = inlined_call_operand.hbm [shape: f32[1,128], index: 1, kind: input, shape index: {}]   ;;  %s8037_s2 = inlined_call_operand.vmem [shape: f32[1,128], index: 2, kind: input, shape index: {}]   ;;  %s8038_s3 = inlined_call_operand.hbm [shape: bf16[9,128,128], index: 3, kind: input, shape index: {}]   ;;  %s8039_s4 = inlined_call_operand.hbm [shape: bf16[2,16,16,128], index: 4, kind: output, shape index: {0}]   ;;  %s8040_s5 = inlined_call_operand.hbm [shape: f32[2,2,128], index: 5, kind: output, shape index: {1}]  }
   0x1   :  { %8041 = sst [smem:[#allocation32_spill]] %s8036_s1 }
   0x2   :  { %8042 = sst [smem:[#allocation33_spill]] %s8038_s3 }
   0x3   :  { %11 = vsyncpa [#allocation4], 0 }
   0x4   :  { %13 = vsyncpa [#allocation4 + $0x1], 0 }
   0x5   :  { %14 = vsyncpa [#allocation7], 0 }
   0x6   :  { %15 = vsyncpa [#allocation5], 0 }
   0x7   :  { %17 = vsyncpa [#allocation5 + $0x1], 0 }
   0x8   :  { %18 = vsyncpa [#allocation11], 0 }
   0x9   :  { %20 = vsyncpa [#allocation11 + $0x1], 0  ;;  %s6645_s18 = smov 0   ;;  %s6647_s19 = smov 0  }
   0xa   :  { %s6649_s2 = smov 0   ;;  %s6651_s20 = smov 0  }
   0xb LB: > { %s6666_s21 = sadd.s32 4294967295, %s6606_s20   ;;  %s5547_s22 = sadd.s32 4294967294, %s6606_s20   ;;  %s6606_s20 = sphi %s6651_s20, %s8103_s20   ;;  %s6602_s2 = sphi %s6649_s2, %s8102_s2   ;;  %s6598_s19 = sphi %s6647_s19, %s8101_s19   ;;  %s6594_s18 = sphi %s6645_s18, %s8100_s18  }
   0xc   : > { %s6670_s23 = sadd.s32 1, %s6606_s20   ;;  %s33_s24 = sadd.s32 1, %s6602_s2 }
   0xd   : > { %s30_s25 = ssub.s32 %s6606_s20, %s6670_s23  ;;  %p40_p0 = scmp.ne.s32.totalorder %s6602_s2, %s6598_s19 }
   0xe   : > { %p31_p1 = scmp.eq.s32.totalorder %s30_s25, 0  ;;  %p41_p2 = scmp.eq.s32.totalorder %s6606_s20, 0 }
   0xf   : > { %p46_p3 = scmp.ne.s32.totalorder %s6598_s19, %s6594_s18  ;;  %p47_p4 = scmp.eq.s32.totalorder %s6666_s21, 0 }
  0x10   : > { %s6682_s26 = scalar_select %p31_p1, %s6602_s2, %s33_s24  }
  0x11   : > { %p6684_p5 = por %p41_p2, %p40_p0  ;;  %p6690_p6 = por %p47_p4, %p46_p3 }
  0x12   : > { %8043 = sst [smem:[#allocation16_spill]] %s6682_s26  ;;  %p133_p7 = scmp.eq.s32.totalorder %s6666_s21, 1 }
  0x13   : > { %p139_p8 = scmp.eq.s32.totalorder %s5547_s22, 1  ;;  %p5548_p9 = scmp.ge.s32.totalorder %s6606_s20, 1 }
  0x14   : > { %p172_p10 = scmp.lt.s32.totalorder %s6606_s20, 3  ;;  %p6697_p11 = por %p133_p7, %p40_p0 }
  0x15   : > { %p6701_p12 = por %p139_p8, %p46_p3  ;;  %s8049_s1 = sld [smem:[#allocation32_spill]] }
  0x16   : > { %p6705_p13 = pnand %p5548_p9, %p172_p10  ;;  %s6608_s10 = smov [#allocation6]  }
  0x17   : > { %s186_s11 = sshll.u32 %s6608_s10, 4  ;;  %p6371_p3 = scmp.lt.s32.totalorder %s6606_s20, 2  ;;  %s187_s11 = int_to_ptr.vmem [resolvable:$true] %s186_s11 }
  0x18   : > { %p6351_p1 = pneg %p6705_p13  ;;  %s8050_s3 = sld [smem:[#allocation33_spill]] }
  0x19   : > { %p6723_p7 = pnand %p6371_p3, %p6684_p5  ;;  %s6609_s16 = smov [#allocation8]  }
  0x1a   : > { %p6352_p2 = pnand %p6351_p1, %p47_p4  ;;  %s200_s17 = sshll.u32 %s6609_s16, 4  ;;  %s201_s17 = int_to_ptr.vmem [resolvable:$true] %s200_s17 }
  0x1b   : > { %s184_s9 = sshll.u32 %s8049_s1, 4  ;;  %s214_s22 = sand.u32 1, %s6602_s2   ;;  %s185_s9 = int_to_ptr.hbm [resolvable:$true] %s184_s9 }
  0x1c   : > { %6354 = dma.hbm_to_vmem [thread:$0]  (!%p6352_p2), %s185_s9, 16, %s187_s11, [#allocation7]  }
  0x1d   : > { %s6610_s24 = smov 64   ;;  %s6611_s25 = smov 4  }
  0x1e   : > { %s198_s14 = sshll.u32 %s8050_s3, 4  ;;  %s5552_s7 = sshll.u32 %s214_s22, 7  ;;  %s199_s14 = int_to_ptr.hbm [resolvable:$true] %s198_s14 }
  0x1f   : > { %6357 = dma.hbm_to_vmem [thread:$0]  (!%p6352_p2), %s199_s14, 9216, %s201_s17, [#allocation7], %s6610_s24, %s6610_s24, %s6611_s25  }
  0x20   : > { %s6096_s8 = sshll.u32 %s6606_s20, 7  ;;  %s218_s9 = scalar_lea.vmem [#allocation3], %s5552_s7 }
  0x21   : > { %s223_s13 = scalar_lea.hbm %s8035_s0, %s6096_s8  ;;  %s226_s27 = sshll.u32 %s218_s9, 4  ;;  %s227_s27 = int_to_ptr.vmem [resolvable:$true] %s226_s27 }
  0x22   : > { %s224_s11 = sshll.u32 %s223_s13, 4  ;;  %s215_s1 = scalar_lea.sflag [#allocation4], %s214_s22  ;;  %s225_s11 = int_to_ptr.hbm [resolvable:$true] %s224_s11 }
  0x23   : > { %s6474_s3 = sshra.s32 %s225_s11, 4  ;;  %p6478_p8 = pneg %p6723_p7  ;;  %s6475_s3 = int_to_ptr.hbm [resolvable:$true] %s6474_s3 }
  0x24   : > { %s6476_s16 = scalar_lea.hbm %s6475_s3, 128  ;;  %s6481_s26 = scalar_lea.hbm %s8035_s0, 256 }
  0x25   : > { %p6477_p5 = scmp.ne.s32.totalorder %s6475_s3, %s6476_s16  ;;  %p6482_p1 = scmp.lt.s32.totalorder %s6475_s3, %s8035_s0 }
  0x26   : > { %p6483_p2 = scmp.lt.s32.totalorder %s6481_s26, %s6476_s16 }
  0x27   : > { %p6479_p9 = pnand %p6478_p8, %p6477_p5 }
  0x28   : > { %p6484_p3 = por %p6483_p2, %p6482_p1 }
  0x29   : > { %p6480_p10 = pneg %p6479_p9 }
  0x2b   : > { %p6485_p0 = pnand %p6484_p3, %p6480_p10 }
  0x2d   : > { %6488 = shalt.err (!%p6485_p0)
}
  0x2e   : > { %6361 = dma.hbm_to_vmem [thread:$0]  (!%p6723_p7), %s225_s11, 2048, %s227_s27, %s215_s1, %s6610_s24, %s6610_s24, %s6611_s25  }
  0x2f   : > { %238 = sbr.rel (%p6705_p13) target bundleno = 829 (0x33d), region = 36 }
  0x34   : > { %s6745_s22 = sand.u32 1, %s6598_s19  }
  0x35   : > { %s5556_s7 = sshll.u32 %s6745_s22, 7  ;;  %s241_s12 = scalar_lea.sflag [#allocation4], %s6745_s22 }
  0x36   : > { %s6751_s3 = scalar_lea.vmem [#allocation3], %s5556_s7 }
  0x37   : > { %6577 = dma.done.wait (%p6690_p6), %s241_s12, 2048  }
  0x38   : > { %6579 = vsyncadd (%p6690_p6), %s241_s12, 4294965248 }
  0x39   : > { %6581 = dma.done.wait (%p47_p4), [#allocation7], 9232  }
  0x3a   : > { %6583 = vsyncadd (%p47_p4), [#allocation7], 4294958064  ;;  %v6612_v0 = vmov 0   ;;  %v6128_v1 = vld [vmem:[#allocation8 + $0x78] sm:$0xff]  ;;  %v6127_v2 = vld [vmem:[#allocation8 + $0x70] sm:$0xff]  ;;  %s7824_s1 = scalar_lea.vmem [#allocation9], %s5556_s7 }
  0x3b   : > { %321 = vst [vmem:[#allocation2 + $0x4] sm:$0xf] %v6612_v0  ;;  %6313 = vmatpush.bf16.msra.mxu1 %v6128_v1  ;;  %6314 = vmatpush.bf16.msra.mxu2 %v6128_v1  ;;  %v294_v3 = vld [vmem:[%s6751_s3 + $0x18] sm:$0xff]   ;;  %v6126_v6 = vld [vmem:[#allocation8 + $0x68] sm:$0xff]  ;;  %v6125_v7 = vld [vmem:[#allocation8 + $0x60] sm:$0xff]  ;;  %s6217_s26 = sshll.u32 %s6666_s21, 7 }
  0x3c   : > { %322 = vst [vmem:[#allocation2 + $0x8] sm:$0xf] %v6612_v0  ;;  %6315 = vmatpush.bf16.msra.mxu3 %v6128_v1  ;;  %978 = vmatpush.bf16.msra.mxu0 %v6128_v1  ;;  %v302_v4 = vld [vmem:[%s6751_s3 + $0x38] sm:$0xff]   ;;  %v6122_v10 = vld [vmem:[#allocation8 + $0x48] sm:$0xff]  ;;  %v6121_v11 = vld [vmem:[#allocation8 + $0x40] sm:$0xff]  ;;  %s5404_s15 = scalar_lea.hbm %s8039_s4, %s6217_s26  ;;  %s5405_s24 = sshll.u32 %s7824_s1, 4  ;;  %s5406_s24 = int_to_ptr.vmem [resolvable:$true] %s5405_s24 }
  0x3d   : > { %320 = vst [vmem:[#allocation2] sm:$0xf] %v6612_v0  ;;  %v310_v5 = vld [vmem:[%s6751_s3 + $0x58] sm:$0xff]   ;;  %v6134_v24 = vld [vmem:[#allocation8 + $0xa8] sm:$0xff]  ;;  %v296_v26 = vld [vmem:[%s6751_s3 + $0x20] sm:$0xff]   ;;  %s5407_s25 = sshll.u32 %s5404_s15, 4  ;;  %s5408_s25 = int_to_ptr.hbm [resolvable:$true] %s5407_s25 }
  0x3e   : > { %323 = vst [vmem:[#allocation2 + $0xc] sm:$0xf] %v6612_v0  ;;  %v6124_v8 = vld [vmem:[#allocation8 + $0x58] sm:$0xff]  ;;  %v6123_v9 = vld [vmem:[#allocation8 + $0x50] sm:$0xff]  ;;  %v6158_v25 = vld [vmem:[#allocation8 + $0xe8] sm:$0xff]  ;;  %s5388_s13 = scalar_lea.sflag [#allocation5], %s6745_s22 }
  0x3f   : > { %325 = vst [vmem:[#allocation2 + $0x110] sm:$0xf] %v6612_v0  ;;  %6316 = vmatpush.bf16.msra.mxu1 %v6127_v2  ;;  %6317 = vmatpush.bf16.msra.mxu2 %v6127_v2  ;;  %v6136_v12 = vld [vmem:[#allocation8 + $0xb8] sm:$0xff]  ;;  %v6135_v20 = vld [vmem:[#allocation8 + $0xb0] sm:$0xff]  ;;  %v6118_v27 = vld [vmem:[#allocation8 + $0x28] sm:$0xff]  ;;  %s6518_s9 = sshra.s32 %s5408_s25, 4  ;;  %s6519_s9 = int_to_ptr.hbm [resolvable:$true] %s6518_s9 }
  0x40   : > { %326 = vst [vmem:[#allocation2 + $0x114] sm:$0xf] %v6612_v0  ;;  %6318 = vmatpush.bf16.msra.mxu3 %v6127_v2  ;;  %979 = vmatpush.bf16.msra.mxu0 %v6127_v2  ;;  %v6160_v13 = vld [vmem:[#allocation8 + $0xf8] sm:$0xff]  ;;  %v6159_v21 = vld [vmem:[#allocation8 + $0xf0] sm:$0xff]  ;;  %v6166_v28 = vld [vmem:[#allocation8 + $0x128] sm:$0xff]  ;;  %s6520_s27 = scalar_lea.hbm %s6519_s9, 128  ;;  %p6525_p0 = scmp.lt.s32.totalorder %s6519_s9, %s8039_s4 }
  0x41   : > { %327 = vst [vmem:[#allocation2 + $0x118] sm:$0xf] %v6612_v0  ;;  %v6120_v18 = vld [vmem:[#allocation8 + $0x38] sm:$0xff]  ;;  %v6119_v22 = vld [vmem:[#allocation8 + $0x30] sm:$0xff]  ;;  %v6133_v30 = vld [vmem:[#allocation8 + $0xa0] sm:$0xff]  ;;  %p6521_p4 = scmp.ne.s32.totalorder %s6519_s9, %s6520_s27  ;;  %s6524_s14 = scalar_lea.hbm %s8039_s4, 256 }
  0x42   : > { %328 = vst [vmem:[#allocation2 + $0x11c] sm:$0xf] %v6612_v0  ;;  %v6168_v19 = vld [vmem:[#allocation8 + $0x138] sm:$0xff]  ;;  %v6167_v23 = vld [vmem:[#allocation8 + $0x130] sm:$0xff]  ;;  %v6157_v31 = vld [vmem:[#allocation8 + $0xe0] sm:$0xff]  ;;  %p6526_p7 = scmp.lt.s32.totalorder %s6524_s14, %s6520_s27 }
  0x43   : > { %372 = vst [vmem:[#allocation2 + $0x44] sm:$0xff] %v294_v3   ;;  %6319 = vmatpush.bf16.msra.mxu1 %v6126_v6  ;;  %6320 = vmatpush.bf16.msra.mxu2 %v6126_v6  ;;  %v6097_v17 = vld [vmem:[#allocation2 + $0x4] sm:$0xff]  ;;  %v6132_v38 = vld [vmem:[#allocation8 + $0x98] sm:$0xff]  ;;  %v300_v43 = vld [vmem:[%s6751_s3 + $0x30] sm:$0xff]   ;;  %vm446_vm0 = vsmask.f32 256  ;;  %p6522_p6 = pnand %p6521_p4, %p6697_p11 }
  0x44   : > { %380 = vst [vmem:[#allocation2 + $0x84] sm:$0xff] %v302_v4   ;;  %6321 = vmatpush.bf16.msra.mxu3 %v6126_v6  ;;  %980 = vmatpush.bf16.msra.mxu0 %v6126_v6  ;;  %v304_v29 = vld [vmem:[%s6751_s3 + $0x40] sm:$0xff]   ;;  %v298_v35 = vld [vmem:[%s6751_s3 + $0x28] sm:$0xff]   ;;  %v308_v45 = vld [vmem:[%s6751_s3 + $0x50] sm:$0xff]   ;;  %vm447_vm1 = vsmask.f32 4368  ;;  %p6527_p5 = por %p6526_p7, %p6525_p0 }
  0x45   : > { %388 = vst [vmem:[#allocation2 + $0xc4] sm:$0xff] %v310_v5   ;;  %v312_v32 = vld [vmem:[%s6751_s3 + $0x60] sm:$0xff]   ;;  %v306_v37 = vld [vmem:[%s6751_s3 + $0x48] sm:$0xff]   ;;  %v6131_v47 = vld [vmem:[#allocation8 + $0x90] sm:$0xff]  ;;  %vm1316_vm2 = vsmask.f32 3328  ;;  %p6523_p13 = pneg %p6522_p6 }
  0x46   : > { %330 = vst [vmem:[#allocation2 + $0x10] sm:$0xf] %v6612_v0  ;;  %v288_v33 = vld [vmem:[%s6751_s3] sm:$0xff]   ;;  %v314_v40 = vld [vmem:[%s6751_s3 + $0x68] sm:$0xff]   ;;  %v316_v48 = vld [vmem:[%s6751_s3 + $0x70] sm:$0xff]  }
  0x47   : > { %331 = vst [vmem:[#allocation2 + $0x20] sm:$0xf] %v6612_v0  ;;  %6322 = vmatpush.bf16.msra.mxu1 %v6125_v7  ;;  %6323 = vmatpush.bf16.msra.mxu2 %v6125_v7  ;;  %v6117_v34 = vld [vmem:[#allocation8 + $0x20] sm:$0xff]  ;;  %v6156_v39 = vld [vmem:[#allocation8 + $0xd8] sm:$0xff]  ;;  %v6155_v50 = vld [vmem:[#allocation8 + $0xd0] sm:$0xff]  ;;  %p6528_p8 = pnand %p6527_p5, %p6523_p13 }
  0x48   : > { %332 = vst [vmem:[#allocation2 + $0x30] sm:$0xf] %v6612_v0  ;;  %6324 = vmatpush.bf16.msra.mxu3 %v6125_v7  ;;  %981 = vmatpush.bf16.msra.mxu0 %v6125_v7  ;;  %v6165_v36 = vld [vmem:[#allocation8 + $0x120] sm:$0xff]  ;;  %v6164_v42 = vld [vmem:[#allocation8 + $0x118] sm:$0xff]  ;;  %v292_v51 = vld [vmem:[%s6751_s3 + $0x10] sm:$0xff]  }
  0x49   : > { %333 = vst [vmem:[#allocation2 + $0x40] sm:$0xf] %v6612_v0  ;;  %v290_v41 = vld [vmem:[%s6751_s3 + $0x8] sm:$0xff]   ;;  %v6116_v44 = vld [vmem:[#allocation8 + $0x18] sm:$0xff]  ;;  %v6115_v54 = vld [vmem:[#allocation8 + $0x10] sm:$0xff] }
  0x4a   : > { %334 = vst [vmem:[#allocation2 + $0x50] sm:$0xf] %v6612_v0  ;;  %v6101_v14 = vld [vmem:[#allocation2 + $0x44] sm:$0xff]  ;;  %v6163_v57 = vld [vmem:[#allocation8 + $0x110] sm:$0xff]  ;;  %vm1317_vm3 = vsmask.f32 7440  ;;  %vm6825_vm4 = vmor %vm446_vm0, %vm447_vm1 }
  0x4b   : > { %335 = vst [vmem:[#allocation2 + $0x60] sm:$0xf] %v6612_v0  ;;  %6325 = vmatpush.bf16.msra.mxu1 %v6124_v8  ;;  %6326 = vmatpush.bf16.msra.mxu2 %v6124_v8  ;;  %v6105_v15 = vld [vmem:[#allocation2 + $0x84] sm:$0xff]  ;;  %vm6829_vm5 = vmor %vm1316_vm2, %vm1317_vm3 }
  0x4c   : > { %336 = vst [vmem:[#allocation2 + $0x70] sm:$0xf] %v6612_v0  ;;  %6327 = vmatpush.bf16.msra.mxu3 %v6124_v8  ;;  %982 = vmatpush.bf16.msra.mxu0 %v6124_v8  ;;  %v6109_v16 = vld [vmem:[#allocation2 + $0xc4] sm:$0xff] }
  0x4d   : > { %337 = vst [vmem:[#allocation2 + $0x80] sm:$0xf] %v6612_v0  ;;  %v6130_v55 = vld [vmem:[#allocation8 + $0x88] sm:$0xff]  ;;  %v6129_v60 = vld [vmem:[#allocation8 + $0x80] sm:$0xff] }
  0x4e   : > { %338 = vst [vmem:[#allocation2 + $0x90] sm:$0xf] %v6612_v0  ;;  %v6154_v56 = vld [vmem:[#allocation8 + $0xc8] sm:$0xff]  ;;  %v6153_v61 = vld [vmem:[#allocation8 + $0xc0] sm:$0xff] }
  0x4f   : > { %339 = vst [vmem:[#allocation2 + $0xa0] sm:$0xf] %v6612_v0  ;;  %6328 = vmatpush.bf16.msra.mxu1 %v6123_v9  ;;  %6329 = vmatpush.bf16.msra.mxu2 %v6123_v9  ;;  %v6114_v58 = vld [vmem:[#allocation8 + $0x8] sm:$0xff]  ;;  %v6113_v62 = vld [vmem:[#allocation8] sm:$0xff] }
  0x50   : > { %340 = vst [vmem:[#allocation2 + $0xb0] sm:$0xf] %v6612_v0  ;;  %6330 = vmatpush.bf16.msra.mxu3 %v6123_v9  ;;  %983 = vmatpush.bf16.msra.mxu0 %v6123_v9  ;;  %v6162_v59 = vld [vmem:[#allocation8 + $0x108] sm:$0xff]  ;;  %v6161_v63 = vld [vmem:[#allocation8 + $0x100] sm:$0xff]  ;;  %v6200_v9 = vld [vmem:[#allocation8 + $0x1b8] sm:$0xff] }
  0x51   : > { %341 = vst [vmem:[#allocation2 + $0xc0] sm:$0xf] %v6612_v0  ;;  %v1268_v4 = vld [vmem:[#allocation2 + $0x4] sm:$0xf]  ;;  %v1269_v5 = vld [vmem:[#allocation2 + $0x8] sm:$0xf] }
  0x52   : > { %342 = vst [vmem:[#allocation2 + $0xd0] sm:$0xf] %v6612_v0  ;;  %v399_v6 = vld [vmem:[#allocation2 + $0x4] sm:$0xf]  ;;  %v400_v7 = vld [vmem:[#allocation2 + $0x8] sm:$0xf] }
  0x53   : > { %343 = vst [vmem:[#allocation2 + $0xe0] sm:$0xf] %v6612_v0  ;;  %6331 = vmatpush.bf16.msra.mxu1 %v6122_v10  ;;  %6332 = vmatpush.bf16.msra.mxu2 %v6122_v10  ;;  %v1320_v8 = vshrl.u32 %v1268_v4, 16 }
  0x54   : > { %344 = vst [vmem:[#allocation2 + $0xf0] sm:$0xf] %v6612_v0  ;;  %6333 = vmatpush.bf16.msra.mxu3 %v6122_v10  ;;  %984 = vmatpush.bf16.msra.mxu0 %v6122_v10  ;;  %v1323_v10 = vshll.u32 %v1268_v4, 16 }
  0x55   : > { %345 = vst [vmem:[#allocation2 + $0x100] sm:$0xf] %v6612_v0 }
  0x56   : > { %348 = vst [vmem:[#allocation2 + $0x1c] sm:$0xf] %v6612_v0 }
  0x57   : > { %349 = vst [vmem:[#allocation2 + $0x2c] sm:$0xf] %v6612_v0  ;;  %6334 = vmatpush.bf16.msra.mxu1 %v6121_v11  ;;  %6335 = vmatpush.bf16.msra.mxu2 %v6121_v11 }
  0x58   : > { %350 = vst [vmem:[#allocation2 + $0x3c] sm:$0xf] %v6612_v0  ;;  %6336 = vmatpush.bf16.msra.mxu3 %v6121_v11  ;;  %985 = vmatpush.bf16.msra.mxu0 %v6121_v11  ;;  %v1329_v11 = vshll.u32 %v1269_v5, 16 }
  0x59   : > { %351 = vst [vmem:[#allocation2 + $0x4c] sm:$0xf] %v6612_v0 }
  0x5a   : > { %352 = vst [vmem:[#allocation2 + $0x5c] sm:$0xf] %v6612_v0  ;;  %1006 = vmatmul.bf16.vlgmr.msra.gmra.mxu1 %v6101_v14  ;;  %1026 = vmatmul.bf16.vlgmr.msra.gmra.mxu2 %v6105_v15  ;;  %v6176_v14 = vld [vmem:[#allocation8 + $0x178] sm:$0xff] }
  0x5b   : > { %353 = vst [vmem:[#allocation2 + $0x6c] sm:$0xf] %v6612_v0  ;;  %1832 = vmatpush.bf16.msrb.mxu2 %v6136_v12  ;;  %1046 = vmatmul.bf16.vlgmr.msra.gmra.mxu3 %v6109_v16  ;;  %v1333_v12 = vshrl.u32 %v1269_v5, 16  ;;  %v6216_v15 = vld [vmem:[#allocation8 + $0x238] sm:$0xff] }
  0x5c   : > { %354 = vst [vmem:[#allocation2 + $0x7c] sm:$0xf] %v6612_v0  ;;  %2482 = vmatpush.bf16.msrb.mxu3 %v6160_v13  ;;  %986 = vmatmul.bf16.vlgmr.msra.gmra.mxu0 %v6097_v17  ;;  %v6208_v13 = vld [vmem:[#allocation8 + $0x1f8] sm:$0xff] }
  0x5d   : > { %355 = vst [vmem:[#allocation2 + $0x8c] sm:$0xf] %v6612_v0  ;;  %1179 = vmatpush.bf16.msrb.mxu1 %v6120_v18  ;;  %2764 = vmatpush.bf16.msrb.mxu0 %v6168_v19  ;;  %v455_v19 = vshrl.u32 %v399_v6, 16 }
  0x5e   : > { %356 = vst [vmem:[#allocation2 + $0x9c] sm:$0xf] %v6612_v0 }
  0x5f   : > { %357 = vst [vmem:[#allocation2 + $0xac] sm:$0xf] %v6612_v0  ;;  %1833 = vmatpush.bf16.msrb.mxu2 %v6135_v20  ;;  %v464_v20 = vshrl.u32 %v400_v7, 16 }
  0x60   : > { %358 = vst [vmem:[#allocation2 + $0xbc] sm:$0xf] %v6612_v0  ;;  %2483 = vmatpush.bf16.msrb.mxu3 %v6159_v21  ;;  %v1322_v21 = vrot.slane %v1320_v8, 4 }
  0x61   : > { %359 = vst [vmem:[#allocation2 + $0xcc] sm:$0xf] %v6612_v0  ;;  %1180 = vmatpush.bf16.msrb.mxu1 %v6119_v22  ;;  %2765 = vmatpush.bf16.msrb.mxu0 %v6167_v23  ;;  %v1325_v22 = vrot.slane %v1323_v10, 5  ;;  %v6820_v23 = vrot.slane %v1329_v11, 5 }
  0x62   : > { %360 = vst [vmem:[#allocation2 + $0xdc] sm:$0xf] %v6612_v0 }
  0x63   : > { %361 = vst [vmem:[#allocation2 + $0xec] sm:$0xf] %v6612_v0  ;;  %1834 = vmatpush.bf16.msrb.mxu2 %v6134_v24  ;;  %v1335_v24 = vrot.slane %v1333_v12, 4 }
  0x64   : > { %362 = vst [vmem:[#allocation2 + $0xfc] sm:$0xf] %v6612_v0  ;;  %2484 = vmatpush.bf16.msrb.mxu3 %v6158_v25 }
  0x65   : > { %363 = vst [vmem:[#allocation2 + $0x10c] sm:$0xf] %v6612_v0  ;;  %1181 = vmatpush.bf16.msrb.mxu1 %v6118_v27  ;;  %2766 = vmatpush.bf16.msrb.mxu0 %v6166_v28 }
  0x66   : > { %329 = vst [vmem:[#allocation2] sm:$0xf] %v6612_v0 }
  0x67   : > { %346 = vst [vmem:[#allocation2 + $0x110] sm:$0xf] %v6612_v0  ;;  %1835 = vmatpush.bf16.msrb.mxu2 %v6133_v30  ;;  %v457_v30 = vrot.slane %v455_v19, 7 }
  0x68   : > { %347 = vst [vmem:[#allocation2 + $0xc] sm:$0xf] %v6612_v0  ;;  %2485 = vmatpush.bf16.msrb.mxu3 %v6157_v31  ;;  %v458_v31 = vshll.u32 %v399_v6, 16 }
  0x69   : > { %364 = vst [vmem:[#allocation2 + $0x11c] sm:$0xf] %v6612_v0  ;;  %1182 = vmatpush.bf16.msrb.mxu1 %v6117_v34  ;;  %2767 = vmatpush.bf16.msrb.mxu0 %v6165_v36  ;;  %v1326_v34 = vor.u32 %v1325_v22, %v1322_v21 }
  0x6a   : > { %374 = vst [vmem:[#allocation2 + $0x54] sm:$0xff] %v296_v26   ;;  %v1953_v26 = vld [vmem:[#allocation2 + $0x10] sm:$0x8] }
  0x6b   : > { %382 = vst [vmem:[#allocation2 + $0x94] sm:$0xff] %v304_v29   ;;  %1836 = vmatpush.bf16.msrb.mxu2 %v6132_v38 }
  0x6c   : > { %390 = vst [vmem:[#allocation2 + $0xd4] sm:$0xff] %v312_v32   ;;  %2486 = vmatpush.bf16.msrb.mxu3 %v6156_v39  ;;  %v466_v32 = vrot.slane %v464_v20, 7 }
  0x6d   : > { %366 = vst [vmem:[#allocation2 + $0x14] sm:$0xff] %v288_v33   ;;  %2768 = vmatpush.bf16.msrb.mxu0 %v6164_v42  ;;  %1183 = vmatpush.bf16.msrb.mxu1 %v6116_v44  ;;  %v398_v18 = vld [vmem:[#allocation2] sm:$0x8]  ;;  %v467_v33 = vshll.u32 %v400_v7, 16 }
  0x6e   : > { %376 = vst [vmem:[#allocation2 + $0x64] sm:$0xff] %v298_v35   ;;  %v450_v29 = vshrl.u32 %v398_v18, 16  ;;  %v1336_v35 = vor.u32 %v1335_v24, %v6820_v23 }
  0x6f   : > { %384 = vst [vmem:[#allocation2 + $0xa4] sm:$0xff] %v306_v37   ;;  %1837 = vmatpush.bf16.msrb.mxu2 %v6131_v47  ;;  %v1270_v25 = vld [vmem:[#allocation2 + $0xc] sm:$0x1]  ;;  %v2002_v37 = vshrl.u32 %v1953_v26, 16  ;;  %v462_v47 = vrot.slane %v457_v30, 4 }
  0x70   : > { %392 = vst [vmem:[#allocation2 + $0xe4] sm:$0xff] %v314_v40   ;;  %2487 = vmatpush.bf16.msrb.mxu3 %v6155_v50  ;;  %v1339_v36 = vshll.u32 %v1270_v25, 16 }
  0x71   : > { %v6102_v46 = vld [vmem:[#allocation2 + $0x54] sm:$0xff]  ;;  %368 = vst [vmem:[#allocation2 + $0x24] sm:$0xff] %v290_v41   ;;  %1184 = vmatpush.bf16.msrb.mxu1 %v6115_v54  ;;  %2769 = vmatpush.bf16.msrb.mxu0 %v6163_v57  ;;  %v1337_v54 = vrot.slane %v1336_v35, 4  ;;  %v5737_v57 = vrot.slane %v2002_v37, 11 }
  0x72   : > { %v6106_v49 = vld [vmem:[#allocation2 + $0x94] sm:$0xff]  ;;  %378 = vst [vmem:[#allocation2 + $0x74] sm:$0xff] %v300_v43   ;;  %1011 = vmatmul.bf16.gmra.mxu1 %v6102_v46  ;;  %v460_v46 = vor.u32 %v458_v31, %v457_v30 }
  0x73   : > { %v6110_v52 = vld [vmem:[#allocation2 + $0xd4] sm:$0xff]  ;;  %386 = vst [vmem:[#allocation2 + $0xb4] sm:$0xff] %v308_v45   ;;  %1031 = vmatmul.bf16.gmra.mxu2 %v6106_v49  ;;  %v5561_v45 = vrot.slane %v450_v29, 11  ;;  %v1273_v29 = vld [vmem:[#allocation2 + $0x1c] sm:$0x1] }
  0x74   : > { %v6098_v53 = vld [vmem:[#allocation2 + $0x14] sm:$0xff]  ;;  %394 = vst [vmem:[#allocation2 + $0xf4] sm:$0xff] %v316_v48   ;;  %1051 = vmatmul.bf16.gmra.mxu3 %v6110_v52  ;;  %1838 = vmatpush.bf16.msrb.mxu2 %v6130_v55  ;;  %v469_v52 = vor.u32 %v467_v33, %v466_v32  ;;  %v1341_v55 = vrot.slane %v1339_v36, 5 }
  0x75   : > { %370 = vst [vmem:[#allocation2 + $0x34] sm:$0xff] %v292_v51   ;;  %991 = vmatmul.bf16.gmra.mxu0 %v6098_v53  ;;  %2488 = vmatpush.bf16.msrb.mxu3 %v6154_v56  ;;  %v6103_v0 = vld [vmem:[#allocation2 + $0x64] sm:$0xff]  ;;  %v1954_v16 = vld [vmem:[#allocation2 + $0x14] sm:$0xf]  ;;  %v1955_v17 = vld [vmem:[#allocation2 + $0x18] sm:$0xf] }
  0x76   : > { %1185 = vmatpush.bf16.msrb.mxu1 %v6114_v58  ;;  %2770 = vmatpush.bf16.msrb.mxu0 %v6162_v59  ;;  %v6107_v1 = vld [vmem:[#allocation2 + $0xa4] sm:$0xff]  ;;  %v2007_v27 = vshrl.u32 %v1954_v16, 16  ;;  %v2016_v28 = vshrl.u32 %v1955_v17, 16  ;;  %v2010_v40 = vshll.u32 %v1954_v16, 16  ;;  %v2019_v42 = vshll.u32 %v1955_v17, 16 }
  0x77   : > { %v6111_v2 = vld [vmem:[#allocation2 + $0xe4] sm:$0xff]  ;;  %v402_v48 = vld [vmem:[#allocation2 + $0x14] sm:$0xf]  ;;  %v403_v49 = vld [vmem:[#allocation2 + $0x18] sm:$0xf]  ;;  %v1327_v53 = vrot.slane %v1326_v34, 4  ;;  %v1342_v4 = vsel %vm6829_vm5, %v1337_v54, %v1341_v55 }
  0x78   : > { %1839 = vmatpush.bf16.msrb.mxu2 %v6129_v60  ;;  %v6099_v3 = vld [vmem:[#allocation2 + $0x24] sm:$0xff]  ;;  %v2009_v39 = vrot.slane %v2007_v27, 7  ;;  %v2018_v41 = vrot.slane %v2016_v28, 7  ;;  %v1272_v5 = vld [vmem:[#allocation2 + $0x18] sm:$0xf]  ;;  %v489_v12 = vshll.u32 %v403_v49, 16  ;;  %v1721_v21 = vunpack.c.l.b16 %v1342_v4 }
  0x79   : > { %2489 = vmatpush.bf16.msrb.mxu3 %v6153_v61  ;;  %v6104_v38 = vld [vmem:[#allocation2 + $0x74] sm:$0xff]  ;;  %v401_v61 = vld [vmem:[#allocation2 + $0x10] sm:$0x8]  ;;  %v1357_v16 = vshrl.u32 %v1272_v5, 16  ;;  %v1957_v20 = vld [vmem:[#allocation2 + $0x24] sm:$0xf] }
  0x7a   : > { %1186 = vmatpush.bf16.msrb.mxu1 %v6113_v62  ;;  %2771 = vmatpush.bf16.msrb.mxu0 %v6161_v63  ;;  %v6108_v43 = vld [vmem:[#allocation2 + $0xb4] sm:$0xff]  ;;  %v2012_v58 = vor.u32 %v2010_v40, %v2009_v39  ;;  %v2014_v59 = vrot.slane %v2009_v39, 4  ;;  %v2021_v60 = vor.u32 %v2019_v42, %v2018_v41  ;;  %v477_v62 = vshrl.u32 %v402_v48, 16  ;;  %v1958_v25 = vld [vmem:[#allocation2 + $0x28] sm:$0xf] }
  0x7b   : > { %v6112_v44 = vld [vmem:[#allocation2 + $0xf4] sm:$0xff]  ;;  %v486_v63 = vshrl.u32 %v403_v49, 16  ;;  %v472_v8 = vshrl.u32 %v401_v61, 16  ;;  %v1359_v33 = vrot.slane %v1357_v16, 4  ;;  %v1956_v34 = vld [vmem:[#allocation2 + $0x20] sm:$0x8] }
  0x7c   : > { %4097 = vmatpush.bf16.msra.mxu2 %v6200_v9  ;;  %v6100_v50 = vld [vmem:[#allocation2 + $0x34] sm:$0xff]  ;;  %v2013_v6 = vsel %vm6825_vm4, %v5737_v57, %v2012_v58  ;;  %v2022_v7 = vsel %vm6825_vm4, %v2014_v59, %v2021_v60  ;;  %v480_v9 = vshll.u32 %v402_v48, 16  ;;  %v479_v10 = vrot.slane %v477_v62, 7  ;;  %v1275_v57 = vld [vmem:[#allocation2 + $0x28] sm:$0xf] }
  0x7d   : > { %4379 = vmatpush.bf16.msra.mxu3 %v6208_v13  ;;  %v488_v11 = vrot.slane %v486_v63, 7  ;;  %v2370_v22 = vunpack.c.l.b16 %v2013_v6  ;;  %v5562_v24 = vrot.slane %v472_v8, 11  ;;  %v2029_v35 = vshrl.u32 %v1957_v20, 16  ;;  %v6137_v48 = vld [vmem:[#allocation2 + $0x14] sm:$0xff]  ;;  %v405_v62 = vld [vmem:[#allocation2 + $0x24] sm:$0xf] }
  0x7e   : > { %3446 = vmatpush.bf16.msra.mxu1 %v6176_v14  ;;  %5061 = vmatpush.bf16.msra.mxu0 %v6216_v15  ;;  %v1353_v15 = vshll.u32 %v1272_v5, 16  ;;  %v482_v26 = vor.u32 %v480_v9, %v479_v10  ;;  %v484_v27 = vrot.slane %v479_v10, 4  ;;  %v2038_v36 = vshrl.u32 %v1958_v25, 16  ;;  %v6199_v63 = vld [vmem:[#allocation8 + $0x1b0] sm:$0xff]  ;;  %v406_v6 = vld [vmem:[#allocation2 + $0x28] sm:$0xf] }
  0x7f   : > { %v491_v28 = vor.u32 %v489_v12, %v488_v11  ;;  %v1363_v42 = vshll.u32 %v1273_v29, 16  ;;  %v6175_v4 = vld [vmem:[#allocation8 + $0x170] sm:$0xff]  ;;  %v1377_v8 = vshll.u32 %v1275_v57, 16  ;;  %v1381_v9 = vshrl.u32 %v1275_v57, 16 }
  0x80   : > { %v6846_v32 = vrot.slane %v1353_v15, 5  ;;  %v483_v40 = vsel %vm6825_vm4, %v5562_v24, %v482_v26  ;;  %v2040_v49 = vrot.slane %v2038_v36, 7  ;;  %v6215_v5 = vld [vmem:[#allocation8 + $0x230] sm:$0xff]  ;;  %4098 = vmatpush.bf16.msra.mxu2 %v6199_v63  ;;  %v404_v15 = vld [vmem:[#allocation2 + $0x20] sm:$0x8] }
  0x81   : > { %v492_v41 = vsel %vm6825_vm4, %v484_v27, %v491_v28  ;;  %v1365_v55 = vrot.slane %v1363_v42, 5  ;;  %v1960_v10 = vld [vmem:[#allocation2 + $0x34] sm:$0xf]  ;;  %v1961_v16 = vld [vmem:[#allocation2 + $0x38] sm:$0xf]  ;;  %v1383_v24 = vrot.slane %v1381_v9, 4 }
  0x82   : > { %1016 = vmatmul.bf16.gmra.mxu1 %v6103_v0  ;;  %v1271_v0 = vld [vmem:[#allocation2 + $0x14] sm:$0xf]  ;;  %v1070_v54 = vunpack.c.l.b16 %v492_v41  ;;  %5062 = vmatpush.bf16.msra.mxu0 %v6215_v5  ;;  %v2051_v26 = vshrl.u32 %v1960_v10, 16  ;;  %v2054_v42 = vshll.u32 %v1960_v10, 16 }
  0x83   : > { %1036 = vmatmul.bf16.gmra.mxu2 %v6107_v1  ;;  %v461_v1 = vsel %vm6825_vm4, %v5561_v45, %v460_v46  ;;  %v1344_v13 = vshrl.u32 %v1271_v0, 16  ;;  %v1347_v14 = vshll.u32 %v1271_v0, 16  ;;  %v1360_v45 = vor.u32 %v1359_v33, %v6846_v32  ;;  %3447 = vmatpush.bf16.msra.mxu1 %v6175_v4  ;;  %v1277_v63 = vld [vmem:[#allocation2 + $0x34] sm:$0xf] }
  0x84   : > { %1056 = vmatmul.bf16.gmra.mxu3 %v6111_v2  ;;  %v470_v2 = vsel %vm6825_vm4, %v462_v47, %v469_v52  ;;  %v1067_v17 = vunpack.c.l.b16 %v461_v1  ;;  %v2031_v46 = vrot.slane %v2029_v35, 7  ;;  %v2032_v47 = vshll.u32 %v1957_v20, 16  ;;  %v1274_v52 = vld [vmem:[#allocation2 + $0x24] sm:$0xf]  ;;  %v1276_v20 = vld [vmem:[#allocation2 + $0x2c] sm:$0x1] }
  0x85   : > { %996 = vmatmul.bf16.gmra.mxu0 %v6099_v3  ;;  %v1332_v3 = vsel %vm6829_vm5, %v1327_v53, %v6820_v23  ;;  %v1068_v18 = vunpack.c.l.b16 %v470_v2  ;;  %v2371_v23 = vunpack.c.l.b16 %v2022_v7  ;;  %v1346_v30 = vrot.slane %v1344_v13, 4 }
  0x86   : > { %v1720_v19 = vunpack.c.l.b16 %v1332_v3  ;;  %v1349_v31 = vrot.slane %v1347_v14, 5  ;;  %v1069_v53 = vunpack.c.l.b16 %v483_v40  ;;  %v1361_v59 = vrot.slane %v1360_v45, 4  ;;  %v6207_v3 = vld [vmem:[#allocation8 + $0x1f0] sm:$0xff] }
  0x87   : > { %v1099_v37 = vpack.c.b16 %v1068_v18, %v1067_v17  ;;  %v2402_v39 = vpack.c.b16 %v2371_v23, %v2370_v22  ;;  %v2034_v61 = vor.u32 %v2032_v47, %v2031_v46  ;;  %v2036_v0 = vrot.slane %v2031_v46, 4  ;;  %4380 = vmatpush.bf16.msra.mxu3 %v6207_v3 }
  0x88   : > { %v1368_v2 = vshrl.u32 %v1274_v52, 16  ;;  %v1371_v7 = vshll.u32 %v1274_v52, 16  ;;  %v1100_v11 = vpack.c.b16 %v1070_v54, %v1069_v53  ;;  %v1366_v13 = vsel %vm6829_vm5, %v1361_v59, %v1365_v55 }
  0x89   : > { %v499_v18 = vshrl.u32 %v405_v62, 16  ;;  %v1379_v23 = vrot.slane %v1377_v8, 5  ;;  %v1723_v28 = vunpack.c.l.b16 %v1366_v13  ;;  %v502_v33 = vshll.u32 %v405_v62, 16  ;;  %v409_v62 = vld [vmem:[#allocation2 + $0x38] sm:$0xf] }
  0x8a   : > { %v1373_v22 = vrot.slane %v1371_v7, 5  ;;  %v2053_v41 = vrot.slane %v2051_v26, 7  ;;  %v2063_v45 = vshll.u32 %v1961_v16, 16  ;;  %v407_v8 = vld [vmem:[#allocation2 + $0x30] sm:$0x8]  ;;  %v530_v9 = vshrl.u32 %v409_v62, 16 }
  0x8b   : > { %v501_v35 = vrot.slane %v499_v18, 7  ;;  %v1384_v40 = vor.u32 %v1383_v24, %v1379_v23  ;;  %v1392_v10 = vshrl.u32 %v1277_v63, 16  ;;  %v1964_v24 = vld [vmem:[#allocation2 + $0x48] sm:$0xf]  ;;  %v533_v26 = vshll.u32 %v409_v62, 16 }
  0x8c   : > { %v2058_v59 = vrot.slane %v2053_v41, 4 }
  0x8d   : > { %v1385_v55 = vrot.slane %v1384_v40, 4 }
  0x92   : > { %1021 = vmatmul.bf16.gmra.mxu1 %v6104_v38  ;;  %v1752_v38 = vpack.c.b16 %v1721_v21, %v1720_v19  ;;  %v508_v19 = vshrl.u32 %v406_v6, 16  ;;  %v1370_v21 = vrot.slane %v1368_v2, 4  ;;  %v1278_v2 = vld [vmem:[#allocation2 + $0x38] sm:$0xf] }
  0x93   : > { %1041 = vmatmul.bf16.gmra.mxu2 %v6108_v43  ;;  %v2024_v43 = vshrl.u32 %v1956_v34, 16  ;;  %v511_v34 = vshll.u32 %v406_v6, 16  ;;  %v1401_v13 = vshll.u32 %v1278_v2, 16 }
  0x94   : > { %1061 = vmatmul.bf16.gmra.mxu3 %v6112_v44  ;;  %v1350_v44 = vor.u32 %v1349_v31, %v1346_v30  ;;  %v2060_v30 = vshrl.u32 %v1961_v16, 16  ;;  %v510_v36 = vrot.slane %v508_v19, 7  ;;  %v1963_v19 = vld [vmem:[#allocation2 + $0x44] sm:$0xf] }
  0x95   : > { %1001 = vmatmul.bf16.gmra.mxu0 %v6100_v50  ;;  %v2041_v50 = vshll.u32 %v1958_v25, 16  ;;  %v5738_v60 = vrot.slane %v2024_v43, 11  ;;  %v1959_v25 = vld [vmem:[#allocation2 + $0x30] sm:$0x8] }
  0x96   : > { %v1351_v58 = vrot.slane %v1350_v44, 4  ;;  %v2062_v44 = vrot.slane %v2060_v30, 7  ;;  %v513_v52 = vor.u32 %v511_v34, %v510_v36  ;;  %v6874_v30 = vrot.slane %v1401_v13, 5  ;;  %v1962_v34 = vld [vmem:[#allocation2 + $0x40] sm:$0x8] }
  0x97   : > { %v2043_v1 = vor.u32 %v2041_v50, %v2040_v49  ;;  %v2035_v14 = vsel %vm6825_vm4, %v5738_v60, %v2034_v61  ;;  %v504_v49 = vor.u32 %v502_v33, %v501_v35  ;;  %v506_v50 = vrot.slane %v501_v35, 4  ;;  %v408_v61 = vld [vmem:[#allocation2 + $0x34] sm:$0xf] }
  0x98   : > { %v1356_v12 = vsel %vm6829_vm5, %v1351_v58, %v6846_v32  ;;  %v2372_v29 = vunpack.c.l.b16 %v2035_v14  ;;  %v494_v32 = vshrl.u32 %v404_v15, 16  ;;  %v2056_v58 = vor.u32 %v2054_v42, %v2053_v41 }
  0x99   : > { %v2044_v17 = vsel %vm6825_vm4, %v2036_v0, %v2043_v1  ;;  %v1722_v27 = vunpack.c.l.b16 %v1356_v12  ;;  %v2065_v60 = vor.u32 %v2063_v45, %v2062_v44  ;;  %v514_v1 = vsel %vm6825_vm4, %v506_v50, %v513_v52  ;;  %v1280_v52 = vld [vmem:[#allocation2 + $0x44] sm:$0xf] }
  0x9a   : > { %v2373_v31 = vunpack.c.l.b16 %v2044_v17  ;;  %v5563_v47 = vrot.slane %v494_v32, 11  ;;  %v521_v6 = vshrl.u32 %v408_v61, 16  ;;  %v1405_v14 = vshrl.u32 %v1278_v2, 16 }
  0x9b   : > { %v1753_v43 = vpack.c.b16 %v1723_v28, %v1722_v27  ;;  %v2066_v7 = vsel %vm6825_vm4, %v2058_v59, %v2065_v60  ;;  %v1072_v15 = vunpack.c.l.b16 %v514_v1  ;;  %v1394_v27 = vrot.slane %v1392_v10, 4  ;;  %v411_v1 = vld [vmem:[#allocation2 + $0x44] sm:$0xf] }
  0x9c   : > { %v2403_v46 = vpack.c.b16 %v2373_v31, %v2372_v29  ;;  %v505_v0 = vsel %vm6825_vm4, %v5563_v47, %v504_v49  ;;  %v1279_v29 = vld [vmem:[#allocation2 + $0x3c] sm:$0x1]  ;;  %v1407_v31 = vrot.slane %v1405_v14, 4  ;;  %v2073_v32 = vshrl.u32 %v1963_v19, 16 }
  0x9d   : > { %v1071_v12 = vunpack.c.l.b16 %v505_v0  ;;  %v2082_v35 = vshrl.u32 %v1964_v24, 16  ;;  %v2068_v45 = vshrl.u32 %v1962_v34, 16  ;;  %v2076_v47 = vshll.u32 %v1963_v19, 16  ;;  %v410_v19 = vld [vmem:[#allocation2 + $0x40] sm:$0x8] }
  0x9e   : > { %v1408_v44 = vor.u32 %v1407_v31, %v6874_v30  ;;  %v2085_v50 = vshll.u32 %v1964_v24, 16  ;;  %v1416_v2 = vshrl.u32 %v1280_v52, 16  ;;  %v1282_v24 = vld [vmem:[#allocation2 + $0x4c] sm:$0x1]  ;;  %v1965_v31 = vld [vmem:[#allocation2 + $0x50] sm:$0x8] }
  0x9f   : > { %v1101_v33 = vpack.c.b16 %v1072_v15, %v1071_v12  ;;  %v2084_v49 = vrot.slane %v2082_v35, 7  ;;  %v5740_v60 = vrot.slane %v2068_v45, 11  ;;  %v1966_v12 = vld [vmem:[#allocation2 + $0x54] sm:$0xf]  ;;  %v538_v34 = vshrl.u32 %v410_v19, 16 }
  0xa0   : > { %v1409_v59 = vrot.slane %v1408_v44, 4  ;;  %v2098_v44 = vshll.u32 %v1966_v12, 16 }
  0xa1   : > { %v2087_v0 = vor.u32 %v2085_v50, %v2084_v49  ;;  %v5565_v49 = vrot.slane %v538_v34, 11  ;;  %v1283_v50 = vld [vmem:[#allocation2 + $0x54] sm:$0xf] }
  0xa2   : > { %1187 = vmatmul.bf16.vlgmr.msrb.gmra.mxu1 %v1099_v37  ;;  %v1387_v37 = vshll.u32 %v1276_v20, 16  ;;  %v2375_v20 = vunpack.c.l.b16 %v2066_v7 }
  0xa3   : > { %1840 = vmatmul.bf16.vlgmr.msrb.gmra.mxu2 %v1752_v38  ;;  %v2046_v38 = vshrl.u32 %v1959_v25, 16  ;;  %v532_v25 = vrot.slane %v530_v9, 7 }
  0xa4   : > { %2490 = vmatmul.bf16.vlgmr.msrb.gmra.mxu3 %v2402_v39  ;;  %v1374_v39 = vor.u32 %v1373_v22, %v1370_v21  ;;  %v1389_v53 = vrot.slane %v1387_v37, 5  ;;  %v516_v21 = vshrl.u32 %v407_v8, 16  ;;  %v523_v22 = vrot.slane %v521_v6, 7  ;;  %v412_v8 = vld [vmem:[#allocation2 + $0x48] sm:$0xf] }
  0xa5   : > { %2772 = vmatmul.bf16.vlgmr.msrb.gmra.mxu0 %v6137_v48  ;;  %v6138_v48 = vld [vmem:[#allocation2 + $0x24] sm:$0xff]  ;;  %v5739_v57 = vrot.slane %v2046_v38, 11  ;;  %v535_v41 = vor.u32 %v533_v26, %v532_v25 }
  0xa6   : > { %v1375_v54 = vrot.slane %v1374_v39, 4  ;;  %v1390_v4 = vsel %vm6829_vm5, %v1385_v55, %v1389_v53  ;;  %v5564_v38 = vrot.slane %v516_v21, 11  ;;  %v528_v40 = vrot.slane %v523_v22, 4 }
  0xa7   : > { %v2057_v5 = vsel %vm6825_vm4, %v5739_v57, %v2056_v58  ;;  %v1725_v17 = vunpack.c.l.b16 %v1390_v4  ;;  %v1281_v58 = vld [vmem:[#allocation2 + $0x48] sm:$0xf]  ;;  %v1418_v21 = vrot.slane %v1416_v2, 4  ;;  %v1443_v2 = vshll.u32 %v1283_v50, 16 }
  0xa8   : > { %v1380_v3 = vsel %vm6829_vm5, %v1375_v54, %v1379_v23  ;;  %v2374_v18 = vunpack.c.l.b16 %v2057_v5  ;;  %v524_v23 = vshll.u32 %v408_v61, 16  ;;  %v536_v54 = vsel %vm6825_vm4, %v528_v40, %v535_v41  ;;  %v6206_v4 = vld [vmem:[#allocation8 + $0x1e8] sm:$0xff] }
  0xa9   : > { %v1724_v16 = vunpack.c.l.b16 %v1380_v3  ;;  %v1419_v3 = vshll.u32 %v1280_v52, 16  ;;  %v6174_v5 = vld [vmem:[#allocation8 + $0x168] sm:$0xff]  ;;  %v1074_v7 = vunpack.c.l.b16 %v536_v54  ;;  %v1425_v9 = vshll.u32 %v1281_v58, 16  ;;  %4381 = vmatpush.bf16.msra.mxu3 %v6206_v4  ;;  %v415_v4 = vld [vmem:[#allocation2 + $0x58] sm:$0xf] }
  0xaa   : > { %v2404_v37 = vpack.c.b16 %v2375_v20, %v2374_v18  ;;  %v526_v39 = vor.u32 %v524_v23, %v523_v22  ;;  %v1429_v10 = vshrl.u32 %v1281_v58, 16  ;;  %3448 = vmatpush.bf16.msra.mxu1 %v6174_v5  ;;  %v552_v20 = vshrl.u32 %v412_v8, 16  ;;  %v6140_v52 = vld [vmem:[#allocation2 + $0x44] sm:$0xff]  ;;  %v1284_v58 = vld [vmem:[#allocation2 + $0x58] sm:$0xf] }
  0xab   : > { %v1754_v36 = vpack.c.b16 %v1725_v17, %v1724_v16  ;;  %v543_v16 = vshrl.u32 %v411_v1, 16  ;;  %v1967_v17 = vld [vmem:[#allocation2 + $0x58] sm:$0xf]  ;;  %v1421_v22 = vrot.slane %v1419_v3, 5  ;;  %v6890_v25 = vrot.slane %v1425_v9, 5 }
  0xac   : > { %v527_v53 = vsel %vm6825_vm4, %v5564_v38, %v526_v39  ;;  %v1431_v26 = vrot.slane %v1429_v10, 4  ;;  %v555_v38 = vshll.u32 %v412_v8, 16  ;;  %v1435_v40 = vshll.u32 %v1282_v24, 16  ;;  %v414_v3 = vld [vmem:[#allocation2 + $0x54] sm:$0xf] }
  0xad   : > { %v1073_v6 = vunpack.c.l.b16 %v527_v53  ;;  %v545_v35 = vrot.slane %v543_v16, 7  ;;  %v1422_v39 = vor.u32 %v1421_v22, %v1418_v21  ;;  %v1449_v5 = vshll.u32 %v1284_v58, 16 }
  0xae   : > { %v1432_v41 = vor.u32 %v1431_v26, %v6890_v25 }
  0xaf   : > { %v1102_v23 = vpack.c.b16 %v1074_v7, %v1073_v6  ;;  %v550_v54 = vrot.slane %v545_v35, 4  ;;  %v1453_v6 = vshrl.u32 %v1284_v58, 16 }
  0xb1   : > { %v1455_v19 = vrot.slane %v1453_v6, 4  ;;  %v6197_v6 = vld [vmem:[#allocation8 + $0x1a0] sm:$0xff] }
  0xb2   : > { %1192 = vmatmul.bf16.gmra.mxu1 %v1100_v11  ;;  %v1395_v11 = vshll.u32 %v1277_v63, 16  ;;  %v6198_v63 = vld [vmem:[#allocation8 + $0x1a8] sm:$0xff] }
  0xb3   : > { %1845 = vmatmul.bf16.gmra.mxu2 %v1753_v43  ;;  %v1411_v43 = vshll.u32 %v1279_v29, 16 }
  0xb4   : > { %2495 = vmatmul.bf16.gmra.mxu3 %v2403_v46  ;;  %v1397_v28 = vrot.slane %v1395_v11, 5  ;;  %v2075_v46 = vrot.slane %v2073_v32, 7  ;;  %4099 = vmatpush.bf16.msra.mxu2 %v6198_v63  ;;  %v6214_v11 = vld [vmem:[#allocation8 + $0x228] sm:$0xff]  ;;  %v2104_v32 = vshrl.u32 %v1967_v17, 16 }
  0xb5   : > { %2777 = vmatmul.bf16.gmra.mxu0 %v6138_v48  ;;  %v6139_v48 = vld [vmem:[#allocation2 + $0x34] sm:$0xff]  ;;  %v1413_v57 = vrot.slane %v1411_v43, 5 }
  0xb6   : > { %v1398_v42 = vor.u32 %v1397_v28, %v1394_v27  ;;  %v2078_v61 = vor.u32 %v2076_v47, %v2075_v46  ;;  %v2080_v62 = vrot.slane %v2075_v46, 4  ;;  %5063 = vmatpush.bf16.msra.mxu0 %v6214_v11  ;;  %v2095_v27 = vshrl.u32 %v1966_v12, 16 }
  0xb7   : > { %v1414_v14 = vsel %vm6829_vm5, %v1409_v59, %v1413_v57  ;;  %v2106_v46 = vrot.slane %v2104_v32, 7  ;;  %v2107_v47 = vshll.u32 %v1967_v17, 16  ;;  %v1423_v57 = vrot.slane %v1422_v39, 4 }
  0xb8   : > { %v1399_v55 = vrot.slane %v1398_v42, 4  ;;  %v2079_v15 = vsel %vm6825_vm4, %v5740_v60, %v2078_v61  ;;  %v2088_v18 = vsel %vm6825_vm4, %v2080_v62, %v2087_v0  ;;  %v1727_v29 = vunpack.c.l.b16 %v1414_v14  ;;  %4100 = vmatpush.bf16.msra.mxu2 %v6197_v6 }
  0xb9   : > { %v2090_v42 = vshrl.u32 %v1965_v31, 16  ;;  %v2097_v43 = vrot.slane %v2095_v27, 7  ;;  %v1433_v59 = vrot.slane %v1432_v41, 4  ;;  %v1437_v60 = vrot.slane %v1435_v40, 5 }
  0xba   : > { %v1404_v13 = vsel %vm6829_vm5, %v1399_v55, %v6874_v30  ;;  %v2376_v30 = vunpack.c.l.b16 %v2079_v15  ;;  %v2109_v0 = vor.u32 %v2107_v47, %v2106_v46  ;;  %v1428_v9 = vsel %vm6829_vm5, %v1423_v57, %v6890_v25 }
  0xbb   : > { %v1726_v28 = vunpack.c.l.b16 %v1404_v13  ;;  %v5741_v61 = vrot.slane %v2090_v42, 11  ;;  %v2100_v62 = vor.u32 %v2098_v44, %v2097_v43  ;;  %v2102_v63 = vrot.slane %v2097_v43, 4  ;;  %v413_v13 = vld [vmem:[#allocation2 + $0x50] sm:$0x8] }
  0xbc   : > { %v1438_v10 = vsel %vm6829_vm5, %v1433_v59, %v1437_v60  ;;  %v565_v14 = vshrl.u32 %v414_v3, 16  ;;  %v574_v15 = vshrl.u32 %v415_v4, 16  ;;  %v1445_v17 = vrot.slane %v1443_v2, 5  ;;  %v1286_v60 = vld [vmem:[#allocation2 + $0x64] sm:$0xf] }
  0xbd   : > { %v1755_v45 = vpack.c.b16 %v1727_v29, %v1726_v28  ;;  %v2101_v11 = vsel %vm6825_vm4, %v5741_v61, %v2100_v62  ;;  %v2110_v12 = vsel %vm6825_vm4, %v2102_v63, %v2109_v0  ;;  %v1728_v22 = vunpack.c.l.b16 %v1428_v9  ;;  %v1969_v28 = vld [vmem:[#allocation2 + $0x64] sm:$0xf]  ;;  %v1970_v29 = vld [vmem:[#allocation2 + $0x68] sm:$0xf] }
  0xbe   : > { %v1729_v24 = vunpack.c.l.b16 %v1438_v10  ;;  %v2378_v25 = vunpack.c.l.b16 %v2101_v11  ;;  %v2379_v26 = vunpack.c.l.b16 %v2110_v12  ;;  %v560_v27 = vshrl.u32 %v413_v13, 16  ;;  %v417_v63 = vld [vmem:[#allocation2 + $0x64] sm:$0xf]  ;;  %v418_v13 = vld [vmem:[#allocation2 + $0x68] sm:$0xf] }
  0xbf   : > { %v568_v31 = vshll.u32 %v414_v3, 16  ;;  %v576_v32 = vrot.slane %v574_v15, 7  ;;  %v2117_v39 = vshrl.u32 %v1969_v28, 16  ;;  %v2126_v40 = vshrl.u32 %v1970_v29, 16  ;;  %v6205_v12 = vld [vmem:[#allocation8 + $0x1e0] sm:$0xff] }
  0xc0   : > { %v1756_v43 = vpack.c.b16 %v1729_v24, %v1728_v22  ;;  %v2406_v44 = vpack.c.b16 %v2379_v26, %v2378_v25  ;;  %v2120_v57 = vshll.u32 %v1969_v28, 16  ;;  %v2129_v59 = vshll.u32 %v1970_v29, 16  ;;  %4382 = vmatpush.bf16.msra.mxu3 %v6205_v12  ;;  %v1972_v25 = vld [vmem:[#allocation2 + $0x74] sm:$0xf]  ;;  %v1290_v12 = vld [vmem:[#allocation2 + $0x78] sm:$0xf] }
  0xc1   : > { %v2128_v58 = vrot.slane %v2126_v40, 7  ;;  %v1464_v11 = vshrl.u32 %v1286_v60, 16  ;;  %v1467_v15 = vshll.u32 %v1286_v60, 16  ;;  %v596_v28 = vshrl.u32 %v418_v13, 16 }
  0xc2   : > { %1197 = vmatmul.bf16.gmra.mxu1 %v1101_v33  ;;  %v2377_v33 = vunpack.c.l.b16 %v2088_v18  ;;  %v6906_v18 = vrot.slane %v1449_v5, 5  ;;  %v1287_v5 = vld [vmem:[#allocation2 + $0x68] sm:$0xf]  ;;  %v2139_v40 = vshrl.u32 %v1972_v25, 16 }
  0xc3   : > { %1850 = vmatmul.bf16.gmra.mxu2 %v1754_v36  ;;  %v546_v36 = vshll.u32 %v411_v1, 16  ;;  %v1440_v1 = vshrl.u32 %v1283_v50, 16  ;;  %v2131_v10 = vor.u32 %v2129_v59, %v2128_v58  ;;  %v1466_v29 = vrot.slane %v1464_v11, 4 }
  0xc4   : > { %2500 = vmatmul.bf16.gmra.mxu3 %v2404_v37  ;;  %v554_v37 = vrot.slane %v552_v20, 7 }
  0xc5   : > { %2782 = vmatmul.bf16.gmra.mxu0 %v6139_v48  ;;  %v2405_v48 = vpack.c.b16 %v2377_v33, %v2376_v30  ;;  %v548_v53 = vor.u32 %v546_v36, %v545_v35  ;;  %v1442_v16 = vrot.slane %v1440_v1, 4  ;;  %v567_v30 = vrot.slane %v565_v14, 7 }
  0xc6   : > { %v557_v55 = vor.u32 %v555_v38, %v554_v37  ;;  %v577_v33 = vshll.u32 %v415_v4, 16  ;;  %v1456_v35 = vor.u32 %v1455_v19, %v6906_v18  ;;  %v1968_v38 = vld [vmem:[#allocation2 + $0x60] sm:$0x8]  ;;  %v587_v14 = vshrl.u32 %v417_v63, 16 }
  0xc7   : > { %v549_v7 = vsel %vm6825_vm4, %v5565_v49, %v548_v53  ;;  %v1446_v34 = vor.u32 %v1445_v17, %v1442_v16  ;;  %v570_v46 = vor.u32 %v568_v31, %v567_v30  ;;  %v572_v47 = vrot.slane %v567_v30, 4  ;;  %v416_v16 = vld [vmem:[#allocation2 + $0x60] sm:$0x8]  ;;  %v1973_v30 = vld [vmem:[#allocation2 + $0x78] sm:$0xf] }
  0xc8   : > { %v558_v8 = vsel %vm6825_vm4, %v550_v54, %v557_v55  ;;  %v1075_v20 = vunpack.c.l.b16 %v549_v7  ;;  %v1457_v50 = vrot.slane %v1456_v35, 4  ;;  %v2112_v53 = vshrl.u32 %v1968_v38, 16  ;;  %v6141_v54 = vld [vmem:[#allocation2 + $0x54] sm:$0xff]  ;;  %v6173_v19 = vld [vmem:[#allocation8 + $0x160] sm:$0xff] }
  0xc9   : > { %v1076_v21 = vunpack.c.l.b16 %v558_v8  ;;  %v1447_v49 = vrot.slane %v1446_v34, 4  ;;  %v2119_v55 = vrot.slane %v2117_v39, 7  ;;  %v1473_v17 = vshll.u32 %v1287_v5, 16  ;;  %3449 = vmatpush.bf16.msra.mxu1 %v6173_v19  ;;  %v6213_v35 = vld [vmem:[#allocation8 + $0x220] sm:$0xff]  ;;  %v420_v19 = vld [vmem:[#allocation2 + $0x74] sm:$0xf] }
  0xca   : > { %v5742_v4 = vrot.slane %v2112_v53, 11  ;;  %v582_v31 = vshrl.u32 %v416_v16, 16  ;;  %v1469_v34 = vrot.slane %v1467_v15, 5  ;;  %5064 = vmatpush.bf16.msra.mxu0 %v6213_v35  ;;  %v609_v35 = vshrl.u32 %v420_v19, 16 }
  0xcb   : > { %v1103_v42 = vpack.c.b16 %v1076_v21, %v1075_v20  ;;  %v1452_v2 = vsel %vm6829_vm5, %v1447_v49, %v6906_v18  ;;  %v2122_v8 = vor.u32 %v2120_v57, %v2119_v55  ;;  %v2124_v9 = vrot.slane %v2119_v55, 4 }
  0xcc   : > { %v1477_v18 = vshrl.u32 %v1287_v5, 16  ;;  %v6934_v38 = vrot.slane %v1473_v17, 5  ;;  %v5567_v53 = vrot.slane %v582_v31, 11  ;;  %v1470_v55 = vor.u32 %v1469_v34, %v1466_v29  ;;  %v1289_v5 = vld [vmem:[#allocation2 + $0x74] sm:$0xf] }
  0xcd   : > { %v2123_v26 = vsel %vm6825_vm4, %v5742_v4, %v2122_v8  ;;  %v6142_v4 = vld [vmem:[#allocation2 + $0x64] sm:$0xff] }
  0xce   : > { %v1479_v39 = vrot.slane %v1477_v18, 4  ;;  %v1471_v11 = vrot.slane %v1470_v55, 4  ;;  %v1975_v29 = vld [vmem:[#allocation2 + $0x84] sm:$0xf] }
  0xd0   : > { %v1480_v59 = vor.u32 %v1479_v39, %v6934_v38 }
  0xd2   : > { %1202 = vmatmul.bf16.gmra.mxu1 %v1102_v23  ;;  %v1285_v23 = vld [vmem:[#allocation2 + $0x5c] sm:$0x1] }
  0xd3   : > { %1855 = vmatmul.bf16.gmra.mxu2 %v1755_v45  ;;  %v1459_v36 = vshll.u32 %v1285_v23, 16  ;;  %v5566_v45 = vrot.slane %v560_v27, 11  ;;  %v1730_v23 = vunpack.c.l.b16 %v1452_v2  ;;  %v2132_v27 = vsel %vm6825_vm4, %v2124_v9, %v2131_v10 }
  0xd4   : > { %2505 = vmatmul.bf16.gmra.mxu3 %v2405_v48  ;;  %v579_v48 = vor.u32 %v577_v33, %v576_v32  ;;  %v589_v32 = vrot.slane %v587_v14, 7  ;;  %v590_v33 = vshll.u32 %v417_v63, 16  ;;  %v2142_v63 = vshll.u32 %v1972_v25, 16 }
  0xd5   : > { %2787 = vmatmul.bf16.gmra.mxu0 %v6140_v52  ;;  %v1461_v52 = vrot.slane %v1459_v36, 5  ;;  %v571_v62 = vsel %vm6825_vm4, %v5566_v45, %v570_v46  ;;  %v1288_v36 = vld [vmem:[#allocation2 + $0x6c] sm:$0x1]  ;;  %v1971_v45 = vld [vmem:[#allocation2 + $0x70] sm:$0x8]  ;;  %v2148_v46 = vshrl.u32 %v1973_v30, 16 }
  0xd6   : > { %v580_v1 = vsel %vm6825_vm4, %v572_v47, %v579_v48  ;;  %v1077_v21 = vunpack.c.l.b16 %v571_v62  ;;  %v1483_v57 = vshll.u32 %v1288_v36, 16  ;;  %v2134_v60 = vshrl.u32 %v1971_v45, 16  ;;  %v1976_v36 = vld [vmem:[#allocation2 + $0x88] sm:$0xf] }
  0xd7   : > { %v6909_v37 = vpop.f32.mrf.mxu1  ;;  %v1462_v3 = vsel %vm6829_vm5, %v1457_v50, %v1461_v52  ;;  %v1078_v22 = vunpack.c.l.b16 %v580_v1  ;;  %v598_v50 = vrot.slane %v596_v28, 7  ;;  %v599_v52 = vshll.u32 %v418_v13, 16 }
  0xd8   : > { %v1731_v24 = vunpack.c.l.b16 %v1462_v3  ;;  %v2141_v62 = vrot.slane %v2139_v40, 7  ;;  %v2150_v2 = vrot.slane %v2148_v46, 7  ;;  %v2151_v3 = vshll.u32 %v1973_v30, 16  ;;  %v419_v40 = vld [vmem:[#allocation2 + $0x70] sm:$0x8] }
  0xd9   : > { %v6911_v41 = vpop.f32.mrf.mxu0  ;;  %v1104_v48 = vpack.c.b16 %v1078_v22, %v1077_v21  ;;  %v594_v9 = vrot.slane %v589_v32, 4  ;;  %v601_v10 = vor.u32 %v599_v52, %v598_v50  ;;  %v1481_v13 = vrot.slane %v1480_v59, 4 }
  0xda   : > { %v1757_v49 = vpack.c.b16 %v1731_v24, %v1730_v23  ;;  %v1485_v14 = vrot.slane %v1483_v57, 5  ;;  %v5743_v15 = vrot.slane %v2134_v60, 11  ;;  %v2144_v16 = vor.u32 %v2142_v63, %v2141_v62  ;;  %v421_v23 = vld [vmem:[#allocation2 + $0x78] sm:$0xf]  ;;  %v1974_v57 = vld [vmem:[#allocation2 + $0x80] sm:$0x8] }
  0xdb   : > { %v2146_v17 = vrot.slane %v2141_v62, 4  ;;  %v2153_v18 = vor.u32 %v2151_v3, %v2150_v2  ;;  %v1488_v21 = vshrl.u32 %v1289_v5, 16  ;;  %v1491_v22 = vshll.u32 %v1289_v5, 16 }
  0xdc   : > { %v1497_v24 = vshll.u32 %v1290_v12, 16  ;;  %v1501_v25 = vshrl.u32 %v1290_v12, 16  ;;  %v2145_v34 = vsel %vm6825_vm4, %v5743_v15, %v2144_v16  ;;  %v2161_v50 = vshrl.u32 %v1975_v29, 16 }
  0xdd   : > { %v6913_v61 = vpop.f32.mrf.mxu2  ;;  %v2154_v39 = vsel %vm6825_vm4, %v2146_v17, %v2153_v18  ;;  %v1493_v45 = vrot.slane %v1491_v22, 5  ;;  %v2382_v55 = vunpack.c.l.b16 %v2145_v34  ;;  %v2170_v59 = vshrl.u32 %v1976_v36, 16 }
  0xde   : > { %v6917_v0 = vpop.f32.mrf.mxu3  ;;  %v2383_v60 = vunpack.c.l.b16 %v2154_v39  ;;  %v604_v62 = vshrl.u32 %v419_v40, 16  ;;  %v611_v63 = vrot.slane %v609_v35, 7  ;;  %v621_v3 = vshll.u32 %v421_v23, 16  ;;  %v1292_v39 = vld [vmem:[#allocation2 + $0x84] sm:$0xf] }
  0xdf   : > { %8056 = vst [vmem:[#allocation17_spill] sm:$0xff] %v6917_v0  ;;  %v6926_v7 = vpop.f32.mrf.mxu1  ;;  %v2173_v15 = vshll.u32 %v1976_v36, 16  ;;  %v1293_v40 = vld [vmem:[#allocation2 + $0x88] sm:$0xf] }
  0xe1   : > { %v6928_v20 = vpop.f32.mrf.mxu0 }
  0xe2   : > { %1207 = vmatmul.bf16.gmra.mxu1 %v1103_v42 }
  0xe3   : > { %1860 = vmatmul.bf16.gmra.mxu2 %v1756_v43  ;;  %v2380_v43 = vunpack.c.l.b16 %v2123_v26 }
  0xe4   : > { %2510 = vmatmul.bf16.gmra.mxu3 %v2406_v44  ;;  %v2381_v44 = vunpack.c.l.b16 %v2132_v27  ;;  %v602_v27 = vsel %vm6825_vm4, %v594_v9, %v601_v10  ;;  %v2156_v9 = vshrl.u32 %v1974_v57, 16  ;;  %v2163_v10 = vrot.slane %v2161_v50, 7  ;;  %v6988_v50 = vld [vmem:[#allocation2 + $0x84] sm:$0xf] }
  0xe5   : > { %2792 = vmatmul.bf16.gmra.mxu0 %v6141_v54  ;;  %v6936_v42 = vpop.f32.mrf.mxu2  ;;  %v592_v54 = vor.u32 %v590_v33, %v589_v32  ;;  %v1476_v32 = vsel %vm6829_vm5, %v1471_v11, %v6934_v38  ;;  %v1486_v33 = vsel %vm6829_vm5, %v1481_v13, %v1485_v14  ;;  %v1080_v46 = vunpack.c.l.b16 %v602_v27  ;;  %v6143_v27 = vld [vmem:[#allocation2 + $0x74] sm:$0xff] }
  0xe6   : > { %v6938_v47 = vpop.f32.mrf.mxu3  ;;  %v2407_v1 = vpack.c.b16 %v2381_v44, %v2380_v43  ;;  %v618_v43 = vshrl.u32 %v421_v23, 16  ;;  %v1490_v44 = vrot.slane %v1488_v21, 4  ;;  %v1503_v38 = vrot.slane %v1501_v25, 4 }
  0xe7   : > { %8057 = vst [vmem:[#allocation18_spill] sm:$0xff] %v6938_v47  ;;  %v593_v8 = vsel %vm6825_vm4, %v5567_v53, %v592_v54  ;;  %v1732_v53 = vunpack.c.l.b16 %v1476_v32  ;;  %v1733_v54 = vunpack.c.l.b16 %v1486_v33  ;;  %v2164_v11 = vshll.u32 %v1975_v29, 16 }
  0xe8   : > { %v1079_v28 = vunpack.c.l.b16 %v593_v8  ;;  %v620_v2 = vrot.slane %v618_v43, 7  ;;  %v2172_v14 = vrot.slane %v2170_v59, 7  ;;  %v5568_v21 = vrot.slane %v604_v62, 11  ;;  %v6994_v59 = vld [vmem:[#allocation2 + $0x88] sm:$0xf] }
  0xe9   : > { %v1758_v18 = vpack.c.b16 %v1733_v54, %v1732_v53  ;;  %v616_v23 = vrot.slane %v611_v63, 4  ;;  %v5744_v29 = vrot.slane %v2156_v9, 11  ;;  %v2166_v34 = vor.u32 %v2164_v11, %v2163_v10  ;;  %v6204_v54 = vld [vmem:[#allocation8 + $0x1d8] sm:$0xff]  ;;  %v1978_v9 = vld [vmem:[#allocation2 + $0x94] sm:$0xf] }
  0xea   : > { %v1105_v13 = vpack.c.b16 %v1080_v46, %v1079_v28  ;;  %v2168_v28 = vrot.slane %v2163_v10, 4  ;;  %v2175_v36 = vor.u32 %v2173_v15, %v2172_v14  ;;  %v1512_v53 = vshrl.u32 %v1292_v39, 16  ;;  %4383 = vmatpush.bf16.msra.mxu3 %v6204_v54  ;;  %v1979_v10 = vld [vmem:[#allocation2 + $0x98] sm:$0xf]  ;;  %v422_v14 = vld [vmem:[#allocation2 + $0x80] sm:$0x8] }
  0xeb   : > { %v1521_v62 = vshll.u32 %v1293_v40, 16  ;;  %v640_v15 = vshrl.u32 %v6994_v59, 16 }
  0xec   : > { %v2176_v57 = vsel %vm6825_vm4, %v2168_v28, %v2175_v36  ;;  %v626_v36 = vshrl.u32 %v422_v14, 16 }
  0xef   : > { %v6940_v58 = vpop.f32.mrf.mxu1 }
  0xf2   : > { %v6943_v6 = vpop.f32.mrf.mxu0  ;;  %1212 = vmatmul.bf16.gmra.mxu1 %v1104_v48  ;;  %v1291_v48 = vld [vmem:[#allocation2 + $0x7c] sm:$0x1] }
  0xf3   : > { %1865 = vmatmul.bf16.gmra.mxu2 %v1757_v49  ;;  %v6964_v49 = vrot.slane %v1497_v24, 5  ;;  %v1507_v5 = vshll.u32 %v1291_v48, 16  ;;  %v623_v24 = vor.u32 %v621_v3, %v620_v2 }
  0xf4   : > { %2515 = vmatmul.bf16.gmra.mxu3 %v2407_v1  ;;  %v612_v1 = vshll.u32 %v420_v19, 16  ;;  %v2408_v19 = vpack.c.b16 %v2383_v60, %v2382_v55  ;;  %v1515_v60 = vshll.u32 %v1292_v39, 16 }
  0xf5   : > { %2797 = vmatmul.bf16.gmra.mxu0 %v6142_v4  ;;  %v1494_v4 = vor.u32 %v1493_v45, %v1490_v44  ;;  %v1504_v8 = vor.u32 %v1503_v38, %v6964_v49  ;;  %v1509_v33 = vrot.slane %v1507_v5, 5  ;;  %v624_v44 = vsel %vm6825_vm4, %v616_v23, %v623_v24  ;;  %v6196_v45 = vld [vmem:[#allocation8 + $0x198] sm:$0xff] }
  0xf6   : > { %v6947_v26 = vpop.f32.mrf.mxu2  ;;  %v614_v22 = vor.u32 %v612_v1, %v611_v63  ;;  %v2167_v38 = vsel %vm6825_vm4, %v5744_v29, %v2166_v34  ;;  %4101 = vmatpush.bf16.msra.mxu2 %v6196_v45  ;;  %v1082_v3 = vunpack.c.l.b16 %v624_v44  ;;  %v7004_v23 = vrot.slane %v1521_v62, 5 }
  0xf7   : > { %v6951_v30 = vpop.f32.mrf.mxu3  ;;  %v6953_v31 = vpop.f32.mrf.mxu1  ;;  %v1495_v25 = vrot.slane %v1494_v4, 4  ;;  %v1505_v32 = vrot.slane %v1504_v8, 4  ;;  %v631_v8 = vshrl.u32 %v6988_v50, 16  ;;  %v2384_v11 = vunpack.c.l.b16 %v2167_v38 }
  0xf8   : > { %8058 = vst [vmem:[#allocation19_spill] sm:$0xff] %v6951_v30  ;;  %v615_v43 = vsel %vm6825_vm4, %v5568_v21, %v614_v22  ;;  %v1514_v21 = vrot.slane %v1512_v53, 4  ;;  %v1517_v22 = vrot.slane %v1515_v60, 5  ;;  %v2192_v29 = vshrl.u32 %v1979_v10, 16  ;;  %v1296_v60 = vld [vmem:[#allocation2 + $0x98] sm:$0xf] }
  0xf9   : > { %v1500_v46 = vsel %vm6829_vm5, %v1495_v25, %v6964_v49  ;;  %v1510_v48 = vsel %vm6829_vm5, %v1505_v32, %v1509_v33  ;;  %v1525_v49 = vshrl.u32 %v1293_v40, 16  ;;  %v1081_v2 = vunpack.c.l.b16 %v615_v43  ;;  %v6212_v25 = vld [vmem:[#allocation8 + $0x218] sm:$0xff]  ;;  %v1977_v32 = vld [vmem:[#allocation2 + $0x90] sm:$0x8]  ;;  %v1299_v30 = vld [vmem:[#allocation2 + $0xa8] sm:$0xf] }
  0xfa   : > { %v6966_v52 = vpop.f32.mrf.mxu0  ;;  %v1734_v4 = vunpack.c.l.b16 %v1500_v46  ;;  %v1735_v5 = vunpack.c.l.b16 %v1510_v48  ;;  %v2183_v33 = vshrl.u32 %v1978_v9, 16  ;;  %v633_v39 = vrot.slane %v631_v8, 7  ;;  %5065 = vmatpush.bf16.msra.mxu0 %v6212_v25  ;;  %v1295_v46 = vld [vmem:[#allocation2 + $0x94] sm:$0xf] }
  0xfb   : > { %v1527_v24 = vrot.slane %v1525_v49, 4  ;;  %v1106_v34 = vpack.c.b16 %v1082_v3, %v1081_v2  ;;  %v634_v43 = vshll.u32 %v6988_v50, 16  ;;  %v642_v44 = vrot.slane %v640_v15, 7  ;;  %v426_v15 = vld [vmem:[#allocation2 + $0x94] sm:$0xf] }
  0xfc   : > { %v1759_v28 = vpack.c.b16 %v1735_v5, %v1734_v4  ;;  %v643_v45 = vshll.u32 %v6994_v59, 16  ;;  %v1518_v38 = vor.u32 %v1517_v22, %v1514_v21  ;;  %v2185_v2 = vrot.slane %v2183_v33, 7  ;;  %v6144_v5 = vld [vmem:[#allocation2 + $0x84] sm:$0xff] }
  0xfd   : > { %v1528_v53 = vor.u32 %v1527_v24, %v7004_v23  ;;  %v2186_v3 = vshll.u32 %v1978_v9, 16  ;;  %v2194_v4 = vrot.slane %v2192_v29, 7  ;;  %v2195_v50 = vshll.u32 %v1979_v10, 16 }
  0xfe   : > { %v6969_v12 = vpop.f32.mrf.mxu2  ;;  %v5569_v8 = vrot.slane %v626_v36, 11  ;;  %v638_v59 = vrot.slane %v633_v39, 4  ;;  %v636_v14 = vor.u32 %v634_v43, %v633_v39  ;;  %v1545_v21 = vshll.u32 %v1296_v60, 16  ;;  %v425_v39 = vld [vmem:[#allocation2 + $0x90] sm:$0x8] }
  0xff   : > { %v6971_v16 = vpop.f32.mrf.mxu3  ;;  %v6973_v17 = vpop.f32.mrf.mxu1  ;;  %v1549_v22 = vshrl.u32 %v1296_v60, 16  ;;  %v645_v25 = vor.u32 %v643_v45, %v642_v44  ;;  %v2188_v10 = vor.u32 %v2186_v3, %v2185_v2  ;;  %v2190_v29 = vrot.slane %v2185_v2, 4  ;;  %v1297_v45 = vld [vmem:[#allocation2 + $0x9c] sm:$0x1] }
 0x100   : > { %8059 = vst [vmem:[#allocation20_spill] sm:$0xff] %v6971_v16  ;;  %v2197_v36 = vor.u32 %v2195_v50, %v2194_v4  ;;  %v7017_v60 = vrot.slane %v1545_v21, 5  ;;  %v637_v44 = vsel %vm6825_vm4, %v5569_v8, %v636_v14  ;;  %v648_v3 = vshrl.u32 %v425_v39, 16  ;;  %v1981_v8 = vld [vmem:[#allocation2 + $0xa4] sm:$0xf] }
 0x101   : > { %v1551_v16 = vrot.slane %v1549_v22, 4  ;;  %v656_v50 = vshll.u32 %v426_v15, 16  ;;  %v1555_v14 = vshll.u32 %v1297_v45, 16  ;;  %v1083_v22 = vunpack.c.l.b16 %v637_v44 }
 0x102   : > { %v6975_v35 = vpop.f32.mrf.mxu0  ;;  %1217 = vmatmul.bf16.gmra.mxu1 %v1105_v13  ;;  %v2385_v13 = vunpack.c.l.b16 %v2176_v57  ;;  %v2178_v57 = vshrl.u32 %v1977_v32, 16  ;;  %v1529_v32 = vrot.slane %v1528_v53, 4  ;;  %v2198_v2 = vsel %vm6825_vm4, %v2190_v29, %v2197_v36 }
 0x103   : > { %1870 = vmatmul.bf16.gmra.mxu2 %v1758_v18  ;;  %v6172_v18 = vld [vmem:[#allocation8 + $0x158] sm:$0xff]  ;;  %v2205_v29 = vshrl.u32 %v1981_v8, 16 }
 0x104   : > { %2520 = vmatmul.bf16.gmra.mxu3 %v2408_v19  ;;  %3450 = vmatpush.bf16.msra.mxu1 %v6172_v18  ;;  %v2409_v40 = vpack.c.b16 %v2385_v13, %v2384_v11  ;;  %v1536_v11 = vshrl.u32 %v1295_v46, 16  ;;  %v1539_v13 = vshll.u32 %v1295_v46, 16  ;;  %v427_v18 = vld [vmem:[#allocation2 + $0x98] sm:$0xf]  ;;  %v5745_v9 = vrot.slane %v2178_v57, 11 }
 0x105   : > { %2802 = vmatmul.bf16.gmra.mxu0 %v6143_v27  ;;  %v1294_v27 = vld [vmem:[#allocation2 + $0x8c] sm:$0x1]  ;;  %v662_v46 = vshrl.u32 %v427_v18, 16 }
 0x106   : > { %v6990_v55 = vpop.f32.mrf.mxu2  ;;  %v1531_v54 = vshll.u32 %v1294_v27, 16  ;;  %v1519_v27 = vrot.slane %v1518_v38, 4  ;;  %v1538_v43 = vrot.slane %v1536_v11, 4  ;;  %v2189_v57 = vsel %vm6825_vm4, %v5745_v9, %v2188_v10  ;;  %v1980_v10 = vld [vmem:[#allocation2 + $0xa0] sm:$0x8] }
 0x107   : > { %v6996_v63 = vpop.f32.mrf.mxu3  ;;  %v6998_v1 = vpop.f32.mrf.mxu1  ;;  %v2387_v9 = vunpack.c.l.b16 %v2198_v2  ;;  %v1298_v2 = vld [vmem:[#allocation2 + $0xa4] sm:$0xf] }
 0x108   : > { %8060 = vst [vmem:[#allocation21_spill] sm:$0xff] %v6996_v63  ;;  %v1533_v33 = vrot.slane %v1531_v54, 5  ;;  %v1541_v63 = vrot.slane %v1539_v13, 5  ;;  %v1524_v53 = vsel %vm6829_vm5, %v1519_v27, %v7004_v23  ;;  %v1552_v13 = vor.u32 %v1551_v16, %v7017_v60  ;;  %v1982_v23 = vld [vmem:[#allocation2 + $0xa8] sm:$0xf] }
 0x109   : > { %v1736_v27 = vunpack.c.l.b16 %v1524_v53  ;;  %v1557_v16 = vrot.slane %v1555_v14, 5 }
 0x10a   : > { %v7002_v19 = vpop.f32.mrf.mxu0  ;;  %v1534_v54 = vsel %vm6829_vm5, %v1529_v32, %v1533_v33  ;;  %v1542_v11 = vor.u32 %v1541_v63, %v1538_v43  ;;  %v2386_v33 = vunpack.c.l.b16 %v2189_v57  ;;  %v1553_v39 = vrot.slane %v1552_v13, 4 }
 0x10b   : > { %v1737_v32 = vunpack.c.l.b16 %v1534_v54  ;;  %v2207_v54 = vrot.slane %v2205_v29, 7  ;;  %v2208_v57 = vshll.u32 %v1981_v8, 16 }
 0x10c   : > { %v1543_v63 = vrot.slane %v1542_v11, 4  ;;  %v1558_v8 = vsel %vm6829_vm5, %v1553_v39, %v1557_v16 }
 0x10d   : > { %v1760_v53 = vpack.c.b16 %v1737_v32, %v1736_v27  ;;  %v1563_v27 = vshll.u32 %v1298_v2, 16  ;;  %v1569_v32 = vshll.u32 %v1299_v30, 16  ;;  %v2212_v29 = vrot.slane %v2207_v54, 4 }
 0x10e   : > { %v7008_v48 = vpop.f32.mrf.mxu2  ;;  %v1548_v14 = vsel %vm6829_vm5, %v1543_v63, %v7017_v60 }
 0x10f   : > { %v7011_v62 = vpop.f32.mrf.mxu3  ;;  %v7013_v49 = vpop.f32.mrf.mxu1  ;;  %v7069_v39 = vunpack.c.l.b16 %v1548_v14 }
 0x110   : > { %8061 = vst [vmem:[#allocation22_spill] sm:$0xff] %v7011_v62  ;;  %v653_v62 = vshrl.u32 %v426_v15, 16 }
 0x112   : > { %v7015_v24 = vpop.f32.mrf.mxu0  ;;  %1222 = vmatmul.bf16.gmra.mxu1 %v1106_v34  ;;  %v655_v4 = vrot.slane %v653_v62, 7  ;;  %v5570_v62 = vrot.slane %v648_v3, 11 }
 0x113   : > { %1875 = vmatmul.bf16.gmra.mxu2 %v1759_v28  ;;  %v646_v28 = vsel %vm6825_vm4, %v638_v59, %v645_v25  ;;  %v665_v59 = vshll.u32 %v427_v18, 16 }
 0x114   : > { %2525 = vmatmul.bf16.gmra.mxu3 %v2409_v40  ;;  %v1084_v25 = vunpack.c.l.b16 %v646_v28  ;;  %v658_v15 = vor.u32 %v656_v50, %v655_v4  ;;  %v660_v36 = vrot.slane %v655_v4, 4  ;;  %v2410_v4 = vpack.c.b16 %v2387_v9, %v2386_v33 }
 0x115   : > { %2807 = vmatmul.bf16.gmra.mxu0 %v6144_v5  ;;  %v664_v5 = vrot.slane %v662_v46, 7  ;;  %v2214_v46 = vshrl.u32 %v1982_v23, 16  ;;  %v1573_v33 = vshrl.u32 %v1299_v30, 16  ;;  %v7071_v30 = vunpack.c.l.b16 %v1558_v8 }
 0x116   : > { %v7019_v34 = vpop.f32.mrf.mxu2  ;;  %v1107_v45 = vpack.c.b16 %v1084_v25, %v1083_v22  ;;  %v659_v11 = vsel %vm6825_vm4, %v5570_v62, %v658_v15  ;;  %v7057_v22 = vld [vmem:[#allocation2 + $0xa4] sm:$0xf]  ;;  %v1560_v25 = vshrl.u32 %v1298_v2, 16 }
 0x117   : > { %8062 = vst [vmem:[#allocation23_spill] sm:$0xff] %v7019_v34  ;;  %v7025_v38 = vpop.f32.mrf.mxu3  ;;  %v7027_v40 = vpop.f32.mrf.mxu1  ;;  %v667_v18 = vor.u32 %v665_v59, %v664_v5  ;;  %v2216_v50 = vrot.slane %v2214_v46, 7  ;;  %v2217_v5 = vshll.u32 %v1982_v23, 16  ;;  %v6145_v59 = vld [vmem:[#allocation2 + $0x94] sm:$0xff]  ;;  %v7061_v23 = vld [vmem:[#allocation2 + $0xa8] sm:$0xf]  ;;  %v1085_v60 = vunpack.c.l.b16 %v659_v11 }
 0x118   : > { %8063 = vst [vmem:[#allocation24_spill] sm:$0xff] %v7025_v38  ;;  %v2200_v38 = vshrl.u32 %v1980_v10, 16  ;;  %v2210_v10 = vor.u32 %v2208_v57, %v2207_v54  ;;  %v675_v15 = vshrl.u32 %v7057_v22, 16  ;;  %v7066_v46 = vld [vmem:[#allocation2 + $0xb8] sm:$0xf]  ;;  %v684_v16 = vshrl.u32 %v7061_v23, 16 }
 0x119   : > { %v7050_v13 = vsel %vm6825_vm4, %v660_v36, %v667_v18  ;;  %v2219_v62 = vor.u32 %v2217_v5, %v2216_v50  ;;  %v7064_v36 = vld [vmem:[#allocation2 + $0xb4] sm:$0xf]  ;;  %v1565_v54 = vrot.slane %v1563_v27, 5  ;;  %v7074_v57 = vrot.slane %v1569_v32, 5  ;;  %v1300_v11 = vld [vmem:[#allocation2 + $0xac] sm:$0x1] }
 0x11a   : > { %v7039_v21 = vpop.f32.mrf.mxu0  ;;  %v5746_v9 = vrot.slane %v2200_v38, 11  ;;  %v6195_v18 = vld [vmem:[#allocation8 + $0x190] sm:$0xff]  ;;  %v1086_v63 = vunpack.c.l.b16 %v7050_v13  ;;  %v428_v38 = vld [vmem:[#allocation2 + $0xa0] sm:$0x8]  ;;  %v1575_v2 = vrot.slane %v1573_v33, 4  ;;  %v2227_v14 = vshrl.u32 %v7064_v36, 16 }
 0x11b   : > { %4102 = vmatpush.bf16.msra.mxu2 %v6195_v18  ;;  %v1983_v13 = vld [vmem:[#allocation2 + $0xb0] sm:$0x8]  ;;  %v2236_v8 = vshrl.u32 %v7066_v46, 16  ;;  %v2220_v27 = vsel %vm6825_vm4, %v2212_v29, %v2219_v62  ;;  %v670_v32 = vshrl.u32 %v428_v38, 16  ;;  %v677_v33 = vrot.slane %v675_v15, 7 }
 0x11c   : > { %v678_v18 = vshll.u32 %v7057_v22, 16  ;;  %v1579_v0 = vshll.u32 %v1300_v11, 16  ;;  %v2230_v29 = vshll.u32 %v7064_v36, 16  ;;  %v2239_v15 = vshll.u32 %v7066_v46, 16  ;;  %v1301_v11 = vld [vmem:[#allocation2 + $0xb4] sm:$0xf] }
 0x11d   : > { %v2238_v62 = vrot.slane %v2236_v8, 7  ;;  %v1108_v22 = vpack.c.b16 %v1086_v63, %v1085_v60 }
 0x11e   : > { %v7041_v43 = vpop.f32.mrf.mxu2  ;;  %v1581_v8 = vrot.slane %v1579_v0, 5 }
 0x11f   : > { %8064 = vst [vmem:[#allocation25_spill] sm:$0xff] %v7041_v43  ;;  %v7043_v44 = vpop.f32.mrf.mxu3  ;;  %v1188_v28 = vpop.f32.mrf.mxu1  ;;  %v2229_v43 = vrot.slane %v2227_v14, 7 }
 0x120   : > { %8065 = vst [vmem:[#allocation26_spill] sm:$0xff] %v7043_v44  ;;  %v1189_v3 = vadd.f32 %v1188_v28, %v6911_v41 }
 0x121   : > { %v2232_v34 = vor.u32 %v2230_v29, %v2229_v43 }
 0x122   : > { %v7059_v41 = vpop.f32.mrf.mxu0  ;;  %1227 = vmatmul.bf16.gmra.mxu1 %v1107_v45  ;;  %v6203_v45 = vld [vmem:[#allocation8 + $0x1d0] sm:$0xff] }
 0x123   : > { %1880 = vmatmul.bf16.gmra.mxu2 %v1760_v53  ;;  %v1562_v53 = vrot.slane %v1560_v25, 4  ;;  %4384 = vmatpush.bf16.msra.mxu3 %v6203_v45  ;;  %v1576_v45 = vor.u32 %v1575_v2, %v7074_v57  ;;  %v682_v2 = vrot.slane %v677_v33, 4 }
 0x124   : > { %2530 = vmatmul.bf16.gmra.mxu3 %v2410_v4 }
 0x125   : > { %2812 = vmatmul.bf16.gmra.mxu0 %v6145_v59  ;;  %v2211_v59 = vsel %vm6825_vm4, %v5746_v9, %v2210_v10  ;;  %v687_v9 = vshll.u32 %v7061_v23, 16  ;;  %v6171_v10 = vld [vmem:[#allocation8 + $0x150] sm:$0xff]  ;;  %v1566_v47 = vor.u32 %v1565_v54, %v1562_v53  ;;  %v1761_v23 = vpack.c.b16 %v7071_v30, %v7069_v39 }
 0x126   : > { %v1841_v28 = vpop.f32.mrf.mxu2  ;;  %3451 = vmatpush.bf16.msra.mxu1 %v6171_v10  ;;  %v2388_v38 = vunpack.c.l.b16 %v2211_v59  ;;  %v5571_v53 = vrot.slane %v670_v32, 11  ;;  %v680_v54 = vor.u32 %v678_v18, %v677_v33  ;;  %v1577_v14 = vrot.slane %v1576_v45, 4  ;;  %v433_v59 = vld [vmem:[#allocation2 + $0xb8] sm:$0xf] }
 0x127   : > { %v1921_v4 = vadd.f32 %v1841_v28, %v1189_v3  ;;  %v2491_v50 = vpop.f32.mrf.mxu3  ;;  %v1190_v5 = vpop.f32.mrf.mxu1  ;;  %v686_v28 = vrot.slane %v684_v16, 7  ;;  %v2389_v16 = vunpack.c.l.b16 %v2220_v27  ;;  %v1567_v36 = vrot.slane %v1566_v47, 4  ;;  %v1302_v18 = vld [vmem:[#allocation2 + $0xb8] sm:$0xf]  ;;  %v431_v47 = vld [vmem:[#allocation2 + $0xb0] sm:$0x8] }
 0x128   : > { %v1191_v25 = vadd.f32 %v1190_v5, %v6928_v20  ;;  %v2222_v20 = vshrl.u32 %v1983_v13, 16  ;;  %v6211_v5 = vld [vmem:[#allocation8 + $0x210] sm:$0xff]  ;;  %v2234_v39 = vrot.slane %v2229_v43, 4  ;;  %v2241_v30 = vor.u32 %v2239_v15, %v2238_v62 }
 0x129   : > { %v7083_v3 = vadd.f32 %v2491_v50, %v1921_v4  ;;  %5066 = vmatpush.bf16.msra.mxu0 %v6211_v5  ;;  %v689_v4 = vor.u32 %v687_v9, %v686_v28  ;;  %v7094_v50 = vld [vmem:[#allocation2 + $0xb4] sm:$0xf]  ;;  %v2411_v32 = vpack.c.b16 %v2389_v16, %v2388_v38  ;;  %v1584_v28 = vshrl.u32 %v1301_v11, 16  ;;  %v6146_v5 = vld [vmem:[#allocation2 + $0xa4] sm:$0xff] }
 0x12a   : > { %v7087_v44 = vpop.f32.mrf.mxu0  ;;  %v5747_v46 = vrot.slane %v2222_v20, 11  ;;  %v697_v33 = vshrl.u32 %v7094_v50, 16  ;;  %v1587_v45 = vshll.u32 %v1301_v11, 16  ;;  %v706_v20 = vshrl.u32 %v433_v59, 16 }
 0x12b   : > { %v690_v43 = vsel %vm6825_vm4, %v682_v2, %v689_v4  ;;  %v1582_v29 = vsel %vm6829_vm5, %v1577_v14, %v1581_v8  ;;  %v2242_v15 = vsel %vm6825_vm4, %v2234_v39, %v2241_v30  ;;  %v692_v38 = vshrl.u32 %v431_v47, 16 }
 0x12c   : > { %v2233_v62 = vsel %vm6825_vm4, %v5747_v46, %v2232_v34  ;;  %v699_v16 = vrot.slane %v697_v33, 7  ;;  %v1589_v2 = vrot.slane %v1587_v45, 5  ;;  %v709_v14 = vshll.u32 %v433_v59, 16  ;;  %v1986_v45 = vld [vmem:[#allocation2 + $0xc0] sm:$0x8] }
 0x12d   : > { %v2390_v39 = vunpack.c.l.b16 %v2233_v62  ;;  %v1304_v62 = vld [vmem:[#allocation2 + $0xc4] sm:$0xf] }
 0x12e   : > { %v1843_v13 = vpop.f32.mrf.mxu2 }
 0x12f   : > { %v1922_v10 = vadd.f32 %v1843_v13, %v1191_v25  ;;  %v2493_v60 = vpop.f32.mrf.mxu3  ;;  %v1193_v63 = vpop.f32.mrf.mxu1  ;;  %v681_v25 = vsel %vm6825_vm4, %v5571_v53, %v680_v54  ;;  %v1586_v53 = vrot.slane %v1584_v28, 4  ;;  %v1597_v54 = vshrl.u32 %v1302_v18, 16 }
 0x130   : > { %v1194_v27 = vadd.f32 %v1193_v63, %v6943_v6  ;;  %v1572_v6 = vsel %vm6829_vm5, %v1567_v36, %v7074_v57  ;;  %v700_v57 = vshll.u32 %v7094_v50, 16  ;;  %v1087_v11 = vunpack.c.l.b16 %v681_v25  ;;  %v1987_v50 = vld [vmem:[#allocation2 + $0xc4] sm:$0xf] }
 0x131   : > { %v2572_v9 = vadd.f32 %v2493_v60, %v1922_v10  ;;  %v1088_v13 = vunpack.c.l.b16 %v690_v43  ;;  %v708_v36 = vrot.slane %v706_v20, 7  ;;  %v1740_v60 = vunpack.c.l.b16 %v1572_v6 }
 0x132   : > { %v7098_v0 = vpop.f32.mrf.mxu0  ;;  %1232 = vmatmul.bf16.gmra.mxu1 %v1108_v22  ;;  %v1593_v22 = vshll.u32 %v1302_v18, 16  ;;  %v1741_v63 = vunpack.c.l.b16 %v1582_v29  ;;  %v5572_v18 = vrot.slane %v692_v38, 11  ;;  %v702_v28 = vor.u32 %v700_v57, %v699_v16  ;;  %v7127_v57 = vld [vmem:[#allocation2 + $0xc4] sm:$0xf] }
 0x133   : > { %1885 = vmatmul.bf16.gmra.mxu2 %v1761_v23  ;;  %v7116_v23 = vadd.f32 %v7059_v41, %v7083_v3  ;;  %v7119_v4 = vadd.f32 %v7087_v44, %v2572_v9  ;;  %v1599_v3 = vrot.slane %v1597_v54, 4  ;;  %v1988_v44 = vld [vmem:[#allocation2 + $0xc8] sm:$0xf]  ;;  %v1303_v9 = vld [vmem:[#allocation2 + $0xbc] sm:$0x1]  ;;  %v711_v47 = vor.u32 %v709_v14, %v708_v36 }
 0x134   : > { %2535 = vmatmul.bf16.gmra.mxu3 %v2411_v32  ;;  %v2391_v32 = vunpack.c.l.b16 %v2242_v15  ;;  %v7122_v41 = vrot.slane %v1593_v22, 5  ;;  %v2249_v25 = vshrl.u32 %v1987_v50, 16  ;;  %v2258_v43 = vshrl.u32 %v1988_v44, 16 }
 0x135   : > { %2817 = vmatmul.bf16.gmra.mxu0 %v6146_v5  ;;  %v1590_v5 = vor.u32 %v1589_v2, %v1586_v53  ;;  %v1109_v6 = vpack.c.b16 %v1088_v13, %v1087_v11  ;;  %v1762_v20 = vpack.c.b16 %v1741_v63, %v1740_v60  ;;  %v1603_v29 = vshll.u32 %v1303_v9, 16  ;;  %v7133_v13 = vld [vmem:[#allocation2 + $0xc8] sm:$0xf] }
 0x136   : > { %v1846_v34 = vpop.f32.mrf.mxu2  ;;  %v2412_v15 = vpack.c.b16 %v2391_v32, %v2390_v39  ;;  %v703_v22 = vsel %vm6825_vm4, %v5572_v18, %v702_v28  ;;  %v2244_v54 = vshrl.u32 %v1986_v45, 16  ;;  %v2251_v2 = vrot.slane %v2249_v25, 7  ;;  %v434_v18 = vld [vmem:[#allocation2 + $0xc0] sm:$0x8] }
 0x137   : > { %v1923_v8 = vadd.f32 %v1846_v34, %v1194_v27  ;;  %v2496_v46 = vpop.f32.mrf.mxu3  ;;  %v1195_v10 = vpop.f32.mrf.mxu1  ;;  %v704_v27 = vrot.slane %v699_v16, 4  ;;  %v1591_v38 = vrot.slane %v1590_v5, 4  ;;  %v2252_v34 = vshll.u32 %v1987_v50, 16  ;;  %v6147_v5 = vld [vmem:[#allocation2 + $0xb4] sm:$0xff] }
 0x138   : > { %v1196_v30 = vadd.f32 %v1195_v10, %v6966_v52  ;;  %v1600_v52 = vor.u32 %v1599_v3, %v7122_v41  ;;  %v2261_v11 = vshll.u32 %v1988_v44, 16  ;;  %v1305_v10 = vld [vmem:[#allocation2 + $0xc8] sm:$0xf]  ;;  %v1608_v60 = vshrl.u32 %v1304_v62, 16 }
 0x139   : > { %v2573_v33 = vadd.f32 %v2496_v46, %v1923_v8  ;;  %v7131_v16 = vsel %vm6825_vm4, %v704_v27, %v711_v47  ;;  %v2260_v46 = vrot.slane %v2258_v43, 7  ;;  %v1611_v63 = vshll.u32 %v1304_v62, 16 }
 0x13a   : > { %v2780_v59 = vpop.f32.mrf.mxu0  ;;  %v1601_v32 = vrot.slane %v1600_v52, 4  ;;  %v1605_v3 = vrot.slane %v1603_v29, 5  ;;  %v719_v28 = vshrl.u32 %v7127_v57, 16  ;;  %v1596_v50 = vsel %vm6829_vm5, %v1591_v38, %v7122_v41  ;;  %v6194_v41 = vld [vmem:[#allocation8 + $0x188] sm:$0xff] }
 0x13b   : > { %v728_v44 = vshrl.u32 %v7133_v13, 16  ;;  %v2254_v47 = vor.u32 %v2252_v34, %v2251_v2  ;;  %v2256_v45 = vrot.slane %v2251_v2, 4  ;;  %v1621_v25 = vshrl.u32 %v1305_v10, 16  ;;  %4103 = vmatpush.bf16.msra.mxu2 %v6194_v41 }
 0x13c   : > { %v2263_v43 = vor.u32 %v2261_v11, %v2260_v46  ;;  %v714_v52 = vshrl.u32 %v434_v18, 16  ;;  %v1610_v29 = vrot.slane %v1608_v60, 4  ;;  %v1613_v62 = vrot.slane %v1611_v63, 5  ;;  %v1990_v11 = vld [vmem:[#allocation2 + $0xd4] sm:$0xf] }
 0x13d   : > { %v7145_v38 = vadd.f32 %v7098_v0, %v2573_v33  ;;  %v1090_v2 = vunpack.c.l.b16 %v7131_v16  ;;  %v730_v34 = vrot.slane %v728_v44, 7  ;;  %v1623_v0 = vrot.slane %v1621_v25, 4  ;;  %v1991_v63 = vld [vmem:[#allocation2 + $0xd8] sm:$0xf]  ;;  %v1989_v44 = vld [vmem:[#allocation2 + $0xd0] sm:$0x8] }
 0x13e   : > { %v1848_v53 = vpop.f32.mrf.mxu2  ;;  %v1614_v60 = vor.u32 %v1613_v62, %v1610_v29 }
 0x13f   : > { %v1924_v36 = vadd.f32 %v1848_v53, %v1196_v30  ;;  %v2498_v14 = vpop.f32.mrf.mxu3  ;;  %v1198_v8 = vpop.f32.mrf.mxu1  ;;  %v5748_v30 = vrot.slane %v2244_v54, 11  ;;  %v721_v53 = vrot.slane %v719_v28, 7  ;;  %v2271_v28 = vshrl.u32 %v1990_v11, 16 }
 0x140   : > { %v1199_v39 = vadd.f32 %v1198_v8, %v6975_v35  ;;  %v1617_v35 = vshll.u32 %v1305_v10, 16  ;;  %v1306_v10 = vld [vmem:[#allocation2 + $0xcc] sm:$0x1]  ;;  %v1615_v41 = vrot.slane %v1614_v60, 4 }
 0x141   : > { %v2574_v9 = vadd.f32 %v2498_v14, %v1924_v36  ;;  %v722_v36 = vshll.u32 %v7127_v57, 16  ;;  %v6202_v14 = vld [vmem:[#allocation8 + $0x1c8] sm:$0xff]  ;;  %v7153_v57 = vunpack.c.l.b16 %v1596_v50  ;;  %v2255_v16 = vsel %vm6825_vm4, %v5748_v30, %v2254_v47 }
 0x142   : > { %v7141_v27 = vpop.f32.mrf.mxu0  ;;  %1237 = vmatmul.bf16.gmra.mxu1 %v1109_v6  ;;  %v1089_v6 = vunpack.c.l.b16 %v703_v22  ;;  %v7155_v46 = vrot.slane %v1617_v35, 5  ;;  %4385 = vmatpush.bf16.msra.mxu3 %v6202_v14  ;;  %v6170_v35 = vld [vmem:[#allocation8 + $0x148] sm:$0xff]  ;;  %v1627_v47 = vshll.u32 %v1306_v10, 16  ;;  %v2392_v29 = vunpack.c.l.b16 %v2255_v16 }
 0x143   : > { %1890 = vmatmul.bf16.gmra.mxu2 %v1762_v20  ;;  %v7147_v54 = vadd.f32 %v2780_v59, %v2574_v9  ;;  %v731_v20 = vshll.u32 %v7133_v13, 16  ;;  %v2264_v13 = vsel %vm6825_vm4, %v2256_v45, %v2263_v43  ;;  %v724_v18 = vor.u32 %v722_v36, %v721_v53  ;;  %v6210_v43 = vld [vmem:[#allocation8 + $0x208] sm:$0xff]  ;;  %3452 = vmatpush.bf16.msra.mxu1 %v6170_v35 }
 0x144   : > { %2540 = vmatmul.bf16.gmra.mxu3 %v2412_v15  ;;  %v1606_v15 = vsel %vm6829_vm5, %v1601_v32, %v1605_v3  ;;  %v5573_v3 = vrot.slane %v714_v52, 11  ;;  %v1624_v30 = vor.u32 %v1623_v0, %v7155_v46  ;;  %v2280_v45 = vshrl.u32 %v1991_v63, 16  ;;  %5067 = vmatpush.bf16.msra.mxu0 %v6210_v43 }
 0x145   : > { %2822 = vmatmul.bf16.gmra.mxu0 %v6147_v5  ;;  %v1743_v5 = vunpack.c.l.b16 %v1606_v15  ;;  %v733_v50 = vor.u32 %v731_v20, %v730_v34  ;;  %v2393_v62 = vunpack.c.l.b16 %v2264_v13  ;;  %v2266_v52 = vshrl.u32 %v1989_v44, 16 }
 0x146   : > { %v1851_v8 = vpop.f32.mrf.mxu2  ;;  %v2273_v36 = vrot.slane %v2271_v28, 7  ;;  %v2274_v14 = vshll.u32 %v1990_v11, 16  ;;  %v1625_v15 = vrot.slane %v1624_v30, 4  ;;  %v1629_v0 = vrot.slane %v1627_v47, 5 }
 0x147   : > { %v1925_v33 = vadd.f32 %v1851_v8, %v1199_v39  ;;  %v2501_v59 = vpop.f32.mrf.mxu3  ;;  %v1200_v22 = vpop.f32.mrf.mxu1  ;;  %v726_v39 = vrot.slane %v721_v53, 4  ;;  %v1110_v53 = vpack.c.b16 %v1090_v2, %v1089_v6  ;;  %v1763_v34 = vpack.c.b16 %v1743_v5, %v7153_v57  ;;  %v1308_v2 = vld [vmem:[#allocation2 + $0xd8] sm:$0xf]  ;;  %v7172_v5 = vld [vmem:[#allocation2 + $0xd4] sm:$0xf] }
 0x148   : > { %v1201_v32 = vadd.f32 %v1200_v22, %v7002_v19  ;;  %v725_v19 = vsel %vm6825_vm4, %v5573_v3, %v724_v18  ;;  %v1307_v22 = vld [vmem:[#allocation2 + $0xd4] sm:$0xf]  ;;  %v2413_v60 = vpack.c.b16 %v2393_v62, %v2392_v29  ;;  %v1620_v6 = vsel %vm6829_vm5, %v1615_v41, %v7155_v46 }
 0x149   : > { %v2575_v9 = vadd.f32 %v2501_v59, %v1925_v33  ;;  %v734_v20 = vsel %vm6825_vm4, %v726_v39, %v733_v50  ;;  %v2282_v33 = vrot.slane %v2280_v45, 7  ;;  %v2283_v59 = vshll.u32 %v1991_v63, 16  ;;  %v7174_v39 = vld [vmem:[#allocation2 + $0xd8] sm:$0xf] }
 0x14a   : > { %v2785_v25 = vpop.f32.mrf.mxu0  ;;  %v1091_v3 = vunpack.c.l.b16 %v725_v19  ;;  %v1092_v57 = vunpack.c.l.b16 %v734_v20  ;;  %v5749_v18 = vrot.slane %v2266_v52, 11  ;;  %v2276_v28 = vor.u32 %v2274_v14, %v2273_v36  ;;  %v437_v19 = vld [vmem:[#allocation2 + $0xd0] sm:$0x8]  ;;  %v1993_v52 = vld [vmem:[#allocation2 + $0xe4] sm:$0xf] }
 0x14b   : > { %v2278_v50 = vrot.slane %v2273_v36, 4  ;;  %v1632_v44 = vshrl.u32 %v1307_v22, 16  ;;  %v1635_v35 = vshll.u32 %v1307_v22, 16  ;;  %v1630_v46 = vsel %vm6829_vm5, %v1625_v15, %v1629_v0  ;;  %v1994_v36 = vld [vmem:[#allocation2 + $0xe8] sm:$0xf] }
 0x14c   : > { %v2285_v47 = vor.u32 %v2283_v59, %v2282_v33  ;;  %v1645_v45 = vshrl.u32 %v1308_v2, 16  ;;  %v741_v43 = vshrl.u32 %v7172_v5, 16  ;;  %v750_v29 = vshrl.u32 %v7174_v39, 16  ;;  %v1309_v59 = vld [vmem:[#allocation2 + $0xdc] sm:$0x1] }
 0x14d   : > { %v7182_v62 = vpack.c.b16 %v1092_v57, %v1091_v3  ;;  %v7184_v41 = vunpack.c.l.b16 %v1620_v6  ;;  %v7187_v14 = vadd.f32 %v7141_v27, %v2575_v9  ;;  %v1634_v20 = vrot.slane %v1632_v44, 4 }
 0x14e   : > { %v1853_v8 = vpop.f32.mrf.mxu2  ;;  %v2277_v0 = vsel %vm6825_vm4, %v5749_v18, %v2276_v28  ;;  %v2286_v33 = vsel %vm6825_vm4, %v2278_v50, %v2285_v47  ;;  %v2293_v3 = vshrl.u32 %v1993_v52, 16  ;;  %v2302_v6 = vshrl.u32 %v1994_v36, 16 }
 0x14f   : > { %v1926_v16 = vadd.f32 %v1853_v8, %v1201_v32  ;;  %v2503_v13 = vpop.f32.mrf.mxu3  ;;  %v1203_v10 = vpop.f32.mrf.mxu1  ;;  %v6148_v32 = vld [vmem:[#allocation2 + $0xc4] sm:$0xff]  ;;  %8066 = vst [vmem:[#allocation27_spill] sm:$0xff] %v7187_v14  ;;  %v744_v57 = vshll.u32 %v7172_v5, 16  ;;  %v752_v18 = vrot.slane %v750_v29, 7  ;;  %v1651_v50 = vshll.u32 %v1309_v59, 16 }
 0x150   : > { %v1204_v11 = vadd.f32 %v1203_v10, %v7015_v24  ;;  %v1641_v24 = vshll.u32 %v1308_v2, 16  ;;  %v736_v10 = vshrl.u32 %v437_v19, 16  ;;  %v743_v2 = vrot.slane %v741_v43, 7  ;;  %v1310_v5 = vld [vmem:[#allocation2 + $0xe4] sm:$0xf] }
 0x151   : > { %v2576_v63 = vadd.f32 %v2503_v13, %v1926_v16  ;;  %v1647_v16 = vrot.slane %v1645_v45, 4  ;;  %v2295_v45 = vrot.slane %v2293_v3, 7  ;;  %v2304_v43 = vrot.slane %v2302_v6, 7 }
 0x152   : > { %v7176_v30 = vpop.f32.mrf.mxu0  ;;  %1242 = vmatmul.bf16.gmra.mxu1 %v1110_v53  ;;  %v7189_v53 = vunpack.c.l.b16 %v1630_v46  ;;  %v7197_v22 = vrot.slane %v1641_v24, 5  ;;  %v441_v24 = vld [vmem:[#allocation2 + $0xe4] sm:$0xf]  ;;  %v2305_v19 = vshll.u32 %v1994_v36, 16  ;;  %v2395_v29 = vunpack.c.l.b16 %v2286_v33 }
 0x153   : > { %1895 = vmatmul.bf16.gmra.mxu2 %v1763_v34  ;;  %v1637_v34 = vrot.slane %v1635_v35, 5  ;;  %v7191_v8 = vadd.f32 %v2785_v25, %v2576_v63  ;;  %v753_v63 = vshll.u32 %v7174_v39, 16  ;;  %v2394_v35 = vunpack.c.l.b16 %v2277_v0 }
 0x154   : > { %2545 = vmatmul.bf16.gmra.mxu3 %v2413_v60  ;;  %v1992_v60 = vld [vmem:[#allocation2 + $0xe0] sm:$0x8]  ;;  %v1648_v46 = vor.u32 %v1647_v16, %v7197_v22  ;;  %v748_v39 = vrot.slane %v743_v2, 4  ;;  %v1653_v59 = vrot.slane %v1651_v50, 5  ;;  %v318_v50 = vld [vmem:[%s6751_s3 + $0x78] sm:$0xff]  }
 0x155   : > { %2827 = vmatmul.bf16.gmra.mxu0 %v6148_v32  ;;  %8067 = vst [vmem:[#allocation28_spill] sm:$0xff] %v7191_v8  ;;  %v1638_v32 = vor.u32 %v1637_v34, %v1634_v20  ;;  %v2288_v47 = vshrl.u32 %v1992_v60, 16  ;;  %v755_v20 = vor.u32 %v753_v63, %v752_v18  ;;  %v1656_v60 = vshrl.u32 %v1310_v5, 16 }
 0x156   : > { %v1856_v15 = vpop.f32.mrf.mxu2  ;;  %v1649_v0 = vrot.slane %v1648_v46, 4  ;;  %v6149_v46 = vld [vmem:[#allocation2 + $0xd4] sm:$0xff]  ;;  %396 = vst [vmem:[#allocation2 + $0x104] sm:$0xff] %v318_v50  }
 0x157   : > { %v1927_v27 = vadd.f32 %v1856_v15, %v1204_v11  ;;  %v2506_v9 = vpop.f32.mrf.mxu3  ;;  %v1205_v13 = vpop.f32.mrf.mxu1  ;;  %v1764_v11 = vpack.c.b16 %v7189_v53, %v7184_v41  ;;  %v5574_v15 = vrot.slane %v736_v10, 11  ;;  %v1639_v34 = vrot.slane %v1638_v32, 4  ;;  %v1311_v32 = vld [vmem:[#allocation2 + $0xe8] sm:$0xf] }
 0x158   : > { %v1206_v25 = vadd.f32 %v1205_v13, %v7039_v21  ;;  %v2296_v21 = vshll.u32 %v1993_v52, 16  ;;  %v763_v41 = vshrl.u32 %v441_v24, 16  ;;  %v5750_v16 = vrot.slane %v2288_v47, 11  ;;  %v440_v13 = vld [vmem:[#allocation2 + $0xe0] sm:$0x8] }
 0x159   : > { %v2577_v28 = vadd.f32 %v2506_v9, %v1927_v27  ;;  %v746_v27 = vor.u32 %v744_v57, %v743_v2  ;;  %v7205_v9 = vld [vmem:[#allocation2 + $0xe8] sm:$0xf]  ;;  %v1659_v52 = vshll.u32 %v1310_v5, 16  ;;  %v2300_v10 = vrot.slane %v2295_v45, 4 }
 0x15a   : > { %v2790_v44 = vpop.f32.mrf.mxu0  ;;  %v2298_v33 = vor.u32 %v2296_v21, %v2295_v45  ;;  %v2307_v57 = vor.u32 %v2305_v19, %v2304_v43  ;;  %v2414_v2 = vpack.c.b16 %v2395_v29, %v2394_v35  ;;  %v772_v63 = vshrl.u32 %v7205_v9, 16 }
 0x15b   : > { %v747_v18 = vsel %vm6825_vm4, %v5574_v15, %v746_v27  ;;  %v758_v47 = vshrl.u32 %v440_v13, 16  ;;  %v7211_v14 = vrot.slane %v763_v41, 7  ;;  %v766_v5 = vshll.u32 %v441_v24, 16 }
 0x15c   : > { %v756_v35 = vsel %vm6825_vm4, %v748_v39, %v755_v20  ;;  %v1644_v45 = vsel %vm6829_vm5, %v1639_v34, %v7197_v22  ;;  %v1658_v21 = vrot.slane %v1656_v60, 4  ;;  %v1661_v43 = vrot.slane %v1659_v52, 5  ;;  %v6193_v39 = vld [vmem:[#allocation8 + $0x180] sm:$0xff]  ;;  %v1996_v52 = vld [vmem:[#allocation2 + $0xf4] sm:$0xf] }
 0x15d   : > { %v1654_v19 = vsel %vm6829_vm5, %v1649_v0, %v1653_v59  ;;  %v2299_v24 = vsel %vm6825_vm4, %v5750_v16, %v2298_v33  ;;  %v2308_v29 = vsel %vm6825_vm4, %v2300_v10, %v2307_v57  ;;  %v774_v15 = vrot.slane %v772_v63, 7  ;;  %4104 = vmatpush.bf16.msra.mxu2 %v6193_v39  ;;  %v1312_v33 = vld [vmem:[#allocation2 + $0xec] sm:$0x1]  ;;  %v1997_v57 = vld [vmem:[#allocation2 + $0xf8] sm:$0xf] }
 0x15e   : > { %v1858_v53 = vpop.f32.mrf.mxu2  ;;  %v775_v27 = vshll.u32 %v7205_v9, 16  ;;  %v7229_v22 = vadd.f32 %v7176_v30, %v2577_v28  ;;  %v5575_v34 = vrot.slane %v758_v47, 11  ;;  %v768_v59 = vor.u32 %v766_v5, %v7211_v14  ;;  %v1313_v39 = vld [vmem:[#allocation2 + $0xf4] sm:$0xf] }
 0x15f   : > { %v1928_v3 = vadd.f32 %v1858_v53, %v1206_v25  ;;  %v2508_v36 = vpop.f32.mrf.mxu3  ;;  %v1208_v6 = vpop.f32.mrf.mxu1  ;;  %v1669_v41 = vshrl.u32 %v1311_v32, 16  ;;  %v6201_v53 = vld [vmem:[#allocation8 + $0x1c0] sm:$0xff]  ;;  %v1093_v16 = vunpack.c.l.b16 %v747_v18  ;;  %v1094_v13 = vunpack.c.l.b16 %v756_v35 }
 0x160   : > { %v7235_v60 = vunpack.c.l.b16 %v1644_v45  ;;  %v1662_v9 = vor.u32 %v1661_v43, %v1658_v21  ;;  %4386 = vmatpush.bf16.msra.mxu3 %v6201_v53  ;;  %v769_v18 = vsel %vm6825_vm4, %v5575_v34, %v768_v59  ;;  %v2315_v50 = vshrl.u32 %v1996_v52, 16  ;;  %v6209_v35 = vld [vmem:[#allocation8 + $0x200] sm:$0xff]  ;;  %v1314_v53 = vld [vmem:[#allocation2 + $0xf8] sm:$0xf] }
 0x161   : > { %v2578_v8 = vadd.f32 %v2508_v36, %v1928_v3  ;;  %v2397_v3 = vunpack.c.l.b16 %v2308_v29  ;;  %v770_v36 = vrot.slane %v7211_v14, 4  ;;  %v1671_v63 = vrot.slane %v1669_v41, 4  ;;  %5068 = vmatpush.bf16.msra.mxu0 %v6209_v35 }
 0x162   : > { %v7213_v25 = vpop.f32.mrf.mxu0  ;;  %1247 = vmatmul.bf16.gmra.mxu1 %v7182_v62  ;;  %v1665_v62 = vshll.u32 %v1311_v32, 16  ;;  %v1995_v32 = vld [vmem:[#allocation2 + $0xf0] sm:$0x8]  ;;  %v7248_v5 = vrot.slane %v1662_v9, 4  ;;  %v1112_v14 = vpack.c.b16 %v1094_v13, %v1093_v16  ;;  %v2324_v43 = vshrl.u32 %v1997_v57, 16 }
 0x163   : > { %1900 = vmatmul.bf16.gmra.mxu2 %v1764_v11  ;;  %v7231_v20 = vadd.f32 %v2790_v44, %v2578_v8  ;;  %v1209_v11 = vadd.f32 %v1208_v6, %v6909_v37  ;;  %v7237_v44 = vunpack.c.l.b16 %v1654_v19  ;;  %v2396_v37 = vunpack.c.l.b16 %v2299_v24  ;;  %v444_v19 = vld [vmem:[#allocation2 + $0xf4] sm:$0xf]  ;;  %v445_v24 = vld [vmem:[#allocation2 + $0xf8] sm:$0xf] }
 0x164   : > { %2550 = vmatmul.bf16.gmra.mxu3 %v2414_v2  ;;  %v777_v6 = vor.u32 %v775_v27, %v774_v15  ;;  %v7240_v10 = vrot.slane %v1665_v62, 5  ;;  %v7256_v62 = vunpack.c.l.b16 %v769_v18  ;;  %v1675_v15 = vshll.u32 %v1312_v33, 16 }
 0x165   : > { %8068 = vst [vmem:[#allocation29_spill] sm:$0xff] %v7231_v20  ;;  %2832 = vmatmul.bf16.gmra.mxu0 %v6149_v46  ;;  %v6169_v46 = vld [vmem:[#allocation8 + $0x140] sm:$0xff]  ;;  %v1765_v45 = vpack.c.b16 %v7237_v44, %v7235_v60  ;;  %v2415_v21 = vpack.c.b16 %v2397_v3, %v2396_v37  ;;  %v2310_v27 = vshrl.u32 %v1995_v32, 16  ;;  %v2317_v59 = vrot.slane %v2315_v50, 7  ;;  %v443_v60 = vld [vmem:[#allocation2 + $0xf0] sm:$0x8] }
 0x166   : > { %v1861_v0 = vpop.f32.mrf.mxu2  ;;  %3453 = vmatpush.bf16.msra.mxu1 %v6169_v46  ;;  %v7254_v29 = vsel %vm6825_vm4, %v770_v36, %v777_v6  ;;  %v1672_v34 = vor.u32 %v1671_v63, %v7240_v10  ;;  %v2318_v41 = vshll.u32 %v1996_v52, 16  ;;  %v1668_v16 = vsel %vm6829_vm5, %v7248_v5, %v7240_v10  ;;  %v6150_v63 = vld [vmem:[#allocation2 + $0xe4] sm:$0xff] }
 0x167   : > { %v1929_v30 = vadd.f32 %v1861_v0, %v1209_v11  ;;  %v2511_v28 = vpop.f32.mrf.mxu3  ;;  %v1210_v8 = vpop.f32.mrf.mxu1  ;;  %v2327_v13 = vshll.u32 %v1997_v57, 16  ;;  %v785_v9 = vshrl.u32 %v444_v19, 16  ;;  %v2326_v3 = vrot.slane %v2324_v43, 7  ;;  %v1999_v10 = vld [vmem:[#allocation2 + $0x104] sm:$0xf] }
 0x168   : > { %v1211_v11 = vadd.f32 %v1210_v8, %v6926_v7  ;;  %v1680_v7 = vshrl.u32 %v1313_v39, 16  ;;  %v1683_v8 = vshll.u32 %v1313_v39, 16  ;;  %v1677_v36 = vrot.slane %v1675_v15, 5  ;;  %v1315_v15 = vld [vmem:[#allocation2 + $0xfc] sm:$0x1] }
 0x169   : > { %v7242_v2 = vadd.f32 %v2511_v28, %v1929_v30  ;;  %v794_v30 = vshrl.u32 %v445_v24, 16  ;;  %v5751_v6 = vrot.slane %v2310_v27, 11  ;;  %v1689_v52 = vshll.u32 %v1314_v53, 16 }
 0x16a   : > { %v7246_v47 = vpop.f32.mrf.mxu0  ;;  %v1693_v33 = vshrl.u32 %v1314_v53, 16  ;;  %v1673_v32 = vrot.slane %v1672_v34, 4  ;;  %v2320_v50 = vor.u32 %v2318_v41, %v2317_v59  ;;  %v780_v46 = vshrl.u32 %v443_v60, 16  ;;  %v1998_v41 = vld [vmem:[#allocation2 + $0x100] sm:$0x8] }
 0x16b   : > { %v787_v5 = vrot.slane %v785_v9, 7  ;;  %v788_v35 = vshll.u32 %v444_v19, 16  ;;  %v2322_v43 = vrot.slane %v2317_v59, 4  ;;  %v2329_v39 = vor.u32 %v2327_v13, %v2326_v3 }
 0x16c   : > { %v1682_v27 = vrot.slane %v1680_v7, 4  ;;  %v1685_v20 = vrot.slane %v1683_v8, 5  ;;  %v7266_v53 = vrot.slane %v1689_v52, 5  ;;  %v1695_v34 = vrot.slane %v1693_v33, 4 }
 0x16d   : > { %v2337_v60 = vshrl.u32 %v1999_v10, 16  ;;  %v2321_v19 = vsel %vm6825_vm4, %v5751_v6, %v2320_v50  ;;  %v5576_v59 = vrot.slane %v780_v46, 11  ;;  %v790_v13 = vor.u32 %v788_v35, %v787_v5 }
 0x16e   : > { %v1863_v0 = vpop.f32.mrf.mxu2  ;;  %v792_v9 = vrot.slane %v787_v5, 4  ;;  %v1686_v3 = vor.u32 %v1685_v20, %v1682_v27  ;;  %v2332_v7 = vshrl.u32 %v1998_v41, 16  ;;  %v2330_v8 = vsel %vm6825_vm4, %v2322_v43, %v2329_v39  ;;  %v2886_v39 = vld [vmem:[#allocation2 + $0x18] sm:$0xf] }
 0x16f   : > { %v1930_v28 = vadd.f32 %v1863_v0, %v1211_v11  ;;  %v2513_v44 = vpop.f32.mrf.mxu3  ;;  %v1213_v37 = vpop.f32.mrf.mxu1  ;;  %v796_v11 = vrot.slane %v794_v30, 7  ;;  %v797_v0 = vshll.u32 %v445_v24, 16  ;;  %v7283_v6 = vrot.slane %v2337_v60, 7 }
 0x170   : > { %v1096_v33 = vunpack.c.l.b16 %v7254_v29  ;;  %v2398_v20 = vunpack.c.l.b16 %v2321_v19  ;;  %v791_v46 = vsel %vm6825_vm4, %v5576_v59, %v790_v13  ;;  %v2943_v59 = vshll.u32 %v2886_v39, 16 }
 0x171   : > { %v2580_v18 = vadd.f32 %v2513_v44, %v1930_v28  ;;  %v7270_v28 = vadd.f32 %v7213_v25, %v7242_v2  ;;  %v799_v30 = vor.u32 %v797_v0, %v796_v11  ;;  %v2399_v11 = vunpack.c.l.b16 %v2330_v8 }
 0x172   : > { %v7264_v57 = vpop.f32.mrf.mxu0  ;;  %1252 = vmatmul.bf16.gmra.mxu1 %v1112_v14  ;;  %v1214_v14 = vadd.f32 %v1213_v37, %v6940_v58  ;;  %v1699_v58 = vshll.u32 %v1315_v15, 16  ;;  %v2000_v37 = vld [vmem:[#allocation2 + $0x108] sm:$0xf]  ;;  %v1687_v0 = vrot.slane %v1686_v3, 4  ;;  %v1113_v41 = vpack.c.b16 %v1096_v33, %v7256_v62  ;;  %v6151_v33 = vld [vmem:[#allocation2 + $0xf4] sm:$0xff] }
 0x173   : > { %1905 = vmatmul.bf16.gmra.mxu2 %v1765_v45  ;;  %v1678_v45 = vsel %vm6829_vm5, %v1673_v32, %v1677_v36  ;;  %v1696_v36 = vor.u32 %v1695_v34, %v7266_v53  ;;  %v2885_v32 = vld [vmem:[#allocation2 + $0x14] sm:$0xf]  ;;  %v800_v5 = vsel %vm6825_vm4, %v792_v9, %v799_v30  ;;  %v2346_v35 = vshrl.u32 %v2000_v37, 16  ;;  %v7295_v9 = vld [vmem:[#allocation2 + $0x24] sm:$0xf] }
 0x174   : > { %2555 = vmatmul.bf16.gmra.mxu3 %v2415_v21  ;;  %v7278_v21 = vadd.f32 %v7246_v47, %v2580_v18  ;;  %v2340_v47 = vshll.u32 %v1999_v10, 16  ;;  %v1748_v18 = vunpack.c.l.b16 %v1668_v16  ;;  %v1701_v43 = vrot.slane %v1699_v58, 5 }
 0x175   : > { %2837 = vmatmul.bf16.gmra.mxu0 %v6150_v63  ;;  %v1749_v63 = vunpack.c.l.b16 %v1678_v45  ;;  %v5752_v10 = vrot.slane %v2332_v7, 11  ;;  %v1697_v15 = vrot.slane %v1696_v36, 4  ;;  %v2934_v16 = vshrl.u32 %v2885_v32, 16  ;;  %v3568_v36 = vld [vmem:[#allocation2 + $0x20] sm:$0x8] }
 0x176   : > { %v1866_v24 = vpop.f32.mrf.mxu2  ;;  %v2342_v29 = vor.u32 %v2340_v47, %v7283_v6  ;;  %v2937_v27 = vshll.u32 %v2885_v32, 16  ;;  %v1097_v60 = vunpack.c.l.b16 %v791_v46  ;;  %v2348_v19 = vrot.slane %v2346_v35, 7 }
 0x177   : > { %v1931_v44 = vadd.f32 %v1866_v24, %v1214_v14  ;;  %v2516_v25 = vpop.f32.mrf.mxu3  ;;  %v1215_v2 = vpop.f32.mrf.mxu1  ;;  %v1098_v14 = vunpack.c.l.b16 %v800_v5  ;;  %v2349_v24 = vshll.u32 %v2000_v37, 16  ;;  %v2947_v13 = vshrl.u32 %v2886_v39, 16  ;;  %v2887_v37 = vld [vmem:[#allocation2 + $0x1c] sm:$0x1] }
 0x178   : > { %v1216_v34 = vadd.f32 %v1215_v2, %v6953_v31  ;;  %v1766_v3 = vpack.c.b16 %v1749_v63, %v1748_v18  ;;  %v2416_v58 = vpack.c.b16 %v2399_v11, %v2398_v20  ;;  %v1692_v31 = vsel %vm6829_vm5, %v1687_v0, %v7266_v53  ;;  %v3570_v11 = vld [vmem:[#allocation2 + $0x28] sm:$0xf]  ;;  %v4500_v0 = vld [vmem:[#allocation2 + $0x24] sm:$0xf] }
 0x179   : > { %v7285_v52 = vadd.f32 %v2516_v25, %v1931_v44  ;;  %v1702_v62 = vsel %vm6829_vm5, %v1697_v15, %v1701_v43  ;;  %v2343_v2 = vsel %vm6825_vm4, %v5752_v10, %v2342_v29  ;;  %v2936_v7 = vrot.slane %v2934_v16, 4  ;;  %v4501_v15 = vld [vmem:[#allocation2 + $0x28] sm:$0xf] }
 0x17a   : > { %v2800_v50 = vpop.f32.mrf.mxu0  ;;  %v2939_v8 = vrot.slane %v2937_v27, 5  ;;  %v7304_v32 = vpack.c.b16 %v1098_v14, %v1097_v60  ;;  %v2344_v18 = vrot.slane %v7283_v6, 4  ;;  %v3622_v63 = vshrl.u32 %v7295_v9, 16 }
 0x17b   : > { %v7310_v53 = vunpack.c.l.b16 %v1692_v31  ;;  %v2351_v46 = vor.u32 %v2349_v24, %v2348_v19  ;;  %v7312_v5 = vrot.slane %v2943_v59, 5  ;;  %v2949_v35 = vrot.slane %v2947_v13, 4 }
 0x17c   : > { %v7314_v43 = vunpack.c.l.b16 %v1702_v62  ;;  %v7316_v10 = vunpack.c.l.b16 %v2343_v2  ;;  %v2953_v39 = vshll.u32 %v2887_v37, 16  ;;  %v3617_v6 = vshrl.u32 %v3568_v36, 16 }
 0x17d   : > { %v2940_v29 = vor.u32 %v2939_v8, %v2936_v7  ;;  %v3625_v16 = vshll.u32 %v7295_v9, 16  ;;  %v7321_v27 = vadd.f32 %v7264_v57, %v7285_v52  ;;  %v7326_v60 = vrot.slane %v3622_v63, 7  ;;  %v2889_v57 = vld [vmem:[#allocation2 + $0x28] sm:$0xf] }
 0x17e   : > { %v1868_v45 = vpop.f32.mrf.mxu2  ;;  %v3631_v14 = vshrl.u32 %v3570_v11, 16  ;;  %v2352_v24 = vsel %vm6825_vm4, %v2344_v18, %v2351_v46  ;;  %v2950_v59 = vor.u32 %v2949_v35, %v7312_v5  ;;  %v4552_v13 = vshll.u32 %v4500_v0, 16  ;;  %v4502_v35 = vld [vmem:[#allocation2 + $0x2c] sm:$0x1] }
 0x17f   : > { %v1932_v30 = vadd.f32 %v1868_v45, %v1216_v34  ;;  %v2518_v44 = vpop.f32.mrf.mxu3  ;;  %v1218_v25 = vpop.f32.mrf.mxu1  ;;  %v4549_v45 = vshrl.u32 %v4500_v0, 16  ;;  %v4558_v9 = vshll.u32 %v4501_v15, 16  ;;  %v5913_v31 = vrot.slane %v3617_v6, 11 }
 0x180   : > { %v2967_v62 = vshll.u32 %v2889_v57, 16  ;;  %v2971_v2 = vshrl.u32 %v2889_v57, 16  ;;  %v2941_v7 = vrot.slane %v2940_v29, 4  ;;  %v3633_v8 = vrot.slane %v3631_v14, 7 }
 0x181   : > { %v2582_v47 = vadd.f32 %v2518_v44, %v1932_v30  ;;  %v2888_v30 = vld [vmem:[#allocation2 + $0x24] sm:$0xf]  ;;  %v3634_v36 = vshll.u32 %v3570_v11, 16  ;;  %v3627_v18 = vor.u32 %v3625_v16, %v7326_v60  ;;  %v4551_v63 = vrot.slane %v4549_v45, 4 }
 0x182   : > { %v7308_v20 = vpop.f32.mrf.mxu0  ;;  %1257 = vmatmul.bf16.gmra.mxu1 %v1113_v41  ;;  %v1219_v41 = vadd.f32 %v1218_v25, %v6973_v17  ;;  %v2958_v17 = vshrl.u32 %v2888_v30, 16  ;;  %v2961_v25 = vshll.u32 %v2888_v30, 16  ;;  %v4554_v46 = vrot.slane %v4552_v13, 5  ;;  %v2890_v30 = vld [vmem:[#allocation2 + $0x2c] sm:$0x1] }
 0x183   : > { %1910 = vmatmul.bf16.gmra.mxu2 %v1766_v3  ;;  %v7323_v34 = vadd.f32 %v2800_v50, %v2582_v47  ;;  %v4562_v3 = vshrl.u32 %v4501_v15, 16  ;;  %v7334_v0 = vrot.slane %v4558_v9, 5  ;;  %v1767_v6 = vpack.c.b16 %v7314_v43, %v7310_v53  ;;  %v7345_v13 = vld [vmem:[#allocation2 + $0x34] sm:$0xf] }
 0x184   : > { %2560 = vmatmul.bf16.gmra.mxu3 %v2416_v58  ;;  %v2955_v58 = vrot.slane %v2953_v39, 5  ;;  %v2963_v39 = vrot.slane %v2961_v25, 5  ;;  %v7338_v29 = vrot.slane %v2967_v62, 5  ;;  %v2973_v11 = vrot.slane %v2971_v2, 4  ;;  %v3571_v25 = vld [vmem:[#allocation2 + $0x30] sm:$0x8] }
 0x185   : > { %2842 = vmatmul.bf16.gmra.mxu0 %v6151_v33  ;;  %v2951_v33 = vrot.slane %v2950_v59, 4  ;;  %v4564_v15 = vrot.slane %v4562_v3, 4  ;;  %v2946_v16 = vsel %vm6829_vm5, %v2941_v7, %v7312_v5  ;;  %v3629_v45 = vrot.slane %v7326_v60, 4  ;;  %v6152_v2 = vld [vmem:[#allocation2 + $0x104] sm:$0xff] }
 0x186   : > { %v1871_v19 = vpop.f32.mrf.mxu2  ;;  %v3636_v59 = vor.u32 %v3634_v36, %v3633_v8  ;;  %v3628_v43 = vsel %vm6825_vm4, %v5913_v31, %v3627_v18  ;;  %v4568_v57 = vshll.u32 %v4502_v35, 16  ;;  %v2977_v3 = vshll.u32 %v2890_v30, 16  ;;  %v3573_v8 = vld [vmem:[#allocation2 + $0x38] sm:$0xf] }
 0x187   : > { %v1933_v52 = vadd.f32 %v1871_v19, %v1219_v41  ;;  %v2521_v50 = vpop.f32.mrf.mxu3  ;;  %v1220_v44 = vpop.f32.mrf.mxu1  ;;  %v2960_v41 = vrot.slane %v2958_v17, 4  ;;  %v2401_v19 = vunpack.c.l.b16 %v2352_v24  ;;  %v2956_v53 = vsel %vm6829_vm5, %v2951_v33, %v2955_v58 }
 0x188   : > { %v1221_v14 = vadd.f32 %v1220_v44, %v6998_v1  ;;  %v4555_v24 = vor.u32 %v4554_v46, %v4551_v63  ;;  %v4565_v44 = vor.u32 %v4564_v15, %v7334_v0  ;;  %v2974_v17 = vor.u32 %v2973_v11, %v7338_v29  ;;  %v4503_v46 = vld [vmem:[#allocation2 + $0x34] sm:$0xf] }
 0x189   : > { %v7331_v37 = vadd.f32 %v2521_v50, %v1933_v52  ;;  %v2964_v5 = vor.u32 %v2963_v39, %v2960_v41  ;;  %v2417_v60 = vpack.c.b16 %v2401_v19, %v7316_v10  ;;  %v3644_v62 = vshrl.u32 %v7345_v13, 16  ;;  %v4504_v19 = vld [vmem:[#allocation2 + $0x38] sm:$0xf] }
 0x18a   : > { %v2805_v47 = vpop.f32.mrf.mxu0  ;;  %v7355_v7 = vunpack.c.l.b16 %v2946_v16  ;;  %v7357_v31 = vunpack.c.l.b16 %v2956_v53  ;;  %v3637_v33 = vsel %vm6825_vm4, %v3629_v45, %v3636_v59  ;;  %v3985_v10 = vunpack.c.l.b16 %v3628_v43 }
 0x18b   : > { %v4556_v18 = vrot.slane %v4555_v24, 4  ;;  %v4570_v63 = vrot.slane %v4568_v57, 5  ;;  %v4566_v35 = vrot.slane %v4565_v44, 4  ;;  %v2965_v15 = vrot.slane %v2964_v5, 4 }
 0x18c   : > { %v2979_v41 = vrot.slane %v2977_v3, 5  ;;  %v3639_v39 = vshrl.u32 %v3571_v25, 16  ;;  %v2975_v30 = vrot.slane %v2974_v17, 4  ;;  %v7364_v11 = vrot.slane %v3644_v62, 7 }
 0x18d   : > { %v4573_v45 = vshrl.u32 %v4503_v46, 16  ;;  %v7370_v59 = vadd.f32 %v7308_v20, %v7331_v37  ;;  %v3986_v53 = vunpack.c.l.b16 %v3637_v33  ;;  %v4576_v43 = vshll.u32 %v4503_v46, 16  ;;  %v2891_v37 = vld [vmem:[#allocation2 + $0x34] sm:$0xf] }
 0x18e   : > { %v1873_v9 = vpop.f32.mrf.mxu2  ;;  %v4582_v24 = vshll.u32 %v4504_v19, 16  ;;  %v4586_v57 = vshrl.u32 %v4504_v19, 16  ;;  %v4571_v20 = vsel %vm6829_vm5, %v4566_v35, %v4570_v63  ;;  %v3656_v3 = vshll.u32 %v3573_v8, 16 }
 0x18f   : > { %v1934_v52 = vadd.f32 %v1873_v9, %v1221_v14  ;;  %v2523_v1 = vpop.f32.mrf.mxu3  ;;  %v1223_v50 = vpop.f32.mrf.mxu1  ;;  %v3647_v14 = vshll.u32 %v7345_v13, 16  ;;  %v3366_v13 = vpack.c.b16 %v7357_v31, %v7355_v7  ;;  %v2980_v25 = vsel %vm6829_vm5, %v2975_v30, %v2979_v41 }
 0x190   : > { %v1224_v16 = vadd.f32 %v1223_v50, %v7013_v49  ;;  %v4561_v49 = vsel %vm6829_vm5, %v4556_v18, %v7334_v0  ;;  %v5914_v50 = vrot.slane %v3639_v39, 11  ;;  %v4575_v0 = vrot.slane %v4573_v45, 4  ;;  %v4505_v18 = vld [vmem:[#allocation2 + $0x3c] sm:$0x1] }
 0x191   : > { %v2584_v58 = vadd.f32 %v2523_v1, %v1934_v52  ;;  %v3649_v62 = vor.u32 %v3647_v14, %v7364_v11  ;;  %v7391_v7 = vrot.slane %v4582_v24, 5  ;;  %v4588_v31 = vrot.slane %v4586_v57, 4 }
 0x192   : > { %v7359_v36 = vpop.f32.mrf.mxu0  ;;  %1262 = vmatmul.bf16.gmra.mxu1 %v7304_v32  ;;  %v3653_v32 = vshrl.u32 %v3573_v8, 16  ;;  %v2982_v33 = vshrl.u32 %v2891_v37, 16  ;;  %v2985_v63 = vshll.u32 %v2891_v37, 16  ;;  %v4949_v35 = vunpack.c.l.b16 %v4561_v49 }
 0x193   : > { %1915 = vmatmul.bf16.gmra.mxu2 %v1767_v6  ;;  %v7372_v6 = vadd.f32 %v2805_v47, %v2584_v58  ;;  %v2970_v47 = vsel %vm6829_vm5, %v2965_v15, %v7338_v29  ;;  %v4017_v29 = vpack.c.b16 %v3986_v53, %v3985_v10  ;;  %v4950_v15 = vunpack.c.l.b16 %v4571_v20  ;;  %v3576_v10 = vld [vmem:[#allocation2 + $0x48] sm:$0xf] }
 0x194   : > { %2565 = vmatmul.bf16.gmra.mxu3 %v2417_v60  ;;  %v3655_v5 = vrot.slane %v3653_v32, 7  ;;  %v2892_v60 = vld [vmem:[#allocation2 + $0x38] sm:$0xf]  ;;  %v3651_v39 = vrot.slane %v7364_v11, 4  ;;  %v7395_v30 = vunpack.c.l.b16 %v2970_v47  ;;  %v7397_v14 = vunpack.c.l.b16 %v2980_v25  ;;  %v6177_v20 = vld [vmem:[#allocation2 + $0x24] sm:$0xff] }
 0x195   : > { %2847 = vmatmul.bf16.gmra.mxu0 %v6152_v2  ;;  %v4578_v2 = vrot.slane %v4576_v43, 5  ;;  %v2991_v8 = vshll.u32 %v2892_v60, 16  ;;  %v2995_v46 = vshrl.u32 %v2892_v60, 16  ;;  %v3650_v32 = vsel %vm6825_vm4, %v5914_v50, %v3649_v62  ;;  %v3574_v47 = vld [vmem:[#allocation2 + $0x40] sm:$0x8] }
 0x196   : > { %v1876_v9 = vpop.f32.mrf.mxu2  ;;  %v3658_v41 = vor.u32 %v3656_v3, %v3655_v5  ;;  %v4589_v53 = vor.u32 %v4588_v31, %v7391_v7  ;;  %v4592_v43 = vshll.u32 %v4505_v18, 16  ;;  %v2984_v24 = vrot.slane %v2982_v33, 4 }
 0x197   : > { %v1935_v52 = vadd.f32 %v1876_v9, %v1224_v16  ;;  %v2526_v1 = vpop.f32.mrf.mxu3  ;;  %v1225_v44 = vpop.f32.mrf.mxu1  ;;  %v3575_v16 = vld [vmem:[#allocation2 + $0x44] sm:$0xf]  ;;  %v4579_v9 = vor.u32 %v4578_v2, %v4575_v0  ;;  %v2997_v49 = vrot.slane %v2995_v46, 4  ;;  %v3675_v5 = vshrl.u32 %v3576_v10, 16 }
 0x198   : > { %v1226_v19 = vadd.f32 %v1225_v44, %v7027_v40  ;;  %v2987_v40 = vrot.slane %v2985_v63, 5  ;;  %v7402_v44 = vrot.slane %v2991_v8, 5  ;;  %v3659_v37 = vsel %vm6825_vm4, %v3651_v39, %v3658_v41  ;;  %v4506_v63 = vld [vmem:[#allocation2 + $0x44] sm:$0xf] }
 0x199   : > { %v7384_v17 = vadd.f32 %v2526_v1, %v1935_v52  ;;  %v2893_v1 = vld [vmem:[#allocation2 + $0x3c] sm:$0x1]  ;;  %v3666_v50 = vshrl.u32 %v3575_v16, 16  ;;  %v4981_v60 = vpack.c.b16 %v4950_v15, %v4949_v35  ;;  %v3367_v25 = vpack.c.b16 %v7397_v14, %v7395_v30 }
 0x19a   : > { %v7389_v58 = vpop.f32.mrf.mxu0  ;;  %v3987_v62 = vunpack.c.l.b16 %v3650_v32  ;;  %v4580_v2 = vrot.slane %v4579_v9, 4  ;;  %v4590_v31 = vrot.slane %v4589_v53, 4  ;;  %v4594_v33 = vrot.slane %v4592_v43, 5 }
 0x19b   : > { %v3001_v18 = vshll.u32 %v2893_v1, 16  ;;  %v3988_v8 = vunpack.c.l.b16 %v3659_v37  ;;  %v2988_v46 = vor.u32 %v2987_v40, %v2984_v24  ;;  %v2998_v39 = vor.u32 %v2997_v49, %v7402_v44 }
 0x19c   : > { %v3661_v41 = vshrl.u32 %v3574_v47, 16  ;;  %v3668_v35 = vrot.slane %v3666_v50, 7  ;;  %v3669_v15 = vshll.u32 %v3575_v16, 16  ;;  %v4597_v9 = vshrl.u32 %v4506_v63, 16  ;;  %v2895_v50 = vld [vmem:[#allocation2 + $0x48] sm:$0xf] }
 0x19d   : > { %v4600_v53 = vshll.u32 %v4506_v63, 16  ;;  %v7414_v43 = vadd.f32 %v7359_v36, %v7384_v17  ;;  %v4585_v24 = vsel %vm6829_vm5, %v4580_v2, %v7391_v7  ;;  %v4595_v16 = vsel %vm6829_vm5, %v4590_v31, %v4594_v33  ;;  %v2894_v36 = vld [vmem:[#allocation2 + $0x44] sm:$0xf]  ;;  %v4508_v33 = vld [vmem:[#allocation2 + $0x4c] sm:$0x1] }
 0x19e   : > { %v1878_v45 = vpop.f32.mrf.mxu2  ;;  %v2989_v1 = vrot.slane %v2988_v46, 4  ;;  %v2999_v40 = vrot.slane %v2998_v39, 4  ;;  %v5915_v49 = vrot.slane %v3661_v41, 11  ;;  %v3671_v17 = vor.u32 %v3669_v15, %v3668_v35 }
 0x19f   : > { %v1936_v57 = vadd.f32 %v1878_v45, %v1226_v19  ;;  %v2528_v11 = vpop.f32.mrf.mxu3  ;;  %v1228_v52 = vpop.f32.mrf.mxu1  ;;  %v3677_v19 = vrot.slane %v3675_v5, 7  ;;  %v3678_v45 = vshll.u32 %v3576_v10, 16  ;;  %v4599_v5 = vrot.slane %v4597_v9, 4 }
 0x1a0   : > { %v1229_v32 = vadd.f32 %v1228_v52, %v6913_v61  ;;  %v3009_v63 = vshll.u32 %v2894_v36, 16  ;;  %v4018_v46 = vpack.c.b16 %v3988_v8, %v3987_v62  ;;  %v2994_v39 = vsel %vm6829_vm5, %v2989_v1, %v7402_v44 }
 0x1a1   : > { %v2586_v3 = vadd.f32 %v2528_v11, %v1936_v57  ;;  %v3003_v57 = vrot.slane %v3001_v18, 5  ;;  %v3680_v37 = vor.u32 %v3678_v45, %v3677_v19  ;;  %v3006_v18 = vshrl.u32 %v2894_v36, 16 }
 0x1a2   : > { %v7408_v0 = vpop.f32.mrf.mxu0  ;;  %3454 = vmatmul.bf16.vlgmr.msra.gmra.mxu1 %v3366_v13  ;;  %v4507_v13 = vld [vmem:[#allocation2 + $0x48] sm:$0xf]  ;;  %v3015_v41 = vshll.u32 %v2895_v50, 16  ;;  %v3672_v19 = vsel %vm6825_vm4, %v5915_v49, %v3671_v17  ;;  %v4616_v44 = vshll.u32 %v4508_v33, 16 }
 0x1a3   : > { %4105 = vmatmul.bf16.vlgmr.msra.gmra.mxu2 %v4017_v29  ;;  %v7422_v10 = vadd.f32 %v7389_v58, %v2586_v3  ;;  %v4606_v47 = vshll.u32 %v4507_v13, 16  ;;  %v4610_v2 = vshrl.u32 %v4507_v13, 16  ;;  %v4951_v58 = vunpack.c.l.b16 %v4585_v24  ;;  %v3578_v13 = vld [vmem:[#allocation2 + $0x54] sm:$0xf] }
 0x1a4   : > { %4387 = vmatmul.bf16.vlgmr.msra.gmra.mxu3 %v6177_v20  ;;  %v3673_v20 = vrot.slane %v3668_v35, 4  ;;  %v4952_v3 = vunpack.c.l.b16 %v4595_v16  ;;  %v3019_v35 = vshrl.u32 %v2895_v50, 16  ;;  %v3004_v15 = vsel %vm6829_vm5, %v2999_v40, %v3003_v57  ;;  %v2896_v57 = vld [vmem:[#allocation2 + $0x4c] sm:$0x1] }
 0x1a5   : > { %5069 = vmatmul.bf16.vlgmr.msra.gmra.mxu0 %v4981_v60  ;;  %v4602_v60 = vrot.slane %v4600_v53, 5  ;;  %v4612_v9 = vrot.slane %v4610_v2, 4  ;;  %v3579_v53 = vld [vmem:[#allocation2 + $0x58] sm:$0xf]  ;;  %v7442_v16 = vunpack.c.l.b16 %v2994_v39  ;;  %v7444_v36 = vrot.slane %v3015_v41, 5 }
 0x1a6   : > { %v1881_v29 = vpop.f32.mrf.mxu2  ;;  %v7437_v45 = vsel %vm6825_vm4, %v3673_v20, %v3680_v37  ;;  %v4982_v24 = vpack.c.b16 %v4952_v3, %v4951_v58  ;;  %v3021_v17 = vrot.slane %v3019_v35, 4  ;;  %v3688_v20 = vshrl.u32 %v3578_v13, 16  ;;  %v4509_v37 = vld [vmem:[#allocation2 + $0x54] sm:$0xf] }
 0x1a7   : > { %v1937_v61 = vadd.f32 %v1881_v29, %v1229_v32  ;;  %v2531_v11 = vpop.f32.mrf.mxu3  ;;  %v1230_v52 = vpop.f32.mrf.mxu1  ;;  %v7439_v32 = vrot.slane %v4606_v47, 5  ;;  %v4603_v8 = vor.u32 %v4602_v60, %v4599_v5  ;;  %v3989_v47 = vunpack.c.l.b16 %v3672_v19  ;;  %v3577_v5 = vld [vmem:[#allocation2 + $0x50] sm:$0x8] }
 0x1a8   : > { %v1231_v62 = vadd.f32 %v1230_v52, %v6936_v42  ;;  %v6178_v42 = vld [vmem:[#allocation2 + $0x34] sm:$0xff]  ;;  %v7446_v52 = vunpack.c.l.b16 %v3004_v15  ;;  %v3990_v50 = vunpack.c.l.b16 %v7437_v45  ;;  %v3697_v60 = vshrl.u32 %v3579_v53, 16 }
 0x1a9   : > { %v7424_v7 = vadd.f32 %v2531_v11, %v1937_v61  ;;  %v3008_v61 = vrot.slane %v3006_v18, 4  ;;  %v3011_v11 = vrot.slane %v3009_v63, 5  ;;  %v4604_v58 = vrot.slane %v4603_v8, 4  ;;  %v4510_v18 = vld [vmem:[#allocation2 + $0x58] sm:$0xf] }
 0x1aa   : > { %v7426_v31 = vpop.f32.mrf.mxu0  ;;  %v4613_v3 = vor.u32 %v4612_v9, %v7439_v32  ;;  %v4618_v33 = vrot.slane %v4616_v44, 5  ;;  %v3025_v41 = vshll.u32 %v2896_v57, 16  ;;  %v4621_v35 = vshrl.u32 %v4509_v37, 16 }
 0x1ab   : > { %v3012_v39 = vor.u32 %v3011_v11, %v3008_v61  ;;  %v4624_v15 = vshll.u32 %v4509_v37, 16  ;;  %v3022_v19 = vor.u32 %v3021_v17, %v7444_v36  ;;  %v3683_v45 = vshrl.u32 %v3577_v5, 16 }
 0x1ac   : > { %v3691_v8 = vshll.u32 %v3578_v13, 16  ;;  %v3699_v9 = vrot.slane %v3697_v60, 7  ;;  %v3700_v44 = vshll.u32 %v3579_v53, 16  ;;  %v4623_v30 = vrot.slane %v4621_v35, 4 }
 0x1ad   : > { %v4626_v14 = vrot.slane %v4624_v15, 5  ;;  %v4614_v57 = vrot.slane %v4613_v3, 4  ;;  %v3013_v61 = vrot.slane %v3012_v39, 4  ;;  %v3027_v11 = vrot.slane %v3025_v41, 5 }
 0x1ae   : > { %v1883_v29 = vpop.f32.mrf.mxu2  ;;  %v3023_v37 = vrot.slane %v3022_v19, 4  ;;  %v3368_v41 = vpack.c.b16 %v7446_v52, %v7442_v16  ;;  %v4019_v35 = vpack.c.b16 %v3990_v50, %v3989_v47 }
 0x1af   : > { %v1938_v1 = vadd.f32 %v1883_v29, %v1231_v62  ;;  %v2533_v40 = vpop.f32.mrf.mxu3  ;;  %v1233_v49 = vpop.f32.mrf.mxu1  ;;  %v3690_v62 = vrot.slane %v3688_v20, 7  ;;  %v4630_v29 = vshll.u32 %v4510_v18, 16  ;;  %v4627_v3 = vor.u32 %v4626_v14, %v4623_v30 }
 0x1b0   : > { %v3028_v15 = vsel %vm6829_vm5, %v3023_v37, %v3027_v11  ;;  %v6179_v11 = vld [vmem:[#allocation2 + $0x44] sm:$0xff] }
 0x1b1   : > { %v2588_v2 = vadd.f32 %v2533_v40, %v1938_v1  ;;  %v4634_v1 = vshrl.u32 %v4510_v18, 16  ;;  %v1234_v40 = vadd.f32 %v1233_v49, %v6947_v26  ;;  %v3693_v26 = vor.u32 %v3691_v8, %v3690_v62  ;;  %v2898_v8 = vld [vmem:[#allocation2 + $0x58] sm:$0xf] }
 0x1b2   : > { %v7450_v63 = vpop.f32.mrf.mxu0  ;;  %3459 = vmatmul.bf16.gmra.mxu1 %v3367_v25  ;;  %v7459_v25 = vadd.f32 %v7408_v0, %v7424_v7  ;;  %v3702_v49 = vor.u32 %v3700_v44, %v3699_v9  ;;  %v4632_v5 = vrot.slane %v4630_v29, 5  ;;  %v4609_v0 = vsel %vm6829_vm5, %v4604_v58, %v7439_v32  ;;  %v4511_v7 = vld [vmem:[#allocation2 + $0x5c] sm:$0x1]  ;;  %v2897_v58 = vld [vmem:[#allocation2 + $0x54] sm:$0xf] }
 0x1b3   : > { %4110 = vmatmul.bf16.gmra.mxu2 %v4018_v46  ;;  %v7462_v13 = vadd.f32 %v7426_v31, %v2588_v2  ;;  %v4636_v60 = vrot.slane %v4634_v1, 4  ;;  %v4619_v31 = vsel %vm6829_vm5, %v4614_v57, %v4618_v33  ;;  %v3018_v2 = vsel %vm6829_vm5, %v3013_v61, %v7444_v36 }
 0x1b4   : > { %4392 = vmatmul.bf16.gmra.mxu3 %v6178_v42  ;;  %v5916_v42 = vrot.slane %v3683_v45, 11  ;;  %v4953_v19 = vunpack.c.l.b16 %v4609_v0  ;;  %v4954_v9 = vunpack.c.l.b16 %v4619_v31  ;;  %v7483_v44 = vunpack.c.l.b16 %v3018_v2  ;;  %v3580_v0 = vld [vmem:[#allocation2 + $0x60] sm:$0x8] }
 0x1b5   : > { %5074 = vmatmul.bf16.gmra.mxu0 %v4982_v24  ;;  %v3695_v24 = vrot.slane %v3690_v62, 4  ;;  %v4637_v33 = vor.u32 %v4636_v60, %v4632_v5  ;;  %v4640_v62 = vshll.u32 %v4511_v7, 16  ;;  %v4628_v16 = vrot.slane %v4627_v3, 4 }
 0x1b6   : > { %v1886_v46 = vpop.f32.mrf.mxu2  ;;  %v3694_v32 = vsel %vm6825_vm4, %v5916_v42, %v3693_v26  ;;  %v7485_v47 = vunpack.c.l.b16 %v3028_v15  ;;  %v3030_v29 = vshrl.u32 %v2897_v58, 16  ;;  %v3033_v1 = vshll.u32 %v2897_v58, 16  ;;  %v4512_v42 = vld [vmem:[#allocation2 + $0x64] sm:$0xf]  ;;  %v4513_v58 = vld [vmem:[#allocation2 + $0x68] sm:$0xf] }
 0x1b7   : > { %v1939_v17 = vadd.f32 %v1886_v46, %v1234_v40  ;;  %v2536_v53 = vpop.f32.mrf.mxu3  ;;  %v1235_v20 = vpop.f32.mrf.mxu1  ;;  %v3703_v45 = vsel %vm6825_vm4, %v3695_v24, %v3702_v49  ;;  %v3991_v50 = vunpack.c.l.b16 %v3694_v32  ;;  %v3039_v57 = vshll.u32 %v2898_v8, 16  ;;  %v2899_v24 = vld [vmem:[#allocation2 + $0x5c] sm:$0x1]  ;;  %v3581_v15 = vld [vmem:[#allocation2 + $0x64] sm:$0xf] }
 0x1b8   : > { %v1236_v36 = vadd.f32 %v1235_v20, %v6969_v12  ;;  %v3992_v46 = vunpack.c.l.b16 %v3703_v45  ;;  %v3043_v61 = vshrl.u32 %v2898_v8, 16  ;;  %v7489_v12 = vrot.slane %v4640_v62, 5  ;;  %v3582_v32 = vld [vmem:[#allocation2 + $0x68] sm:$0xf] }
 0x1b9   : > { %v2589_v18 = vadd.f32 %v2536_v53, %v1939_v17  ;;  %v7487_v17 = vrot.slane %v4637_v33, 4  ;;  %v4983_v20 = vpack.c.b16 %v4954_v9, %v4953_v19  ;;  %v4633_v37 = vsel %vm6829_vm5, %v4628_v16, %v4632_v5 }
 0x1ba   : > { %v7467_v39 = vpop.f32.mrf.mxu0  ;;  %v3032_v49 = vrot.slane %v3030_v29, 4  ;;  %v3035_v60 = vrot.slane %v3033_v1, 5  ;;  %v7497_v3 = vpack.c.b16 %v3992_v46, %v3991_v50  ;;  %v7499_v31 = vrot.slane %v3039_v57, 5  ;;  %v2900_v50 = vld [vmem:[#allocation2 + $0x64] sm:$0xf] }
 0x1bb   : > { %v3045_v2 = vrot.slane %v3043_v61, 4  ;;  %v4643_v5 = vsel %vm6829_vm5, %v7487_v17, %v7489_v12  ;;  %v4648_v19 = vshll.u32 %v4512_v42, 16  ;;  %v3049_v33 = vshll.u32 %v2899_v24, 16  ;;  %v2901_v29 = vld [vmem:[#allocation2 + $0x68] sm:$0xf] }
 0x1bc   : > { %v3705_v62 = vshrl.u32 %v3580_v0, 16  ;;  %v7509_v8 = vadd.f32 %v7450_v63, %v2589_v18  ;;  %v3036_v9 = vor.u32 %v3035_v60, %v3032_v49  ;;  %v3710_v16 = vshrl.u32 %v3581_v15, 16 }
 0x1bd   : > { %v4658_v57 = vshrl.u32 %v4513_v58, 16  ;;  %v3054_v63 = vshrl.u32 %v2900_v50, 16  ;;  %v3057_v18 = vshll.u32 %v2900_v50, 16  ;;  %v3713_v12 = vshll.u32 %v3581_v15, 16  ;;  %v3584_v50 = vld [vmem:[#allocation2 + $0x74] sm:$0xf] }
 0x1be   : > { %v1888_v52 = vpop.f32.mrf.mxu2  ;;  %8069 = vst [vmem:[#allocation30_spill] sm:$0xff] %v7509_v8  ;;  %v3722_v49 = vshll.u32 %v3582_v32, 16  ;;  %v7519_v60 = vrot.slane %v3049_v33, 5  ;;  %v7521_v0 = vrot.slane %v3705_v62, 11  ;;  %v3583_v33 = vld [vmem:[#allocation2 + $0x70] sm:$0x8] }
 0x1bf   : > { %v1940_v40 = vadd.f32 %v1888_v52, %v1236_v36  ;;  %v2538_v30 = vpop.f32.mrf.mxu3  ;;  %v1238_v14 = vpop.f32.mrf.mxu1  ;;  %v3719_v52 = vshrl.u32 %v3582_v32, 16  ;;  %v3056_v15 = vrot.slane %v3054_v63, 4 }
 0x1c0   : > { %v1239_v45 = vadd.f32 %v1238_v14, %v6990_v55  ;;  %v3046_v55 = vor.u32 %v3045_v2, %v7499_v31  ;;  %v4654_v14 = vshll.u32 %v4513_v58, 16  ;;  %v4514_v2 = vld [vmem:[#allocation2 + $0x6c] sm:$0x1] }
 0x1c1   : > { %v2590_v53 = vadd.f32 %v2538_v30, %v1940_v40  ;;  %v3721_v24 = vrot.slane %v3719_v52, 7 }
 0x1c2   : > { %v7493_v26 = vpop.f32.mrf.mxu0  ;;  %3464 = vmatmul.bf16.gmra.mxu1 %v3368_v41  ;;  %v7505_v41 = vunpack.c.l.b16 %v4633_v37  ;;  %v3067_v37 = vshrl.u32 %v2901_v29, 16  ;;  %v7523_v58 = vrot.slane %v4654_v14, 5 }
 0x1c3   : > { %4115 = vmatmul.bf16.gmra.mxu2 %v4019_v35  ;;  %v4645_v35 = vshrl.u32 %v4512_v42, 16  ;;  %v7512_v1 = vadd.f32 %v7467_v39, %v2590_v53  ;;  %v3037_v39 = vrot.slane %v3036_v9, 4  ;;  %v3712_v53 = vrot.slane %v3710_v16, 7  ;;  %v2902_v16 = vld [vmem:[#allocation2 + $0x6c] sm:$0x1] }
 0x1c4   : > { %4397 = vmatmul.bf16.gmra.mxu3 %v6179_v11  ;;  %v4650_v11 = vrot.slane %v4648_v19, 5  ;;  %v7525_v19 = vrot.slane %v3046_v55, 4  ;;  %v4956_v9 = vunpack.c.l.b16 %v4643_v5  ;;  %v3069_v32 = vrot.slane %v3067_v37, 4 }
 0x1c5   : > { %5079 = vmatmul.bf16.gmra.mxu0 %v4983_v20  ;;  %8070 = vst [vmem:[#allocation31_spill] sm:$0xff] %v7512_v1  ;;  %v4647_v61 = vrot.slane %v4645_v35, 4  ;;  %v3063_v20 = vshll.u32 %v2901_v29, 16  ;;  %v4660_v35 = vrot.slane %v4658_v57, 4  ;;  %v3717_v55 = vrot.slane %v3712_v53, 4 }
 0x1c6   : > { %v1891_v36 = vpop.f32.mrf.mxu2  ;;  %v3724_v14 = vor.u32 %v3722_v49, %v3721_v24  ;;  %v7533_v57 = vld [vmem:[#allocation2 + $0x78] sm:$0xf]  ;;  %v4664_v5 = vshll.u32 %v4514_v2, 16  ;;  %v3073_v7 = vshll.u32 %v2902_v16, 16  ;;  %v3727_v1 = vshrl.u32 %v3583_v33, 16 }
 0x1c7   : > { %v1941_v40 = vadd.f32 %v1891_v36, %v1239_v45  ;;  %v2541_v30 = vpop.f32.mrf.mxu3  ;;  %v1240_v46 = vpop.f32.mrf.mxu1  ;;  %v4651_v45 = vor.u32 %v4650_v11, %v4647_v61  ;;  %v3059_v36 = vrot.slane %v3057_v18, 5  ;;  %v7528_v52 = vrot.slane %v3063_v20, 5  ;;  %v6180_v18 = vld [vmem:[#allocation2 + $0x54] sm:$0xff] }
 0x1c8   : > { %v1241_v29 = vadd.f32 %v1240_v46, %v7008_v48  ;;  %v4661_v48 = vor.u32 %v4660_v35, %v7523_v58  ;;  %v3732_v46 = vshrl.u32 %v3584_v50, 16  ;;  %v8071_v24 = vpack.c.b16 %v7485_v47, %v7483_v44  ;;  %v4516_v16 = vld [vmem:[#allocation2 + $0x78] sm:$0xf] }
 0x1c9   : > { %v7515_v17 = vadd.f32 %v2541_v30, %v1941_v40  ;;  %v3042_v40 = vsel %vm6829_vm5, %v3037_v39, %v7499_v31  ;;  %v3715_v30 = vor.u32 %v3713_v12, %v3712_v53  ;;  %v4652_v20 = vrot.slane %v4651_v45, 4 }
 0x1ca   : > { %v7517_v42 = vpop.f32.mrf.mxu0  ;;  %v3060_v37 = vor.u32 %v3059_v36, %v3056_v15  ;;  %v4984_v31 = vpack.c.b16 %v4956_v9, %v7505_v41  ;;  %v3070_v12 = vor.u32 %v3069_v32, %v7528_v52  ;;  %v3741_v39 = vshrl.u32 %v7533_v57, 16  ;;  %v4515_v36 = vld [vmem:[#allocation2 + $0x74] sm:$0xf] }
 0x1cb   : > { %v3052_v49 = vsel %vm6829_vm5, %v7525_v19, %v7519_v60  ;;  %v7548_v2 = vunpack.c.l.b16 %v3042_v40  ;;  %v3716_v41 = vsel %vm6825_vm4, %v7521_v0, %v3715_v30  ;;  %v3725_v35 = vsel %vm6825_vm4, %v3717_v55, %v3724_v14  ;;  %v8072_v0 = vld [vmem:[#allocation23_spill] sm:$0xff] }
 0x1cc   : > { %v4662_v45 = vrot.slane %v4661_v48, 4  ;;  %v4666_v15 = vrot.slane %v4664_v5, 5  ;;  %v3734_v44 = vrot.slane %v3732_v46, 7  ;;  %v3735_v47 = vshll.u32 %v3584_v50, 16 }
 0x1cd   : > { %v4657_v60 = vsel %vm6829_vm5, %v4652_v20, %v7523_v58  ;;  %v3061_v19 = vrot.slane %v3060_v37, 4  ;;  %v5918_v9 = vrot.slane %v3727_v1, 11  ;;  %v3071_v33 = vrot.slane %v3070_v12, 4  ;;  %v2904_v20 = vld [vmem:[#allocation2 + $0x78] sm:$0xf] }
 0x1ce   : > { %v1893_v62 = vpop.f32.mrf.mxu2  ;;  %v3744_v40 = vshll.u32 %v7533_v57, 16  ;;  %v4669_v30 = vshrl.u32 %v4515_v36, 16  ;;  %v4672_v55 = vshll.u32 %v4515_v36, 16  ;;  %v3343_v48 = vunpack.c.l.b16 %v3052_v49 }
 0x1cf   : > { %v1942_v61 = vadd.f32 %v1893_v62, %v1241_v29  ;;  %v2543_v11 = vpop.f32.mrf.mxu3  ;;  %v1243_v63 = vpop.f32.mrf.mxu1  ;;  %v3075_v29 = vrot.slane %v3073_v7, 5  ;;  %v3743_v62 = vrot.slane %v3741_v39, 7  ;;  %v3993_v5 = vunpack.c.l.b16 %v3716_v41 }
 0x1d0   : > { %v1244_v32 = vadd.f32 %v1243_v63, %v8072_v0  ;;  %v4682_v63 = vshrl.u32 %v4516_v16, 16  ;;  %v3994_v46 = vunpack.c.l.b16 %v3725_v35  ;;  %v7572_v57 = vunpack.c.l.b16 %v4657_v60  ;;  %v4517_v35 = vld [vmem:[#allocation2 + $0x7c] sm:$0x1]  ;;  %v8073_v60 = vld [vmem:[#allocation25_spill] sm:$0xff] }
 0x1d1   : > { %v2592_v8 = vadd.f32 %v2543_v11, %v1942_v61  ;;  %v3737_v61 = vor.u32 %v3735_v47, %v3734_v44  ;;  %v4678_v11 = vshll.u32 %v4516_v16, 16  ;;  %v3746_v12 = vor.u32 %v3744_v40, %v3743_v62  ;;  %v3587_v40 = vld [vmem:[#allocation2 + $0x84] sm:$0xf] }
 0x1d2   : > { %v7539_v53 = vpop.f32.mrf.mxu0  ;;  %3469 = vmatmul.bf16.gmra.mxu1 %v8071_v24  ;;  %v4671_v39 = vrot.slane %v4669_v30, 4  ;;  %v4674_v24 = vrot.slane %v4672_v55, 5  ;;  %v3087_v47 = vshll.u32 %v2904_v20, 16  ;;  %v3091_v36 = vshrl.u32 %v2904_v20, 16 }
 0x1d3   : > { %4120 = vmatmul.bf16.gmra.mxu2 %v7497_v3  ;;  %v7562_v3 = vadd.f32 %v7493_v26, %v7515_v17  ;;  %v7566_v58 = vadd.f32 %v7517_v42, %v2592_v8  ;;  %v4667_v26 = vsel %vm6829_vm5, %v4662_v45, %v4666_v15  ;;  %v3066_v8 = vsel %vm6829_vm5, %v3061_v19, %v7528_v52 }
 0x1d4   : > { %4402 = vmatmul.bf16.gmra.mxu3 %v6180_v18  ;;  %v3739_v42 = vrot.slane %v3734_v44, 4  ;;  %v2903_v18 = vld [vmem:[#allocation2 + $0x74] sm:$0xf]  ;;  %v4958_v49 = vunpack.c.l.b16 %v4667_v26  ;;  %v3738_v41 = vsel %vm6825_vm4, %v5918_v9, %v3737_v61  ;;  %v7583_v45 = vrot.slane %v4678_v11, 5  ;;  %v2905_v11 = vld [vmem:[#allocation2 + $0x7c] sm:$0x1] }
 0x1d5   : > { %5084 = vmatmul.bf16.gmra.mxu0 %v4984_v31  ;;  %v3076_v31 = vsel %vm6829_vm5, %v3071_v33, %v3075_v29  ;;  %v4684_v15 = vrot.slane %v4682_v63, 4  ;;  %v3078_v52 = vshrl.u32 %v2903_v18, 16  ;;  %v3081_v44 = vshll.u32 %v2903_v18, 16  ;;  %v4518_v63 = vld [vmem:[#allocation2 + $0x84] sm:$0xf] }
 0x1d6   : > { %v1896_v50 = vpop.f32.mrf.mxu2  ;;  %v3370_v16 = vpack.c.b16 %v3343_v48, %v7548_v2  ;;  %v7587_v29 = vunpack.c.l.b16 %v3066_v8  ;;  %v7589_v0 = vunpack.c.l.b16 %v3076_v31  ;;  %v4021_v33 = vpack.c.b16 %v3994_v46, %v3993_v5  ;;  %v4519_v8 = vld [vmem:[#allocation2 + $0x88] sm:$0xf]  ;;  %v3586_v31 = vld [vmem:[#allocation2 + $0x80] sm:$0x8] }
 0x1d7   : > { %v1943_v7 = vadd.f32 %v1896_v50, %v1244_v32  ;;  %v2546_v1 = vpop.f32.mrf.mxu3  ;;  %v1245_v14 = vpop.f32.mrf.mxu1  ;;  %v7593_v9 = vsel %vm6825_vm4, %v3739_v42, %v3746_v12  ;;  %v4675_v62 = vor.u32 %v4674_v24, %v4671_v39  ;;  %v4688_v50 = vshll.u32 %v4517_v35, 16 }
 0x1d8   : > { %v1246_v19 = vadd.f32 %v1245_v14, %v8073_v60  ;;  %v4985_v14 = vpack.c.b16 %v4958_v49, %v7572_v57  ;;  %v7596_v2 = vunpack.c.l.b16 %v3738_v41  ;;  %v4685_v61 = vor.u32 %v4684_v15, %v7583_v45  ;;  %v3588_v49 = vld [vmem:[#allocation2 + $0x88] sm:$0xf] }
 0x1d9   : > { %v7570_v17 = vadd.f32 %v2546_v1, %v1943_v7  ;;  %v6181_v1 = vld [vmem:[#allocation2 + $0x64] sm:$0xff]  ;;  %v3080_v48 = vrot.slane %v3078_v52, 4  ;;  %v3083_v5 = vrot.slane %v3081_v44, 5  ;;  %v7599_v46 = vrot.slane %v3087_v47, 5 }
 0x1da   : > { %v7577_v37 = vpop.f32.mrf.mxu0  ;;  %v3093_v26 = vrot.slane %v3091_v36, 4  ;;  %v3996_v20 = vunpack.c.l.b16 %v7593_v9  ;;  %v3754_v57 = vshrl.u32 %v3587_v40, 16  ;;  %v4676_v39 = vrot.slane %v4675_v62, 4  ;;  %v8074_v9 = vld [vmem:[#allocation17_spill] sm:$0xff] }
 0x1db   : > { %v4690_v24 = vrot.slane %v4688_v50, 5  ;;  %v4693_v41 = vshrl.u32 %v4518_v63, 16  ;;  %v4696_v35 = vshll.u32 %v4518_v63, 16  ;;  %v4686_v15 = vrot.slane %v4685_v61, 4 }
 0x1dc   : > { %v3097_v52 = vshll.u32 %v2905_v11, 16  ;;  %v4702_v44 = vshll.u32 %v4519_v8, 16  ;;  %v4706_v47 = vshrl.u32 %v4519_v8, 16  ;;  %v3084_v36 = vor.u32 %v3083_v5, %v3080_v48  ;;  %v4520_v48 = vld [vmem:[#allocation2 + $0x8c] sm:$0x1] }
 0x1dd   : > { %v3094_v60 = vor.u32 %v3093_v26, %v7599_v46  ;;  %v3763_v62 = vshrl.u32 %v3588_v49, 16  ;;  %v7612_v50 = vadd.f32 %v7539_v53, %v7570_v17  ;;  %v4698_v61 = vrot.slane %v4696_v35, 5  ;;  %v2906_v17 = vld [vmem:[#allocation2 + $0x84] sm:$0xf] }
 0x1de   : > { %v1898_v32 = vpop.f32.mrf.mxu2  ;;  %v4691_v63 = vsel %vm6829_vm5, %v4686_v15, %v4690_v24  ;;  %v7622_v5 = vrot.slane %v4702_v44, 5  ;;  %v4708_v53 = vrot.slane %v4706_v47, 4  ;;  %v3085_v26 = vrot.slane %v3084_v36, 4 }
 0x1df   : > { %v1944_v30 = vadd.f32 %v1898_v32, %v1246_v19  ;;  %v2548_v55 = vpop.f32.mrf.mxu3  ;;  %v1248_v7 = vpop.f32.mrf.mxu1  ;;  %v3749_v19 = vshrl.u32 %v3586_v31, 16  ;;  %v3757_v32 = vshll.u32 %v3587_v40, 16  ;;  %v3095_v8 = vrot.slane %v3094_v60, 4 }
 0x1e0   : > { %v3099_v31 = vrot.slane %v3097_v52, 5  ;;  %v4712_v24 = vshll.u32 %v4520_v48, 16  ;;  %v3102_v15 = vshrl.u32 %v2906_v17, 16  ;;  %v3105_v44 = vshll.u32 %v2906_v17, 16 }
 0x1e1   : > { %v2594_v42 = vadd.f32 %v2548_v55, %v1944_v30  ;;  %v1249_v30 = vadd.f32 %v1248_v7, %v8074_v9  ;;  %v4681_v55 = vsel %vm6829_vm5, %v4676_v39, %v7583_v45  ;;  %v5919_v45 = vrot.slane %v3749_v19, 11 }
 0x1e2   : > { %v7604_v12 = vpop.f32.mrf.mxu0  ;;  %3474 = vmatmul.bf16.gmra.mxu1 %v3370_v16  ;;  %v7608_v16 = vrot.slane %v3754_v57, 7  ;;  %v2907_v57 = vld [vmem:[#allocation2 + $0x88] sm:$0xf]  ;;  %v4022_v47 = vpack.c.b16 %v3996_v20, %v7596_v2  ;;  %v4709_v36 = vor.u32 %v4708_v53, %v7622_v5  ;;  %v4959_v19 = vunpack.c.l.b16 %v4681_v55 }
 0x1e3   : > { %4125 = vmatmul.bf16.gmra.mxu2 %v4021_v33  ;;  %v7618_v11 = vadd.f32 %v7577_v37, %v2594_v42  ;;  %v3765_v42 = vrot.slane %v3763_v62, 7  ;;  %v3111_v60 = vshll.u32 %v2907_v57, 16  ;;  %v3115_v52 = vshrl.u32 %v2907_v57, 16  ;;  %v8075_v62 = vld [vmem:[#allocation18_spill] sm:$0xff] }
 0x1e4   : > { %4407 = vmatmul.bf16.gmra.mxu3 %v6181_v1  ;;  %v4695_v1 = vrot.slane %v4693_v41, 4  ;;  %v3759_v37 = vor.u32 %v3757_v32, %v7608_v16  ;;  %v3766_v41 = vshll.u32 %v3588_v49, 16  ;;  %v3090_v32 = vsel %vm6829_vm5, %v3085_v26, %v7599_v46  ;;  %v3590_v57 = vld [vmem:[#allocation2 + $0x94] sm:$0xf] }
 0x1e5   : > { %5089 = vmatmul.bf16.gmra.mxu0 %v4985_v14  ;;  %v3761_v49 = vrot.slane %v7608_v16, 4  ;;  %v4714_v55 = vrot.slane %v4712_v24, 5  ;;  %v3107_v48 = vrot.slane %v3105_v44, 5  ;;  %v4710_v26 = vrot.slane %v4709_v36, 4 }
 0x1e6   : > { %v1901_v33 = vpop.f32.mrf.mxu2  ;;  %v4699_v9 = vor.u32 %v4698_v61, %v4695_v1  ;;  %v3100_v1 = vsel %vm6829_vm5, %v3095_v8, %v3099_v31  ;;  %v3760_v2 = vsel %vm6825_vm4, %v5919_v45, %v3759_v37  ;;  %v3768_v20 = vor.u32 %v3766_v41, %v3765_v42  ;;  %v2908_v61 = vld [vmem:[#allocation2 + $0x8c] sm:$0x1]  ;;  %v3591_v31 = vld [vmem:[#allocation2 + $0x98] sm:$0xf]  ;;  %v3589_v41 = vld [vmem:[#allocation2 + $0x90] sm:$0x8] }
 0x1e7   : > { %v1945_v40 = vadd.f32 %v1901_v33, %v1249_v30  ;;  %v2551_v7 = vpop.f32.mrf.mxu3  ;;  %v1250_v14 = vpop.f32.mrf.mxu1  ;;  %v4960_v30 = vunpack.c.l.b16 %v4691_v63  ;;  %v3104_v63 = vrot.slane %v3102_v15, 4  ;;  %v7640_v16 = vrot.slane %v3111_v60, 5 }
 0x1e8   : > { %v1251_v33 = vadd.f32 %v1250_v14, %v8075_v62  ;;  %v3117_v14 = vrot.slane %v3115_v52, 4  ;;  %v6182_v62 = vld [vmem:[#allocation2 + $0x74] sm:$0xff]  ;;  %v3121_v8 = vshll.u32 %v2908_v61, 16  ;;  %v7642_v37 = vunpack.c.l.b16 %v3090_v32 }
 0x1e9   : > { %v7624_v39 = vadd.f32 %v2551_v7, %v1945_v40  ;;  %v4700_v7 = vrot.slane %v4699_v9, 4  ;;  %v4986_v45 = vpack.c.b16 %v4960_v30, %v4959_v19  ;;  %v7644_v42 = vunpack.c.l.b16 %v3100_v1  ;;  %v4521_v9 = vld [vmem:[#allocation2 + $0x94] sm:$0xf] }
 0x1ea   : > { %v7627_v35 = vpop.f32.mrf.mxu0  ;;  %v8076_v15 = vpack.c.b16 %v7589_v0, %v7587_v29  ;;  %v3769_v44 = vsel %vm6825_vm4, %v3761_v49, %v3768_v20  ;;  %v3997_v36 = vunpack.c.l.b16 %v3760_v2  ;;  %v3108_v60 = vor.u32 %v3107_v48, %v3104_v63  ;;  %v8077_v2 = vld [vmem:[#allocation19_spill] sm:$0xff] }
 0x1eb   : > { %v3776_v52 = vshrl.u32 %v3590_v57, 16  ;;  %v4705_v19 = vsel %vm6829_vm5, %v4700_v7, %v7622_v5  ;;  %v4715_v30 = vsel %vm6829_vm5, %v4710_v26, %v4714_v55  ;;  %v3118_v32 = vor.u32 %v3117_v14, %v7640_v16 }
 0x1ec   : > { %v3785_v1 = vshrl.u32 %v3591_v31, 16  ;;  %v3123_v29 = vrot.slane %v3121_v8, 5  ;;  %v3771_v0 = vshrl.u32 %v3589_v41, 16  ;;  %v4717_v61 = vshrl.u32 %v4521_v9, 16 }
 0x1ed   : > { %v4720_v49 = vshll.u32 %v4521_v9, 16  ;;  %v7660_v63 = vadd.f32 %v7604_v12, %v7624_v39  ;;  %v3109_v7 = vrot.slane %v3108_v60, 4  ;;  %v3778_v55 = vrot.slane %v3776_v52, 7  ;;  %v4523_v9 = vld [vmem:[#allocation2 + $0x9c] sm:$0x1] }
 0x1ee   : > { %v1903_v40 = vpop.f32.mrf.mxu2  ;;  %v3779_v48 = vshll.u32 %v3590_v57, 16  ;;  %v3787_v8 = vrot.slane %v3785_v1, 7  ;;  %v7665_v41 = vunpack.c.l.b16 %v4705_v19  ;;  %v4736_v1 = vshll.u32 %v4523_v9, 16 }
 0x1ef   : > { %v1946_v53 = vadd.f32 %v1903_v40, %v1251_v33  ;;  %v2553_v17 = vpop.f32.mrf.mxu3  ;;  %v1253_v46 = vpop.f32.mrf.mxu1  ;;  %v4522_v33 = vld [vmem:[#allocation2 + $0x98] sm:$0xf]  ;;  %v4722_v12 = vrot.slane %v4720_v49, 5  ;;  %v8078_v49 = vld [vmem:[#allocation20_spill] sm:$0xff] }
 0x1f0   : > { %v1254_v20 = vadd.f32 %v1253_v46, %v8077_v2  ;;  %v4726_v40 = vshll.u32 %v4522_v33, 16  ;;  %v3788_v46 = vshll.u32 %v3591_v31, 16  ;;  %v3783_v31 = vrot.slane %v3778_v55, 4 }
 0x1f1   : > { %v2596_v18 = vadd.f32 %v2553_v17, %v1946_v53 }
 0x1f2   : > { %v2838_v24 = vpop.f32.mrf.mxu0  ;;  %3479 = vmatmul.bf16.gmra.mxu1 %v8076_v15  ;;  %v4719_v15 = vrot.slane %v4717_v61, 4  ;;  %v7667_v60 = vrot.slane %v4726_v40, 5  ;;  %v3790_v19 = vor.u32 %v3788_v46, %v3787_v8 }
 0x1f3   : > { %4130 = vmatmul.bf16.gmra.mxu2 %v4022_v47  ;;  %v4730_v47 = vshrl.u32 %v4522_v33, 16  ;;  %v7663_v53 = vadd.f32 %v7627_v35, %v2596_v18  ;;  %v4962_v33 = vunpack.c.l.b16 %v4715_v30  ;;  %v3114_v18 = vsel %vm6829_vm5, %v3109_v7, %v7640_v16 }
 0x1f4   : > { %4412 = vmatmul.bf16.gmra.mxu3 %v6182_v62  ;;  %v3119_v62 = vrot.slane %v3118_v32, 4  ;;  %v7672_v35 = vrot.slane %v3771_v0, 11  ;;  %v7674_v32 = vor.u32 %v3779_v48, %v3778_v55  ;;  %v4723_v30 = vor.u32 %v4722_v12, %v4719_v15 }
 0x1f5   : > { %5094 = vmatmul.bf16.gmra.mxu0 %v4986_v45  ;;  %v3998_v45 = vunpack.c.l.b16 %v3769_v44  ;;  %v4732_v57 = vrot.slane %v4730_v47, 4  ;;  %v4987_v47 = vpack.c.b16 %v4962_v33, %v7665_v41  ;;  %v8079_v41 = vld [vmem:[#allocation21_spill] sm:$0xff] }
 0x1f6   : > { %v1906_v5 = vpop.f32.mrf.mxu2  ;;  %v3124_v44 = vsel %vm6829_vm5, %v3119_v62, %v3123_v29  ;;  %v3782_v48 = vsel %vm6825_vm4, %v7672_v35, %v7674_v32  ;;  %v3594_v33 = vld [vmem:[#allocation2 + $0xa8] sm:$0xf] }
 0x1f7   : > { %v1947_v17 = vadd.f32 %v1906_v5, %v1254_v20  ;;  %v2556_v26 = vpop.f32.mrf.mxu3  ;;  %v1255_v14 = vpop.f32.mrf.mxu1  ;;  %v3372_v20 = vpack.c.b16 %v7644_v42, %v7642_v37  ;;  %v4733_v16 = vor.u32 %v4732_v57, %v7667_v60  ;;  %v4023_v40 = vpack.c.b16 %v3998_v45, %v3997_v36  ;;  %v2909_v36 = vld [vmem:[#allocation2 + $0x94] sm:$0xf] }
 0x1f8   : > { %v1256_v2 = vadd.f32 %v1255_v14, %v8078_v49  ;;  %v7685_v5 = vunpack.c.l.b16 %v3114_v18  ;;  %v7687_v7 = vunpack.c.l.b16 %v3124_v44  ;;  %v7695_v37 = vsel %vm6825_vm4, %v3783_v31, %v3790_v19  ;;  %v2911_v18 = vld [vmem:[#allocation2 + $0x9c] sm:$0x1] }
 0x1f9   : > { %v2597_v39 = vadd.f32 %v2556_v26, %v1947_v17  ;;  %v4738_v42 = vrot.slane %v4736_v1, 5  ;;  %v2910_v17 = vld [vmem:[#allocation2 + $0x98] sm:$0xf]  ;;  %v6183_v26 = vld [vmem:[#allocation2 + $0x84] sm:$0xff]  ;;  %v4724_v14 = vrot.slane %v4723_v30, 4  ;;  %v3126_v62 = vshrl.u32 %v2909_v36, 16 }
 0x1fa   : > { %v2840_v52 = vpop.f32.mrf.mxu0  ;;  %v3129_v8 = vshll.u32 %v2909_v36, 16  ;;  %v3135_v46 = vshll.u32 %v2910_v17, 16  ;;  %v4734_v15 = vrot.slane %v4733_v16, 4  ;;  %v3139_v12 = vshrl.u32 %v2910_v17, 16  ;;  %v3592_v30 = vld [vmem:[#allocation2 + $0xa0] sm:$0x8] }
 0x1fb   : > { %v7678_v61 = vadd.f32 %v2838_v24, %v2597_v39  ;;  %v3593_v39 = vld [vmem:[#allocation2 + $0xa4] sm:$0xf]  ;;  %v3128_v35 = vrot.slane %v3126_v62, 4  ;;  %v3145_v1 = vshll.u32 %v2911_v18, 16 }
 0x1fc   : > { %v3131_v32 = vrot.slane %v3129_v8, 5  ;;  %v3137_v31 = vrot.slane %v3135_v46, 5  ;;  %v3798_v44 = vshrl.u32 %v3593_v39, 16  ;;  %v3141_v19 = vrot.slane %v3139_v12, 4 }
 0x1fd   : > { %v3801_v49 = vshll.u32 %v3593_v39, 16  ;;  %v4739_v46 = vsel %vm6829_vm5, %v4734_v15, %v4738_v42 }
 0x1fe   : > { %v1908_v0 = vpop.f32.mrf.mxu2  ;;  %v3800_v16 = vrot.slane %v3798_v44, 7  ;;  %v3142_v36 = vor.u32 %v3141_v19, %v3137_v31 }
 0x1ff   : > { %v1948_v29 = vadd.f32 %v1908_v0, %v1256_v2  ;;  %v2558_v55 = vpop.f32.mrf.mxu3  ;;  %v1258_v24 = vpop.f32.mrf.mxu1  ;;  %v3807_v2 = vshrl.u32 %v3594_v33, 16  ;;  %v3132_v0 = vor.u32 %v3131_v32, %v3128_v35  ;;  %v3999_v32 = vunpack.c.l.b16 %v3782_v48 }
 0x200   : > { %v1259_v9 = vadd.f32 %v1258_v24, %v8079_v41  ;;  %v4524_v24 = vld [vmem:[#allocation2 + $0xa4] sm:$0xf]  ;;  %v3143_v18 = vrot.slane %v3142_v36, 4  ;;  %v3805_v44 = vrot.slane %v3800_v16, 4 }
 0x201   : > { %v2598_v45 = vadd.f32 %v2558_v55, %v1948_v29  ;;  %v3793_v29 = vshrl.u32 %v3592_v30, 16  ;;  %v3810_v55 = vshll.u32 %v3594_v33, 16  ;;  %v3809_v17 = vrot.slane %v3807_v2, 7 }
 0x202   : > { %v2843_v57 = vpop.f32.mrf.mxu0  ;;  %3484 = vmatmul.bf16.gmra.mxu1 %v3372_v20  ;;  %v3147_v20 = vrot.slane %v3145_v1, 5  ;;  %v4741_v35 = vshrl.u32 %v4524_v24, 16  ;;  %v4744_v19 = vshll.u32 %v4524_v24, 16  ;;  %v4000_v30 = vunpack.c.l.b16 %v7695_v37 }
 0x203   : > { %4135 = vmatmul.bf16.gmra.mxu2 %v4023_v40  ;;  %v7698_v62 = vadd.f32 %v2840_v52, %v2598_v45  ;;  %v4729_v40 = vsel %vm6829_vm5, %v4724_v14, %v7667_v60  ;;  %v5921_v41 = vrot.slane %v3793_v29, 11  ;;  %v3812_v52 = vor.u32 %v3810_v55, %v3809_v17  ;;  %v4525_v45 = vld [vmem:[#allocation2 + $0xa8] sm:$0xf]  ;;  %v8080_v14 = vld [vmem:[#allocation22_spill] sm:$0xff] }
 0x204   : > { %4417 = vmatmul.bf16.gmra.mxu3 %v6183_v26  ;;  %v3133_v26 = vrot.slane %v3132_v0, 4  ;;  %v3148_v42 = vsel %vm6829_vm5, %v3143_v18, %v3147_v20  ;;  %v4963_v2 = vunpack.c.l.b16 %v4729_v40  ;;  %v4526_v0 = vld [vmem:[#allocation2 + $0xac] sm:$0x1]  ;;  %v4743_v48 = vrot.slane %v4741_v35, 4 }
 0x205   : > { %5099 = vmatmul.bf16.gmra.mxu0 %v4987_v47  ;;  %v3803_v47 = vor.u32 %v3801_v49, %v3800_v16  ;;  %v4964_v49 = vunpack.c.l.b16 %v4739_v46  ;;  %v4746_v16 = vrot.slane %v4744_v19, 5  ;;  %v4750_v55 = vshll.u32 %v4525_v45, 16  ;;  %v6184_v19 = vld [vmem:[#allocation2 + $0x94] sm:$0xff] }
 0x206   : > { %v1911_v8 = vpop.f32.mrf.mxu2  ;;  %v3138_v60 = vsel %vm6829_vm5, %v3133_v26, %v3137_v31  ;;  %v4754_v24 = vshrl.u32 %v4525_v45, 16  ;;  %v7715_v36 = vunpack.c.l.b16 %v3148_v42  ;;  %v7719_v31 = vsel %vm6825_vm4, %v3805_v44, %v3812_v52  ;;  %v2913_v45 = vld [vmem:[#allocation2 + $0xa8] sm:$0xf] }
 0x207   : > { %v1949_v12 = vadd.f32 %v1911_v8, %v1259_v9  ;;  %v2561_v39 = vpop.f32.mrf.mxu3  ;;  %v1260_v33 = vpop.f32.mrf.mxu1  ;;  %v3804_v29 = vsel %vm6825_vm4, %v5921_v41, %v3803_v47  ;;  %v7713_v37 = vunpack.c.l.b16 %v3138_v60  ;;  %v4747_v17 = vor.u32 %v4746_v16, %v4743_v48  ;;  %v3597_v16 = vld [vmem:[#allocation2 + $0xb8] sm:$0xf] }
 0x208   : > { %v1261_v9 = vadd.f32 %v1260_v33, %v8080_v14  ;;  %v4752_v8 = vrot.slane %v4750_v55, 5  ;;  %v4756_v40 = vrot.slane %v4754_v24, 4  ;;  %v4760_v46 = vshll.u32 %v4526_v0, 16  ;;  %v8081_v55 = vld [vmem:[#allocation24_spill] sm:$0xff] }
 0x209   : > { %v2599_v1 = vadd.f32 %v2561_v39, %v1949_v12  ;;  %v3373_v41 = vpack.c.b16 %v7687_v7, %v7685_v5  ;;  %v4024_v12 = vpack.c.b16 %v4000_v30, %v3999_v32  ;;  %v4988_v39 = vpack.c.b16 %v4964_v49, %v4963_v2  ;;  %v3596_v30 = vld [vmem:[#allocation2 + $0xb4] sm:$0xf] }
 0x20a   : > { %v2845_v15 = vpop.f32.mrf.mxu0  ;;  %v7725_v35 = vunpack.c.l.b16 %v3804_v29  ;;  %v4757_v52 = vor.u32 %v4756_v40, %v4752_v8  ;;  %v3159_v14 = vshll.u32 %v2913_v45, 16  ;;  %v4762_v7 = vrot.slane %v4760_v46, 5 }
 0x20b   : > { %v7721_v20 = vadd.f32 %v2843_v57, %v2599_v1  ;;  %v2912_v57 = vld [vmem:[#allocation2 + $0xa4] sm:$0xf]  ;;  %v4748_v1 = vrot.slane %v4747_v17, 4  ;;  %v3163_v32 = vshrl.u32 %v2913_v45, 16  ;;  %v2914_v17 = vld [vmem:[#allocation2 + $0xac] sm:$0x1] }
 0x20c   : > { %v3150_v60 = vshrl.u32 %v2912_v57, 16  ;;  %v3153_v42 = vshll.u32 %v2912_v57, 16  ;;  %v4758_v2 = vrot.slane %v4757_v52, 4  ;;  %v3161_v29 = vrot.slane %v3159_v14, 5 }
 0x20d   : > { %v3165_v40 = vrot.slane %v3163_v32, 4  ;;  %v4753_v46 = vsel %vm6829_vm5, %v4748_v1, %v4752_v8  ;;  %v3829_v14 = vshrl.u32 %v3597_v16, 16 }
 0x20e   : > { %v1913_v26 = vpop.f32.mrf.mxu2  ;;  %v3152_v49 = vrot.slane %v3150_v60, 4  ;;  %v3155_v48 = vrot.slane %v3153_v42, 5  ;;  %v3823_v42 = vshll.u32 %v3596_v30, 16  ;;  %v7737_v44 = vunpack.c.l.b16 %v4753_v46 }
 0x20f   : > { %v1950_v33 = vadd.f32 %v1913_v26, %v1261_v9  ;;  %v2563_v18 = vpop.f32.mrf.mxu3  ;;  %v1263_v47 = vpop.f32.mrf.mxu1  ;;  %v3595_v26 = vld [vmem:[#allocation2 + $0xb0] sm:$0x8]  ;;  %v3166_v45 = vor.u32 %v3165_v40, %v3161_v29  ;;  %v3832_v40 = vshll.u32 %v3597_v16, 16 }
 0x210   : > { %v1264_v24 = vadd.f32 %v1263_v47, %v8081_v55  ;;  %v3156_v57 = vor.u32 %v3155_v48, %v3152_v49  ;;  %v3815_v52 = vshrl.u32 %v3595_v26, 16  ;;  %v4527_v49 = vld [vmem:[#allocation2 + $0xb4] sm:$0xf]  ;;  %v4529_v26 = vld [vmem:[#allocation2 + $0xbc] sm:$0x1] }
 0x211   : > { %v2600_v0 = vadd.f32 %v2563_v18, %v1950_v33  ;;  %v3820_v33 = vshrl.u32 %v3596_v30, 16  ;;  %v3167_v8 = vrot.slane %v3166_v45, 4  ;;  %v4768_v45 = vshll.u32 %v4527_v49, 16 }
 0x212   : > { %v2848_v9 = vpop.f32.mrf.mxu0  ;;  %3489 = vmatmul.bf16.gmra.mxu1 %v3373_v41  ;;  %v3169_v41 = vshll.u32 %v2914_v17, 16  ;;  %v3157_v32 = vrot.slane %v3156_v57, 4  ;;  %v3831_v17 = vrot.slane %v3829_v14, 7  ;;  %v8083_v14 = vunpack.c.l.b16 %v7719_v31 }
 0x213   : > { %4140 = vmatmul.bf16.gmra.mxu2 %v4024_v12  ;;  %v7731_v18 = vadd.f32 %v2845_v15, %v2600_v0  ;;  %v3822_v60 = vrot.slane %v3820_v33, 7  ;;  %v4763_v12 = vsel %vm6829_vm5, %v4758_v2, %v4762_v7  ;;  %v5922_v15 = vrot.slane %v3815_v52, 11 }
 0x214   : > { %4422 = vmatmul.bf16.gmra.mxu3 %v6184_v19  ;;  %v3171_v55 = vrot.slane %v3169_v41, 5  ;;  %v3162_v30 = vsel %vm6829_vm5, %v3157_v32, %v3161_v29  ;;  %v4966_v2 = vunpack.c.l.b16 %v4763_v12  ;;  %v3834_v52 = vor.u32 %v3832_v40, %v3831_v17 }
 0x215   : > { %8082 = vst [vmem:[#allocation23_spill] sm:$0xff] %v7731_v18  ;;  %5104 = vmatmul.bf16.gmra.mxu0 %v4988_v39  ;;  %v3825_v1 = vor.u32 %v3823_v42, %v3822_v60  ;;  %v4528_v39 = vld [vmem:[#allocation2 + $0xb8] sm:$0xf]  ;;  %v3827_v48 = vrot.slane %v3822_v60, 4  ;;  %v7743_v33 = vunpack.c.l.b16 %v3162_v30  ;;  %v4765_v29 = vshrl.u32 %v4527_v49, 16 }
 0x216   : > { %v1916_v47 = vpop.f32.mrf.mxu2  ;;  %v4774_v60 = vshll.u32 %v4528_v39, 16  ;;  %v4778_v16 = vshrl.u32 %v4528_v39, 16  ;;  %v4784_v42 = vshll.u32 %v4529_v26, 16  ;;  %v4989_v49 = vpack.c.b16 %v4966_v2, %v7737_v44  ;;  %v4530_v18 = vld [vmem:[#allocation2 + $0xc4] sm:$0xf] }
 0x217   : > { %v1951_v0 = vadd.f32 %v1916_v47, %v1264_v24  ;;  %v2566_v19 = vpop.f32.mrf.mxu3  ;;  %v1265_v5 = vpop.f32.mrf.mxu1  ;;  %v3172_v24 = vsel %vm6829_vm5, %v3167_v8, %v3171_v55  ;;  %v3826_v41 = vsel %vm6825_vm4, %v5922_v15, %v3825_v1  ;;  %v4025_v47 = vpack.c.b16 %v8083_v14, %v7725_v35 }
 0x218   : > { %v7747_v57 = vunpack.c.l.b16 %v3172_v24  ;;  %v3835_v12 = vsel %vm6825_vm4, %v3827_v48, %v3834_v52  ;;  %v4767_v32 = vrot.slane %v4765_v29, 4  ;;  %v4770_v8 = vrot.slane %v4768_v45, 5  ;;  %v2916_v52 = vld [vmem:[#allocation2 + $0xb8] sm:$0xf]  ;;  %v6185_v29 = vld [vmem:[#allocation2 + $0xa4] sm:$0xff] }
 0x219   : > { %v2601_v7 = vadd.f32 %v2566_v19, %v1951_v0  ;;  %v8085_v0 = vld [vmem:[#allocation26_spill] sm:$0xff]  ;;  %v4776_v15 = vrot.slane %v4774_v60, 5  ;;  %v4780_v1 = vrot.slane %v4778_v16, 4  ;;  %v4003_v17 = vunpack.c.l.b16 %v3826_v41 }
 0x21a   : > { %v7745_v46 = vpop.f32.mrf.mxu0  ;;  %v1266_v19 = vadd.f32 %v1265_v5, %v8085_v0  ;;  %v4004_v31 = vunpack.c.l.b16 %v3835_v12  ;;  %v4771_v48 = vor.u32 %v4770_v8, %v4767_v32  ;;  %v3183_v16 = vshll.u32 %v2916_v52, 16  ;;  %v3599_v12 = vld [vmem:[#allocation2 + $0xc4] sm:$0xf] }
 0x21b   : > { %v7756_v55 = vadd.f32 %v2848_v9, %v2601_v7  ;;  %v4781_v24 = vor.u32 %v4780_v1, %v4776_v15  ;;  %v4786_v9 = vrot.slane %v4784_v42, 5  ;;  %v2915_v7 = vld [vmem:[#allocation2 + $0xb4] sm:$0xf]  ;;  %v3187_v41 = vshrl.u32 %v2916_v52, 16  ;;  %v3600_v1 = vld [vmem:[#allocation2 + $0xc8] sm:$0xf] }
 0x21c   : > { %v3174_v45 = vshrl.u32 %v2915_v7, 16  ;;  %v3177_v60 = vshll.u32 %v2915_v7, 16  ;;  %v4772_v2 = vrot.slane %v4771_v48, 4  ;;  %v8086_v32 = vpack.c.b16 %v7715_v36, %v7713_v37  ;;  %v3598_v48 = vld [vmem:[#allocation2 + $0xc0] sm:$0x8] }
 0x21d   : > { %8084 = vst [vmem:[#allocation25_spill] sm:$0xff] %v7756_v55  ;;  %v4782_v14 = vrot.slane %v4781_v24, 4  ;;  %v3185_v8 = vrot.slane %v3183_v16, 5  ;;  %v3851_v24 = vshrl.u32 %v3600_v1, 16  ;;  %v3845_v16 = vshll.u32 %v3599_v12, 16 }
 0x21e   : > { %v1918_v30 = vpop.f32.mrf.mxu2  ;;  %v3176_v42 = vrot.slane %v3174_v45, 4 }
 0x21f   : > { %v1952_v35 = vadd.f32 %v1918_v30, %v1266_v19  ;;  %v2568_v40 = vpop.f32.mrf.mxu3  ;;  %v3455_v26 = vpop.f32.mrf.mxu1  ;;  %v3179_v19 = vrot.slane %v3177_v60, 5  ;;  %v4777_v30 = vsel %vm6829_vm5, %v4772_v2, %v4776_v15  ;;  %v7776_v2 = vpack.c.b16 %v4004_v31, %v4003_v17  ;;  %v4531_v17 = vld [vmem:[#allocation2 + $0xc8] sm:$0xf] }
 0x220   : > { %v3535_v5 = vadd.f32 %v3455_v26, %v7116_v23  ;;  %v3842_v23 = vshrl.u32 %v3599_v12, 16  ;;  %v3189_v26 = vrot.slane %v3187_v41, 4  ;;  %v7772_v7 = vunpack.c.l.b16 %v4777_v30 }
 0x221   : > { %v7763_v44 = vadd.f32 %v2568_v40, %v1952_v35  ;;  %v4787_v35 = vsel %vm6829_vm5, %v4782_v14, %v4786_v9  ;;  %v2917_v40 = vld [vmem:[#allocation2 + $0xbc] sm:$0x1]  ;;  %v3180_v36 = vor.u32 %v3179_v19, %v3176_v42  ;;  %v3853_v41 = vrot.slane %v3851_v24, 7 }
 0x222   : > { %v5070_v0 = vpop.f32.mrf.mxu0  ;;  %3494 = vmatmul.bf16.gmra.mxu1 %v8086_v32  ;;  %v7774_v37 = vunpack.c.l.b16 %v4787_v35  ;;  %v3193_v52 = vshll.u32 %v2917_v40, 16  ;;  %v3190_v45 = vor.u32 %v3189_v26, %v3185_v8  ;;  %v3844_v60 = vrot.slane %v3842_v23, 7  ;;  %v4532_v26 = vld [vmem:[#allocation2 + $0xcc] sm:$0x1] }
 0x223   : > { %4145 = vmatmul.bf16.gmra.mxu2 %v4025_v47  ;;  %v3837_v47 = vshrl.u32 %v3598_v48, 16  ;;  %v3181_v9 = vrot.slane %v3180_v36, 4  ;;  %v3854_v19 = vshll.u32 %v3600_v1, 16  ;;  %v4792_v1 = vshll.u32 %v4530_v18, 16 }
 0x224   : > { %4427 = vmatmul.bf16.gmra.mxu3 %v6185_v29  ;;  %v3195_v14 = vrot.slane %v3193_v52, 5  ;;  %v3191_v30 = vrot.slane %v3190_v45, 4  ;;  %v3847_v35 = vor.u32 %v3845_v16, %v3844_v60  ;;  %v3849_v12 = vrot.slane %v3844_v60, 4 }
 0x225   : > { %5109 = vmatmul.bf16.gmra.mxu0 %v4989_v49  ;;  %v5923_v55 = vrot.slane %v3837_v47, 11  ;;  %v4990_v49 = vpack.c.b16 %v7774_v37, %v7772_v7  ;;  %v3186_v42 = vsel %vm6829_vm5, %v3181_v9, %v3185_v8  ;;  %v3856_v36 = vor.u32 %v3854_v19, %v3853_v41 }
 0x226   : > { %v4106_v15 = vpop.f32.mrf.mxu2  ;;  %v3196_v23 = vsel %vm6829_vm5, %v3191_v30, %v3195_v14  ;;  %v4789_v45 = vshrl.u32 %v4530_v18, 16  ;;  %v4798_v47 = vshll.u32 %v4531_v17, 16  ;;  %v4808_v9 = vshll.u32 %v4532_v26, 16 }
 0x227   : > { %v4186_v32 = vadd.f32 %v4106_v15, %v3535_v5  ;;  %v4388_v39 = vpop.f32.mrf.mxu3  ;;  %v3457_v29 = vpop.f32.mrf.mxu1  ;;  %v7784_v5 = vunpack.c.l.b16 %v3186_v42  ;;  %v3848_v40 = vsel %vm6825_vm4, %v5923_v55, %v3847_v35  ;;  %v7788_v24 = vunpack.c.l.b16 %v3196_v23  ;;  %v2918_v23 = vld [vmem:[#allocation2 + $0xc4] sm:$0xf] }
 0x228   : > { %v4005_v52 = vunpack.c.l.b16 %v3848_v40  ;;  %v3536_v60 = vadd.f32 %v3457_v29, %v7119_v4  ;;  %v3857_v16 = vsel %vm6825_vm4, %v3849_v12, %v3856_v36  ;;  %v4791_v15 = vrot.slane %v4789_v45, 4  ;;  %v2919_v40 = vld [vmem:[#allocation2 + $0xc8] sm:$0xf]  ;;  %v6186_v36 = vld [vmem:[#allocation2 + $0xb4] sm:$0xff] }
 0x229   : > { %v4468_v31 = vadd.f32 %v4388_v39, %v4186_v32  ;;  %v4802_v39 = vshrl.u32 %v4531_v17, 16  ;;  %v4006_v14 = vunpack.c.l.b16 %v3857_v16  ;;  %v4794_v32 = vrot.slane %v4792_v1, 5 }
 0x22a   : > { %v5072_v48 = vpop.f32.mrf.mxu0  ;;  %v4800_v41 = vrot.slane %v4798_v47, 5  ;;  %v4810_v35 = vrot.slane %v4808_v9, 5  ;;  %v7801_v4 = vadd.f32 %v7745_v46, %v7763_v44  ;;  %v3198_v1 = vshrl.u32 %v2918_v23, 16  ;;  %v3602_v44 = vld [vmem:[#allocation2 + $0xd4] sm:$0xf] }
 0x22b   : > { %v7790_v8 = vadd.f32 %v5070_v0, %v4468_v31  ;;  %v4804_v18 = vrot.slane %v4802_v39, 4  ;;  %v7803_v17 = vpack.c.b16 %v4006_v14, %v4005_v52  ;;  %v4795_v31 = vor.u32 %v4794_v32, %v4791_v15 }
 0x22c   : > { %v3201_v47 = vshll.u32 %v2918_v23, 16  ;;  %v3207_v46 = vshll.u32 %v2919_v40, 16  ;;  %v3200_v15 = vrot.slane %v3198_v1, 4  ;;  %v3211_v32 = vshrl.u32 %v2919_v40, 16 }
 0x22d   : > { %v5182_v55 = vpack.c.bf16 %v7790_v8, %v7790_v8  ;;  %v4805_v45 = vor.u32 %v4804_v18, %v4800_v41  ;;  %v4796_v9 = vrot.slane %v4795_v31, 4  ;;  %v2920_v18 = vld [vmem:[#allocation2 + $0xcc] sm:$0x1] }
 0x22e   : > { %v4108_v30 = vpop.f32.mrf.mxu2  ;;  %v3203_v14 = vrot.slane %v3201_v47, 5  ;;  %v3213_v23 = vrot.slane %v3211_v32, 4 }
 0x22f   : > { %v5246_v29 = vunpack.c.l.bf16 %v5182_v55  ;;  %v4187_v42 = vadd.f32 %v4108_v30, %v3536_v60  ;;  %v4390_v12 = vpop.f32.mrf.mxu3  ;;  %v3460_v19 = vpop.f32.mrf.mxu1  ;;  %v8087_v60 = vpack.c.b16 %v7747_v57, %v7743_v33  ;;  %v4806_v52 = vrot.slane %v4805_v45, 4 }
 0x230   : > { %v3537_v26 = vadd.f32 %v3460_v19, %v7145_v38  ;;  %v4801_v38 = vsel %vm6829_vm5, %v4796_v9, %v4800_v41  ;;  %v3864_v19 = vshrl.u32 %v3602_v44, 16  ;;  %v3204_v31 = vor.u32 %v3203_v14, %v3200_v15 }
 0x231   : > { %v5315_v39 = vmul.f32 %v5246_v29, %v5246_v29  ;;  %v4469_v16 = vadd.f32 %v4390_v12, %v4187_v42  ;;  %v3209_v42 = vrot.slane %v3207_v46, 5  ;;  %v3601_v12 = vld [vmem:[#allocation2 + $0xd0] sm:$0x8]  ;;  %v4811_v33 = vsel %vm6829_vm5, %v4806_v52, %v4810_v35 }
 0x232   : > { %v5075_v55 = vpop.f32.mrf.mxu0  ;;  %3499 = vmatmul.bf16.gmra.mxu1 %v8087_v60  ;;  %v7814_v57 = vunpack.c.l.b16 %v4801_v38  ;;  %v3217_v41 = vshll.u32 %v2920_v18, 16  ;;  %v3205_v1 = vrot.slane %v3204_v31, 4  ;;  %v3859_v47 = vshrl.u32 %v3601_v12, 16 }
 0x233   : > { %v5151_v30 = vadd.f32 %v5072_v48, %v4469_v16  ;;  %4150 = vmatmul.bf16.gmra.mxu2 %v7776_v2  ;;  %v7820_v2 = vunpack.c.l.b16 %v4811_v33  ;;  %v3866_v16 = vrot.slane %v3864_v19, 7  ;;  %v3867_v33 = vshll.u32 %v3602_v44, 16 }
 0x234   : > { %4432 = vmatmul.bf16.gmra.mxu3 %v6186_v36  ;;  %v3214_v36 = vor.u32 %v3213_v23, %v3209_v42  ;;  %v3219_v37 = vrot.slane %v3217_v41, 5  ;;  %v3210_v52 = vsel %vm6829_vm5, %v3205_v1, %v3209_v42  ;;  %v5924_v14 = vrot.slane %v3859_v47, 11 }
 0x235   : > { %v5183_v40 = vpack.c.bf16 %v5151_v30, %v5151_v30  ;;  %v6221_v48 = vpack.c.bf16 %v5151_v30, %v7790_v8  ;;  %5114 = vmatmul.bf16.gmra.mxu0 %v4990_v49  ;;  %v3603_v49 = vld [vmem:[#allocation2 + $0xd8] sm:$0xf]  ;;  %v7832_v18 = vunpack.c.l.b16 %v3210_v52  ;;  %v3871_v31 = vrot.slane %v3866_v16, 4 }
 0x236   : > { %v4111_v45 = vpop.f32.mrf.mxu2  ;;  %v3215_v15 = vrot.slane %v3214_v36, 4  ;;  %v3873_v23 = vshrl.u32 %v3603_v49, 16  ;;  %v3876_v42 = vshll.u32 %v3603_v49, 16 }
 0x237   : > { %6222 = vst [vmem:[%s7824_s1] sm:$0xff] %v6221_v48   ;;  %v5247_v35 = vunpack.c.l.bf16 %v5183_v40  ;;  %v4188_v9 = vadd.f32 %v4111_v45, %v3537_v26  ;;  %v4393_v8 = vpop.f32.mrf.mxu3  ;;  %v3462_v46 = vpop.f32.mrf.mxu1  ;;  %v4533_v26 = vld [vmem:[#allocation2 + $0xd4] sm:$0xf]  ;;  %v4534_v40 = vld [vmem:[#allocation2 + $0xd8] sm:$0xf]  ;;  %v3869_v45 = vor.u32 %v3867_v33, %v3866_v16 }
 0x238   : > { %v3538_v60 = vadd.f32 %v3462_v46, %v7147_v54  ;;  %v3220_v19 = vsel %vm6829_vm5, %v3215_v15, %v3219_v37  ;;  %v4813_v1 = vshrl.u32 %v4533_v26, 16  ;;  %v4816_v36 = vshll.u32 %v4533_v26, 16  ;;  %v8088_v33 = vld [vmem:[#allocation27_spill] sm:$0xff] }
 0x239   : > { %v5278_v32 = vadd.f32 %v5247_v35, %v5246_v29  ;;  %v5316_v30 = vmul.f32 %v5247_v35, %v5247_v35  ;;  %v4470_v38 = vadd.f32 %v4393_v8, %v4188_v9  ;;  %v7836_v41 = vunpack.c.l.b16 %v3220_v19  ;;  %v2921_v19 = vld [vmem:[#allocation2 + $0xd4] sm:$0xf]  ;;  %v6187_v35 = vld [vmem:[#allocation2 + $0xc4] sm:$0xff] }
 0x23a   : > { %v5077_v12 = vpop.f32.mrf.mxu0  ;;  %v3875_v29 = vrot.slane %v3873_v23, 7  ;;  %v4822_v9 = vshll.u32 %v4534_v40, 16  ;;  %v4826_v8 = vshrl.u32 %v4534_v40, 16  ;;  %v3870_v44 = vsel %vm6825_vm4, %v5924_v14, %v3869_v45 }
 0x23b   : > { %v5347_v54 = vadd.f32 %v5316_v30, %v5315_v39  ;;  %v5152_v48 = vadd.f32 %v5075_v55, %v4470_v38  ;;  %v4815_v39 = vrot.slane %v4813_v1, 4  ;;  %v4818_v55 = vrot.slane %v4816_v36, 5  ;;  %v4535_v38 = vld [vmem:[#allocation2 + $0xdc] sm:$0x1] }
 0x23c   : > { %v3878_v37 = vor.u32 %v3876_v42, %v3875_v29  ;;  %v4007_v30 = vunpack.c.l.b16 %v3870_v44  ;;  %v4824_v26 = vrot.slane %v4822_v9, 5  ;;  %v4828_v0 = vrot.slane %v4826_v8, 4  ;;  %v2922_v8 = vld [vmem:[#allocation2 + $0xd8] sm:$0xf] }
 0x23d   : > { %v5184_v47 = vpack.c.bf16 %v5152_v48, %v5152_v48  ;;  %v4819_v7 = vor.u32 %v4818_v55, %v4815_v39  ;;  %v4832_v9 = vshll.u32 %v4535_v38, 16 }
 0x23e   : > { %v4113_v46 = vpop.f32.mrf.mxu2  ;;  %v3879_v40 = vsel %vm6825_vm4, %v3871_v31, %v3878_v37  ;;  %v3225_v37 = vshll.u32 %v2921_v19, 16 }
 0x23f   : > { %v5248_v52 = vunpack.c.l.bf16 %v5184_v47  ;;  %v4189_v15 = vadd.f32 %v4113_v46, %v3538_v60  ;;  %v4395_v49 = vpop.f32.mrf.mxu3  ;;  %v3465_v16 = vpop.f32.mrf.mxu1  ;;  %v4008_v29 = vunpack.c.l.b16 %v3879_v40  ;;  %v8089_v60 = vpack.c.b16 %v7788_v24, %v7784_v5 }
 0x240   : > { %v3539_v23 = vadd.f32 %v3465_v16, %v8088_v33  ;;  %v4820_v36 = vrot.slane %v4819_v7, 4  ;;  %v4829_v47 = vor.u32 %v4828_v0, %v4824_v26  ;;  %v3222_v46 = vshrl.u32 %v2921_v19, 16 }
 0x241   : > { %v5279_v14 = vadd.f32 %v5278_v32, %v5248_v52  ;;  %v5317_v42 = vmul.f32 %v5248_v52, %v5248_v52  ;;  %v4471_v45 = vadd.f32 %v4395_v49, %v4189_v15  ;;  %v7849_v31 = vpack.c.b16 %v4008_v29, %v4007_v30  ;;  %v2923_v32 = vld [vmem:[#allocation2 + $0xdc] sm:$0x1] }
 0x242   : > { %v5080_v1 = vpop.f32.mrf.mxu0  ;;  %3504 = vmatmul.bf16.gmra.mxu1 %v8089_v60  ;;  %v4825_v39 = vsel %vm6829_vm5, %v4820_v36, %v4824_v26  ;;  %v4830_v5 = vrot.slane %v4829_v47, 4  ;;  %v4834_v24 = vrot.slane %v4832_v9, 5  ;;  %v3224_v7 = vrot.slane %v3222_v46, 4  ;;  %v3606_v47 = vld [vmem:[#allocation2 + $0xe8] sm:$0xf] }
 0x243   : > { %v5348_v44 = vadd.f32 %v5347_v54, %v5317_v42  ;;  %v5153_v16 = vadd.f32 %v5077_v12, %v4471_v45  ;;  %4155 = vmatmul.bf16.gmra.mxu2 %v7803_v17  ;;  %v8090_v12 = vpack.c.b16 %v7820_v2, %v7814_v57  ;;  %v7856_v17 = vunpack.c.l.b16 %v4825_v39  ;;  %v3604_v57 = vld [vmem:[#allocation2 + $0xe0] sm:$0x8]  ;;  %v3605_v2 = vld [vmem:[#allocation2 + $0xe4] sm:$0xf] }
 0x244   : > { %4437 = vmatmul.bf16.gmra.mxu3 %v6187_v35  ;;  %v3227_v54 = vrot.slane %v3225_v37, 5  ;;  %v4835_v15 = vsel %vm6829_vm5, %v4830_v5, %v4834_v24  ;;  %v3231_v35 = vshll.u32 %v2922_v8, 16  ;;  %v3235_v49 = vshrl.u32 %v2922_v8, 16  ;;  %v8091_v42 = vld [vmem:[#allocation28_spill] sm:$0xff] }
 0x245   : > { %v5185_v0 = vpack.c.bf16 %v5153_v16, %v5153_v16  ;;  %v6226_v55 = vpack.c.bf16 %v5153_v16, %v5152_v48  ;;  %5119 = vmatmul.bf16.gmra.mxu0 %v8090_v12  ;;  %v3241_v30 = vshll.u32 %v2923_v32, 16  ;;  %v7861_v48 = vunpack.c.l.b16 %v4835_v15  ;;  %v4536_v12 = vld [vmem:[#allocation2 + $0xe4] sm:$0xf] }
 0x246   : > { %v4116_v52 = vpop.f32.mrf.mxu2  ;;  %v3228_v40 = vor.u32 %v3227_v54, %v3224_v7  ;;  %v3233_v29 = vrot.slane %v3231_v35, 5  ;;  %v3237_v60 = vrot.slane %v3235_v49, 4  ;;  %v3881_v39 = vshrl.u32 %v3604_v57, 16 }
 0x247   : > { %6298 = vst [vmem:[%s7824_s1 + $0x8] sm:$0xff] %v6226_v55   ;;  %v5249_v38 = vunpack.c.l.bf16 %v5185_v0  ;;  %v4190_v26 = vadd.f32 %v4116_v52, %v3539_v23  ;;  %v4398_v19 = vpop.f32.mrf.mxu3  ;;  %v3467_v33 = vpop.f32.mrf.mxu1  ;;  %v3243_v36 = vrot.slane %v3241_v30, 5  ;;  %v4992_v8 = vpack.c.b16 %v7861_v48, %v7856_v17 }
 0x248   : > { %v3540_v45 = vadd.f32 %v3467_v33, %v8091_v42  ;;  %v3229_v32 = vrot.slane %v3228_v40, 4  ;;  %v3238_v37 = vor.u32 %v3237_v60, %v3233_v29  ;;  %v3886_v5 = vshrl.u32 %v3605_v2, 16 }
 0x249   : > { %v5280_v9 = vadd.f32 %v5279_v14, %v5249_v38  ;;  %v5318_v46 = vmul.f32 %v5249_v38, %v5249_v38  ;;  %v4472_v16 = vadd.f32 %v4398_v19, %v4190_v26  ;;  %v3889_v0 = vshll.u32 %v3605_v2, 16 }
 0x24a   : > { %v5082_v23 = vpop.f32.mrf.mxu0  ;;  %v3895_v55 = vshrl.u32 %v3606_v47, 16  ;;  %v3234_v54 = vsel %vm6829_vm5, %v3229_v32, %v3233_v29  ;;  %v3239_v52 = vrot.slane %v3238_v37, 4  ;;  %v5925_v14 = vrot.slane %v3881_v39, 11  ;;  %v4537_v29 = vld [vmem:[#allocation2 + $0xe8] sm:$0xf] }
 0x24b   : > { %v5349_v24 = vadd.f32 %v5348_v44, %v5318_v46  ;;  %v5154_v7 = vadd.f32 %v5080_v1, %v4472_v16  ;;  %v3888_v15 = vrot.slane %v3886_v5, 7  ;;  %v7868_v49 = vunpack.c.l.b16 %v3234_v54  ;;  %v6188_v46 = vld [vmem:[#allocation2 + $0xd4] sm:$0xff]  ;;  %v4538_v5 = vld [vmem:[#allocation2 + $0xec] sm:$0x1] }
 0x24c   : > { %v3897_v17 = vrot.slane %v3895_v55, 7  ;;  %v3898_v30 = vshll.u32 %v3606_v47, 16  ;;  %v3244_v26 = vsel %vm6829_vm5, %v3239_v52, %v3243_v36  ;;  %v4837_v19 = vshrl.u32 %v4536_v12, 16 }
 0x24d   : > { %v5186_v35 = vpack.c.bf16 %v5154_v7, %v5154_v7  ;;  %v3891_v44 = vor.u32 %v3889_v0, %v3888_v15  ;;  %v3893_v1 = vrot.slane %v3888_v15, 4  ;;  %v7872_v2 = vunpack.c.l.b16 %v3244_v26  ;;  %v2924_v0 = vld [vmem:[#allocation2 + $0xe4] sm:$0xf] }
 0x24e   : > { %v4118_v38 = vpop.f32.mrf.mxu2  ;;  %v3900_v42 = vor.u32 %v3898_v30, %v3897_v17  ;;  %v4839_v16 = vrot.slane %v4837_v19, 4  ;;  %v4840_v32 = vshll.u32 %v4536_v12, 16  ;;  %v8092_v54 = vpack.c.b16 %v7836_v41, %v7832_v18 }
 0x24f   : > { %v5250_v33 = vunpack.c.l.bf16 %v5186_v35  ;;  %v4191_v48 = vadd.f32 %v4118_v38, %v3540_v45  ;;  %v4400_v40 = vpop.f32.mrf.mxu3  ;;  %v3470_v57 = vpop.f32.mrf.mxu1  ;;  %v3892_v47 = vsel %vm6825_vm4, %v5925_v14, %v3891_v44  ;;  %v3378_v45 = vpack.c.b16 %v7872_v2, %v7868_v49  ;;  %v2925_v44 = vld [vmem:[#allocation2 + $0xe8] sm:$0xf] }
 0x250   : > { %v3541_v60 = vadd.f32 %v3470_v57, %v7229_v22  ;;  %v3901_v22 = vsel %vm6825_vm4, %v3893_v1, %v3900_v42  ;;  %v4009_v52 = vunpack.c.l.b16 %v3892_v47  ;;  %v4842_v14 = vrot.slane %v4840_v32, 5  ;;  %v8093_v32 = vld [vmem:[#allocation29_spill] sm:$0xff] }
 0x251   : > { %v5281_v36 = vadd.f32 %v5280_v9, %v5250_v33  ;;  %v5319_v37 = vmul.f32 %v5250_v33, %v5250_v33  ;;  %v4473_v39 = vadd.f32 %v4400_v40, %v4191_v48  ;;  %v4846_v15 = vshll.u32 %v4537_v29, 16 }
 0x252   : > { %v5085_v55 = vpop.f32.mrf.mxu0  ;;  %3509 = vmatmul.bf16.gmra.mxu1 %v8092_v54  ;;  %v4010_v35 = vunpack.c.l.b16 %v3901_v22  ;;  %v4850_v17 = vshrl.u32 %v4537_v29, 16  ;;  %v4843_v30 = vor.u32 %v4842_v14, %v4839_v16  ;;  %v4856_v26 = vshll.u32 %v4538_v5, 16 }
 0x253   : > { %v5350_v12 = vadd.f32 %v5349_v24, %v5319_v37  ;;  %v5155_v9 = vadd.f32 %v5082_v23, %v4473_v39  ;;  %4160 = vmatmul.bf16.gmra.mxu2 %v7849_v31  ;;  %v4848_v38 = vrot.slane %v4846_v15, 5  ;;  %v3246_v18 = vshrl.u32 %v2924_v0, 16 }
 0x254   : > { %4442 = vmatmul.bf16.gmra.mxu3 %v6188_v46  ;;  %v7885_v1 = vpack.c.b16 %v4010_v35, %v4009_v52  ;;  %v4852_v33 = vrot.slane %v4850_v17, 4  ;;  %v4844_v24 = vrot.slane %v4843_v30, 4  ;;  %v4858_v23 = vrot.slane %v4856_v26, 5  ;;  %v3608_v30 = vld [vmem:[#allocation2 + $0xf4] sm:$0xf] }
 0x255   : > { %v5187_v41 = vpack.c.bf16 %v5155_v9, %v5155_v9  ;;  %v6231_v19 = vpack.c.bf16 %v5155_v9, %v5154_v7  ;;  %5124 = vmatmul.bf16.gmra.mxu0 %v4992_v8  ;;  %v3248_v40 = vrot.slane %v3246_v18, 4  ;;  %v3249_v31 = vshll.u32 %v2924_v0, 16  ;;  %v2926_v7 = vld [vmem:[#allocation2 + $0xec] sm:$0x1]  ;;  %v3607_v0 = vld [vmem:[#allocation2 + $0xf0] sm:$0x8] }
 0x256   : > { %v4121_v48 = vpop.f32.mrf.mxu2  ;;  %v4853_v47 = vor.u32 %v4852_v33, %v4848_v38  ;;  %v3255_v16 = vshll.u32 %v2925_v44, 16  ;;  %v4849_v8 = vsel %vm6829_vm5, %v4844_v24, %v4848_v38  ;;  %v3259_v5 = vshrl.u32 %v2925_v44, 16 }
 0x257   : > { %6299 = vst [vmem:[%s7824_s1 + $0x10] sm:$0xff] %v6231_v19   ;;  %v5251_v57 = vunpack.c.l.bf16 %v5187_v41  ;;  %v4192_v42 = vadd.f32 %v4121_v48, %v3541_v60  ;;  %v4403_v29 = vpop.f32.mrf.mxu3  ;;  %v3472_v46 = vpop.f32.mrf.mxu1  ;;  %v3251_v39 = vrot.slane %v3249_v31, 5  ;;  %v4973_v9 = vunpack.c.l.b16 %v4849_v8  ;;  %v3609_v31 = vld [vmem:[#allocation2 + $0xf8] sm:$0xf] }
 0x258   : > { %v3542_v37 = vadd.f32 %v3472_v46, %v8093_v32  ;;  %v4854_v14 = vrot.slane %v4853_v47, 4  ;;  %v3257_v35 = vrot.slane %v3255_v16, 5  ;;  %v3261_v17 = vrot.slane %v3259_v5, 4 }
 0x259   : > { %v5282_v54 = vadd.f32 %v5281_v36, %v5251_v57  ;;  %v5320_v22 = vmul.f32 %v5251_v57, %v5251_v57  ;;  %v4474_v52 = vadd.f32 %v4403_v29, %v4192_v42  ;;  %v3252_v60 = vor.u32 %v3251_v39, %v3248_v40  ;;  %v4539_v39 = vld [vmem:[#allocation2 + $0xf4] sm:$0xf] }
 0x25a   : > { %v5087_v15 = vpop.f32.mrf.mxu0  ;;  %v4859_v41 = vsel %vm6829_vm5, %v4854_v14, %v4858_v23  ;;  %v3265_v38 = vshll.u32 %v2926_v7, 16  ;;  %v3262_v44 = vor.u32 %v3261_v17, %v3257_v35  ;;  %v3903_v36 = vshrl.u32 %v3607_v0, 16 }
 0x25b   : > { %v5351_v26 = vadd.f32 %v5350_v12, %v5320_v22  ;;  %v5156_v18 = vadd.f32 %v5085_v55, %v4474_v52  ;;  %v4974_v19 = vunpack.c.l.b16 %v4859_v41  ;;  %v3253_v33 = vrot.slane %v3252_v60, 4  ;;  %v6189_v22 = vld [vmem:[#allocation2 + $0xe4] sm:$0xff] }
 0x25c   : > { %v3267_v24 = vrot.slane %v3265_v38, 5  ;;  %v3908_v57 = vshrl.u32 %v3608_v30, 16  ;;  %v3911_v42 = vshll.u32 %v3608_v30, 16  ;;  %v3263_v12 = vrot.slane %v3262_v44, 4 }
 0x25d   : > { %v5188_v48 = vpack.c.bf16 %v5156_v18, %v5156_v18  ;;  %v4993_v40 = vpack.c.b16 %v4974_v19, %v4973_v9  ;;  %v3258_v46 = vsel %vm6829_vm5, %v3253_v33, %v3257_v35  ;;  %v5926_v55 = vrot.slane %v3903_v36, 11  ;;  %v4541_v36 = vld [vmem:[#allocation2 + $0xfc] sm:$0x1] }
 0x25e   : > { %v4123_v29 = vpop.f32.mrf.mxu2  ;;  %v7895_v8 = vunpack.c.l.b16 %v3258_v46  ;;  %v3910_v7 = vrot.slane %v3908_v57, 7  ;;  %v3268_v52 = vsel %vm6829_vm5, %v3263_v12, %v3267_v24  ;;  %v3917_v14 = vshrl.u32 %v3609_v31, 16 }
 0x25f   : > { %v5252_v47 = vunpack.c.l.bf16 %v5188_v48  ;;  %v4193_v16 = vadd.f32 %v4123_v29, %v3542_v37  ;;  %v4405_v23 = vpop.f32.mrf.mxu3  ;;  %v3475_v32 = vpop.f32.mrf.mxu1  ;;  %v3920_v0 = vshll.u32 %v3609_v31, 16  ;;  %v7900_v17 = vunpack.c.l.b16 %v3268_v52  ;;  %v4540_v37 = vld [vmem:[#allocation2 + $0xf8] sm:$0xf] }
 0x260   : > { %v3543_v5 = vadd.f32 %v3475_v32, %v7270_v28  ;;  %v3913_v41 = vor.u32 %v3911_v42, %v3910_v7  ;;  %v3915_v38 = vrot.slane %v3910_v7, 4  ;;  %v3919_v28 = vrot.slane %v3917_v14, 7  ;;  %v2927_v42 = vld [vmem:[#allocation2 + $0xf4] sm:$0xf]  ;;  %v2928_v52 = vld [vmem:[#allocation2 + $0xf8] sm:$0xf] }
 0x261   : > { %v5283_v9 = vadd.f32 %v5282_v54, %v5252_v47  ;;  %v5321_v60 = vmul.f32 %v5252_v47, %v5252_v47  ;;  %v4475_v35 = vadd.f32 %v4405_v23, %v4193_v16  ;;  %v4861_v19 = vshrl.u32 %v4539_v39, 16 }
 0x262   : > { %v5090_v30 = vpop.f32.mrf.mxu0  ;;  %3514 = vmatmul.bf16.gmra.mxu1 %v3378_v45  ;;  %v3379_v54 = vpack.c.b16 %v7900_v17, %v7895_v8  ;;  %v4864_v48 = vshll.u32 %v4539_v39, 16  ;;  %v3914_v24 = vsel %vm6825_vm4, %v5926_v55, %v3913_v41  ;;  %v3922_v49 = vor.u32 %v3920_v0, %v3919_v28 }
 0x263   : > { %v5352_v33 = vadd.f32 %v5351_v26, %v5321_v60  ;;  %v5157_v44 = vadd.f32 %v5087_v15, %v4475_v35  ;;  %4165 = vmatmul.bf16.gmra.mxu2 %v7885_v1  ;;  %v4863_v2 = vrot.slane %v4861_v19, 4  ;;  %v4870_v45 = vshll.u32 %v4540_v37, 16 }
 0x264   : > { %4447 = vmatmul.bf16.gmra.mxu3 %v6189_v22  ;;  %v4011_v26 = vunpack.c.l.b16 %v3914_v24  ;;  %v4866_v15 = vrot.slane %v4864_v48, 5  ;;  %v3923_v29 = vsel %vm6825_vm4, %v3915_v38, %v3922_v49  ;;  %v4874_v12 = vshrl.u32 %v4540_v37, 16  ;;  %v2929_v38 = vld [vmem:[#allocation2 + $0xfc] sm:$0x1] }
 0x265   : > { %v5189_v31 = vpack.c.bf16 %v5157_v44, %v5157_v44  ;;  %v6236_v57 = vpack.c.bf16 %v5157_v44, %v5156_v18  ;;  %5129 = vmatmul.bf16.gmra.mxu0 %v4993_v40  ;;  %v4872_v46 = vrot.slane %v4870_v45, 5  ;;  %v4880_v47 = vshll.u32 %v4541_v36, 16 }
 0x266   : > { %v4126_v1 = vpop.f32.mrf.mxu2  ;;  %v4012_v7 = vunpack.c.l.b16 %v3923_v29  ;;  %v4867_v39 = vor.u32 %v4866_v15, %v4863_v2  ;;  %v4876_v40 = vrot.slane %v4874_v12, 4  ;;  %v3270_v14 = vshrl.u32 %v2927_v42, 16  ;;  %v3610_v2 = vld [vmem:[#allocation2 + $0x100] sm:$0x8]  ;;  %v3611_v29 = vld [vmem:[#allocation2 + $0x104] sm:$0xf] }
 0x267   : > { %6300 = vst [vmem:[%s7824_s1 + $0x18] sm:$0xff] %v6236_v57   ;;  %v5253_v16 = vunpack.c.l.bf16 %v5189_v31  ;;  %v4194_v23 = vadd.f32 %v4126_v1, %v3543_v5  ;;  %v4408_v55 = vpop.f32.mrf.mxu3  ;;  %v3477_v32 = vpop.f32.mrf.mxu1  ;;  %v4882_v22 = vrot.slane %v4880_v47, 5  ;;  %v3273_v5 = vshll.u32 %v2927_v42, 16 }
 0x268   : > { %v3544_v18 = vadd.f32 %v3477_v32, %v7278_v21  ;;  %v4030_v41 = vpack.c.b16 %v4012_v7, %v4011_v26  ;;  %v4868_v28 = vrot.slane %v4867_v39, 4  ;;  %v4877_v19 = vor.u32 %v4876_v40, %v4872_v46  ;;  %v6190_v40 = vld [vmem:[#allocation2 + $0xf4] sm:$0xff] }
 0x269   : > { %v5284_v0 = vadd.f32 %v5283_v9, %v5253_v16  ;;  %v5322_v60 = vmul.f32 %v5253_v16, %v5253_v16  ;;  %v4476_v35 = vadd.f32 %v4408_v55, %v4194_v23  ;;  %v3272_v44 = vrot.slane %v3270_v14, 4  ;;  %v3612_v14 = vld [vmem:[#allocation2 + $0x108] sm:$0xf] }
 0x26a   : > { %v5092_v37 = vpop.f32.mrf.mxu0  ;;  %v3279_v24 = vshll.u32 %v2928_v52, 16  ;;  %v3283_v49 = vshrl.u32 %v2928_v52, 16  ;;  %v4873_v21 = vsel %vm6829_vm5, %v4868_v28, %v4872_v46  ;;  %v4878_v45 = vrot.slane %v4877_v19, 4 }
 0x26b   : > { %v5353_v36 = vadd.f32 %v5352_v33, %v5322_v60  ;;  %v5158_v48 = vadd.f32 %v5090_v30, %v4476_v35  ;;  %v3275_v31 = vrot.slane %v3273_v5, 5  ;;  %v3289_v9 = vshll.u32 %v2929_v38, 16 }
 0x26c   : > { %v4975_v15 = vunpack.c.l.b16 %v4873_v21  ;;  %v3281_v26 = vrot.slane %v3279_v24, 5  ;;  %v3285_v1 = vrot.slane %v3283_v49, 4  ;;  %v4883_v42 = vsel %vm6829_vm5, %v4878_v45, %v4882_v22  ;;  %v4542_v45 = vld [vmem:[#allocation2 + $0x104] sm:$0xf] }
 0x26d   : > { %v5190_v57 = vpack.c.bf16 %v5158_v48, %v5158_v48  ;;  %v3276_v33 = vor.u32 %v3275_v31, %v3272_v44  ;;  %v3291_v30 = vrot.slane %v3289_v9, 5  ;;  %v3925_v47 = vshrl.u32 %v3610_v2, 16  ;;  %v4543_v31 = vld [vmem:[#allocation2 + $0x108] sm:$0xf] }
 0x26e   : > { %v4128_v12 = vpop.f32.mrf.mxu2  ;;  %v4976_v46 = vunpack.c.l.b16 %v4883_v42  ;;  %v3286_v7 = vor.u32 %v3285_v1, %v3281_v26  ;;  %v3930_v35 = vshrl.u32 %v3611_v29, 16  ;;  %v3942_v9 = vshll.u32 %v3612_v14, 16 }
 0x26f   : > { %v5254_v16 = vunpack.c.l.bf16 %v5190_v57  ;;  %v4195_v23 = vadd.f32 %v4128_v12, %v3544_v18  ;;  %v4410_v55 = vpop.f32.mrf.mxu3  ;;  %v3480_v32 = vpop.f32.mrf.mxu1  ;;  %v3277_v52 = vrot.slane %v3276_v33, 4  ;;  %v5927_v60 = vrot.slane %v3925_v47, 11 }
 0x270   : > { %v3545_v39 = vadd.f32 %v3480_v32, %v7321_v27  ;;  %v4994_v22 = vpack.c.b16 %v4976_v46, %v4975_v15  ;;  %v3287_v5 = vrot.slane %v3286_v7, 4  ;;  %v3932_v24 = vrot.slane %v3930_v35, 7  ;;  %v2930_v7 = vld [vmem:[#allocation2 + $0x104] sm:$0xf] }
 0x271   : > { %v5285_v38 = vadd.f32 %v5284_v0, %v5254_v16  ;;  %v5323_v28 = vmul.f32 %v5254_v16, %v5254_v16  ;;  %v4477_v19 = vadd.f32 %v4410_v55, %v4195_v23  ;;  %v3282_v18 = vsel %vm6829_vm5, %v3277_v52, %v3281_v26  ;;  %v4544_v55 = vld [vmem:[#allocation2 + $0x10c] sm:$0x1] }
 0x272   : > { %v5095_v44 = vpop.f32.mrf.mxu0  ;;  %3519 = vmatmul.bf16.gmra.mxu1 %v3379_v54  ;;  %v3933_v27 = vshll.u32 %v3611_v29, 16  ;;  %v7924_v21 = vunpack.c.l.b16 %v3282_v18  ;;  %v3939_v0 = vshrl.u32 %v3612_v14, 16  ;;  %v3292_v8 = vsel %vm6829_vm5, %v3287_v5, %v3291_v30  ;;  %v2931_v18 = vld [vmem:[#allocation2 + $0x108] sm:$0xf] }
 0x273   : > { %v5354_v49 = vadd.f32 %v5353_v36, %v5323_v28  ;;  %v5159_v2 = vadd.f32 %v5092_v37, %v4477_v19  ;;  %4170 = vmatmul.bf16.gmra.mxu2 %v4030_v41  ;;  %v3937_v54 = vrot.slane %v3932_v24, 4  ;;  %v7928_v26 = vunpack.c.l.b16 %v3292_v8 }
 0x274   : > { %4452 = vmatmul.bf16.gmra.mxu3 %v6190_v40  ;;  %v3935_v17 = vor.u32 %v3933_v27, %v3932_v24  ;;  %v3941_v37 = vrot.slane %v3939_v0, 7  ;;  %v4885_v1 = vshrl.u32 %v4542_v45, 16  ;;  %v4888_v29 = vshll.u32 %v4542_v45, 16 }
 0x275   : > { %v5191_v57 = vpack.c.bf16 %v5159_v2, %v5159_v2  ;;  %v6241_v15 = vpack.c.bf16 %v5159_v2, %v5158_v48  ;;  %5134 = vmatmul.bf16.gmra.mxu0 %v4994_v22  ;;  %v4894_v12 = vshll.u32 %v4543_v31, 16  ;;  %v3380_v48 = vpack.c.b16 %v7928_v26, %v7924_v21 }
 0x276   : > { %v4131_v41 = vpop.f32.mrf.mxu2  ;;  %v3936_v36 = vsel %vm6825_vm4, %v5927_v60, %v3935_v17  ;;  %v3944_v16 = vor.u32 %v3942_v9, %v3941_v37  ;;  %v4887_v32 = vrot.slane %v4885_v1, 4  ;;  %v4890_v46 = vrot.slane %v4888_v29, 5 }
 0x277   : > { %6301 = vst [vmem:[%s7824_s1 + $0x20] sm:$0xff] %v6241_v15   ;;  %v5255_v42 = vunpack.c.l.bf16 %v5191_v57  ;;  %v4196_v33 = vadd.f32 %v4131_v41, %v3545_v39  ;;  %v4413_v30 = vpop.f32.mrf.mxu3  ;;  %v3482_v47 = vpop.f32.mrf.mxu1  ;;  %v4013_v23 = vunpack.c.l.b16 %v3936_v36  ;;  %v4896_v19 = vrot.slane %v4894_v12, 5  ;;  %v3613_v12 = vld [vmem:[#allocation2 + $0x110] sm:$0x8] }
 0x278   : > { %v3945_v60 = vsel %vm6825_vm4, %v3937_v54, %v3944_v16  ;;  %v4891_v39 = vor.u32 %v4890_v46, %v4887_v32  ;;  %v4898_v22 = vshrl.u32 %v4543_v31, 16  ;;  %v4904_v27 = vshll.u32 %v4544_v55, 16  ;;  %v2932_v31 = vld [vmem:[#allocation2 + $0x10c] sm:$0x1] }
 0x279   : > { %v5286_v40 = vadd.f32 %v5285_v38, %v5255_v42  ;;  %v5324_v52 = vmul.f32 %v5255_v42, %v5255_v42  ;;  %v4478_v14 = vadd.f32 %v4413_v30, %v4196_v33  ;;  %v4014_v28 = vunpack.c.l.b16 %v3945_v60  ;;  %v6191_v42 = vld [vmem:[#allocation2 + $0x104] sm:$0xff] }
 0x27a   : > { %v5097_v35 = vpop.f32.mrf.mxu0  ;;  %v3294_v2 = vshrl.u32 %v2930_v7, 16  ;;  %v3546_v21 = vadd.f32 %v3482_v47, %v7323_v34  ;;  %v4892_v0 = vrot.slane %v4891_v39, 4  ;;  %v4900_v45 = vrot.slane %v4898_v22, 4 }
 0x27b   : > { %v5355_v5 = vadd.f32 %v5354_v49, %v5324_v52  ;;  %v5160_v24 = vadd.f32 %v5095_v44, %v4478_v14  ;;  %v3297_v38 = vshll.u32 %v2930_v7, 16  ;;  %v4906_v17 = vrot.slane %v4904_v27, 5  ;;  %v3614_v52 = vld [vmem:[#allocation2 + $0x114] sm:$0xf] }
 0x27c   : > { %v3296_v9 = vrot.slane %v3294_v2, 4  ;;  %v3303_v57 = vshll.u32 %v2931_v18, 16  ;;  %v4897_v15 = vsel %vm6829_vm5, %v4892_v0, %v4896_v19  ;;  %v4901_v26 = vor.u32 %v4900_v45, %v4896_v19  ;;  %v3615_v2 = vld [vmem:[#allocation2 + $0x118] sm:$0xf] }
 0x27d   : > { %v5192_v8 = vpack.c.bf16 %v5160_v24, %v5160_v24  ;;  %v3299_v37 = vrot.slane %v3297_v38, 5  ;;  %v3307_v49 = vshrl.u32 %v2931_v18, 16  ;;  %v4031_v34 = vpack.c.b16 %v4014_v28, %v4013_v23 }
 0x27e   : > { %v4133_v54 = vpop.f32.mrf.mxu2  ;;  %v3305_v29 = vrot.slane %v3303_v57, 5  ;;  %v4902_v33 = vrot.slane %v4901_v26, 4  ;;  %v4977_v30 = vunpack.c.l.b16 %v4897_v15  ;;  %v3313_v7 = vshll.u32 %v2932_v31, 16 }
 0x27f   : > { %v5256_v44 = vunpack.c.l.bf16 %v5192_v8  ;;  %v4197_v41 = vadd.f32 %v4133_v54, %v3546_v21  ;;  %v4415_v36 = vpop.f32.mrf.mxu3  ;;  %v3485_v1 = vpop.f32.mrf.mxu1  ;;  %v3300_v47 = vor.u32 %v3299_v37, %v3296_v9  ;;  %v3309_v16 = vrot.slane %v3307_v49, 4 }
 0x280   : > { %v4907_v60 = vsel %vm6829_vm5, %v4902_v33, %v4906_v17  ;;  %v3947_v23 = vshrl.u32 %v3613_v12, 16  ;;  %v3315_v27 = vrot.slane %v3313_v7, 5  ;;  %v3952_v0 = vshrl.u32 %v3614_v52, 16 }
 0x281   : > { %v5287_v55 = vadd.f32 %v5286_v40, %v5256_v44  ;;  %v5325_v32 = vmul.f32 %v5256_v44, %v5256_v44  ;;  %v4479_v46 = vadd.f32 %v4415_v36, %v4197_v41  ;;  %v3301_v39 = vrot.slane %v3300_v47, 4  ;;  %v4545_v44 = vld [vmem:[#allocation2 + $0x114] sm:$0xf] }
 0x282   : > { %v5100_v14 = vpop.f32.mrf.mxu0  ;;  %3524 = vmatmul.bf16.gmra.mxu1 %v3380_v48  ;;  %v3310_v19 = vor.u32 %v3309_v16, %v3305_v29  ;;  %v4978_v18 = vunpack.c.l.b16 %v4907_v60  ;;  %v3547_v40 = vadd.f32 %v3485_v1, %v7370_v59  ;;  %v5928_v17 = vrot.slane %v3947_v23, 11 }
 0x283   : > { %v5356_v28 = vadd.f32 %v5355_v5, %v5325_v32  ;;  %v5161_v22 = vadd.f32 %v5097_v35, %v4479_v46  ;;  %4175 = vmatmul.bf16.gmra.mxu2 %v4031_v34  ;;  %v3306_v21 = vsel %vm6829_vm5, %v3301_v39, %v3305_v29  ;;  %v3954_v5 = vrot.slane %v3952_v0, 7  ;;  %v4546_v34 = vld [vmem:[#allocation2 + $0x118] sm:$0xf]  ;;  %v4547_v32 = vld [vmem:[#allocation2 + $0x11c] sm:$0x1] }
 0x284   : > { %4457 = vmatmul.bf16.gmra.mxu3 %v6191_v42  ;;  %v3311_v48 = vrot.slane %v3310_v19, 4  ;;  %v4995_v8 = vpack.c.b16 %v4978_v18, %v4977_v30  ;;  %v3955_v57 = vshll.u32 %v3614_v52, 16  ;;  %v3961_v54 = vshrl.u32 %v3615_v2, 16 }
 0x285   : > { %v5193_v45 = vpack.c.bf16 %v5161_v22, %v5161_v22  ;;  %v6246_v38 = vpack.c.bf16 %v5161_v22, %v5160_v24  ;;  %v3364_v37 = vunpack.c.l.b16 %v3306_v21  ;;  %v3964_v49 = vshll.u32 %v3615_v2, 16 }
 0x286   : > { %v4136_v9 = vpop.f32.mrf.mxu2  ;;  %v3316_v35 = vsel %vm6829_vm5, %v3311_v48, %v3315_v27  ;;  %5139 = vmatmul.bf16.gmra.mxu0 %v4995_v8  ;;  %v3957_v24 = vor.u32 %v3955_v57, %v3954_v5  ;;  %v3959_v36 = vrot.slane %v3954_v5, 4  ;;  %v3963_v1 = vrot.slane %v3961_v54, 7 }
 0x287   : > { %6302 = vst [vmem:[%s7824_s1 + $0x28] sm:$0xff] %v6246_v38   ;;  %v5257_v15 = vunpack.c.l.bf16 %v5193_v45  ;;  %v4198_v59 = vadd.f32 %v4136_v9, %v3547_v40  ;;  %v4418_v26 = vpop.f32.mrf.mxu3  ;;  %v3487_v31 = vpop.f32.mrf.mxu1  ;;  %v3365_v41 = vunpack.c.l.b16 %v3316_v35  ;;  %v4909_v46 = vshrl.u32 %v4545_v44, 16  ;;  %v6192_v9 = vld [vmem:[#allocation2 + $0x114] sm:$0xff] }
 0x288   : > { %v3548_v33 = vadd.f32 %v3487_v31, %v7372_v6  ;;  %v3958_v47 = vsel %vm6825_vm4, %v5928_v17, %v3957_v24  ;;  %v3966_v16 = vor.u32 %v3964_v49, %v3963_v1  ;;  %v4912_v7 = vshll.u32 %v4545_v44, 16 }
 0x289   : > { %v5288_v29 = vadd.f32 %v5287_v55, %v5257_v15  ;;  %v5326_v12 = vmul.f32 %v5257_v15, %v5257_v15  ;;  %v4480_v42 = vadd.f32 %v4418_v26, %v4198_v59  ;;  %v4015_v39 = vunpack.c.l.b16 %v3958_v47 }
 0x28a   : > { %v5102_v30 = vpop.f32.mrf.mxu0  ;;  %v4918_v19 = vshll.u32 %v4546_v34, 16  ;;  %v3967_v23 = vsel %vm6825_vm4, %v3959_v36, %v3966_v16  ;;  %v4911_v55 = vrot.slane %v4909_v46, 4  ;;  %v4914_v22 = vrot.slane %v4912_v7, 5 }
 0x28b   : > { %v5357_v52 = vadd.f32 %v5356_v28, %v5326_v12  ;;  %v5162_v60 = vadd.f32 %v5100_v14, %v4480_v42  ;;  %v4922_v18 = vshrl.u32 %v4546_v34, 16  ;;  %v4016_v6 = vunpack.c.l.b16 %v3967_v23 }
 0x28c   : > { %v4920_v2 = vrot.slane %v4918_v19, 5  ;;  %v4928_v40 = vshll.u32 %v4547_v32, 16  ;;  %v3381_v48 = vpack.c.b16 %v3365_v41, %v3364_v37  ;;  %v4915_v0 = vor.u32 %v4914_v22, %v4911_v55 }
 0x28d   : > { %v5194_v27 = vpack.c.bf16 %v5162_v60, %v5162_v60  ;;  %v4924_v45 = vrot.slane %v4922_v18, 4  ;;  %v4032_v17 = vpack.c.b16 %v4016_v6, %v4015_v39 }
 0x28e   : > { %v4138_v21 = vpop.f32.mrf.mxu2  ;;  %v4916_v35 = vrot.slane %v4915_v0, 4  ;;  %v4930_v5 = vrot.slane %v4928_v40, 5 }
 0x28f   : > { %v5258_v38 = vunpack.c.l.bf16 %v5194_v27  ;;  %v4199_v8 = vadd.f32 %v4138_v21, %v3548_v33  ;;  %v4420_v28 = vpop.f32.mrf.mxu3  ;;  %v3490_v14 = vpop.f32.mrf.mxu1  ;;  %v4925_v51 = vor.u32 %v4924_v45, %v4920_v2 }
 0x290   : > { %v4921_v26 = vsel %vm6829_vm5, %v4916_v35, %v4920_v2  ;;  %v3549_v1 = vadd.f32 %v3490_v14, %v7414_v43 }
 0x291   : > { %v5289_v57 = vadd.f32 %v5288_v29, %v5258_v38  ;;  %v5327_v54 = vmul.f32 %v5258_v38, %v5258_v38  ;;  %v4481_v15 = vadd.f32 %v4420_v28, %v4199_v8  ;;  %v4926_v31 = vrot.slane %v4925_v51, 4 }
 0x292   : > { %v5105_v59 = vpop.f32.mrf.mxu0  ;;  %3529 = vmatmul.bf16.gmra.mxu1 %v3381_v48  ;;  %v4979_v44 = vunpack.c.l.b16 %v4921_v26 }
 0x293   : > { %v5358_v37 = vadd.f32 %v5357_v52, %v5327_v54  ;;  %v5163_v49 = vadd.f32 %v5102_v30, %v4481_v15  ;;  %4180 = vmatmul.bf16.gmra.mxu2 %v4032_v17  ;;  %v4931_v41 = vsel %vm6829_vm5, %v4926_v31, %v4930_v5 }
 0x294   : > { %4462 = vmatmul.bf16.gmra.mxu3 %v6192_v9  ;;  %v4980_v34 = vunpack.c.l.b16 %v4931_v41 }
 0x295   : > { %v5195_v24 = vpack.c.bf16 %v5163_v49, %v5163_v49  ;;  %v6251_v36 = vpack.c.bf16 %v5163_v49, %v5162_v60 }
 0x296   : > { %v4141_v29 = vpop.f32.mrf.mxu2  ;;  %v4996_v42 = vpack.c.b16 %v4980_v34, %v4979_v44 }
 0x297   : > { %6303 = vst [vmem:[%s7824_s1 + $0x30] sm:$0xff] %v6251_v36   ;;  %v5259_v12 = vunpack.c.l.bf16 %v5195_v24  ;;  %v4200_v33 = vadd.f32 %v4141_v29, %v3549_v1  ;;  %v4423_v47 = vpop.f32.mrf.mxu3  ;;  %v3492_v16 = vpop.f32.mrf.mxu1 }
 0x298   : > { %5144 = vmatmul.bf16.gmra.mxu0 %v4996_v42  ;;  %v3550_v60 = vadd.f32 %v3492_v16, %v7422_v10 }
 0x299   : > { %v5290_v32 = vadd.f32 %v5289_v57, %v5259_v12  ;;  %v5328_v30 = vmul.f32 %v5259_v12, %v5259_v12  ;;  %v4482_v46 = vadd.f32 %v4423_v47, %v4200_v33  ;;  %v8094_v12 = vld [vmem:[#allocation30_spill] sm:$0xff] }
 0x29a   : > { %v5107_v7 = vpop.f32.mrf.mxu0 }
 0x29b   : > { %v5359_v52 = vadd.f32 %v5358_v37, %v5328_v30  ;;  %v5164_v56 = vadd.f32 %v5105_v59, %v4482_v46 }
 0x29d   : > { %v5196_v39 = vpack.c.bf16 %v5164_v56, %v5164_v56 }
 0x29e   : > { %v4143_v43 = vpop.f32.mrf.mxu2 }
 0x29f   : > { %v5260_v19 = vunpack.c.l.bf16 %v5196_v39  ;;  %v4201_v23 = vadd.f32 %v4143_v43, %v3550_v60  ;;  %v4425_v55 = vpop.f32.mrf.mxu3  ;;  %v3495_v22 = vpop.f32.mrf.mxu1  ;;  %v8095_v43 = vld [vmem:[#allocation31_spill] sm:$0xff] }
 0x2a0   : > { %v3551_v45 = vadd.f32 %v3495_v22, %v7459_v25 }
 0x2a1   : > { %v5291_v18 = vadd.f32 %v5290_v32, %v5260_v19  ;;  %v5329_v27 = vmul.f32 %v5260_v19, %v5260_v19  ;;  %v4483_v6 = vadd.f32 %v4425_v55, %v4201_v23 }
 0x2a2   : > { %v5110_v2 = vpop.f32.mrf.mxu0 }
 0x2a3   : > { %v5360_v40 = vadd.f32 %v5359_v52, %v5329_v27  ;;  %v5165_v21 = vadd.f32 %v5107_v7, %v4483_v6 }
 0x2a5   : > { %v5197_v48 = vpack.c.bf16 %v5165_v21, %v5165_v21  ;;  %v6256_v0 = vpack.c.bf16 %v5165_v21, %v5164_v56 }
 0x2a6   : > { %v4146_v38 = vpop.f32.mrf.mxu2 }
 0x2a7   : > { %6304 = vst [vmem:[%s7824_s1 + $0x38] sm:$0xff] %v6256_v0   ;;  %v5261_v8 = vunpack.c.l.bf16 %v5197_v48  ;;  %v4202_v10 = vadd.f32 %v4146_v38, %v3551_v45  ;;  %v4428_v28 = vpop.f32.mrf.mxu3  ;;  %v3497_v14 = vpop.f32.mrf.mxu1 }
 0x2a8   : > { %v3552_v15 = vadd.f32 %v3497_v14, %v7462_v13 }
 0x2a9   : > { %v5292_v17 = vadd.f32 %v5291_v18, %v5261_v8  ;;  %v5330_v9 = vmul.f32 %v5261_v8, %v5261_v8  ;;  %v4484_v35 = vadd.f32 %v4428_v28, %v4202_v10 }
 0x2aa   : > { %v5112_v51 = vpop.f32.mrf.mxu0 }
 0x2ab   : > { %v5361_v5 = vadd.f32 %v5360_v40, %v5330_v9  ;;  %v5166_v57 = vadd.f32 %v5110_v2, %v4484_v35 }
 0x2ad   : > { %v5198_v54 = vpack.c.bf16 %v5166_v57, %v5166_v57 }
 0x2ae   : > { %v4148_v59 = vpop.f32.mrf.mxu2 }
 0x2af   : > { %v5262_v26 = vunpack.c.l.bf16 %v5198_v54  ;;  %v4203_v31 = vadd.f32 %v4148_v59, %v3552_v15  ;;  %v4430_v25 = vpop.f32.mrf.mxu3  ;;  %v3500_v37 = vpop.f32.mrf.mxu1 }
 0x2b0   : > { %v3553_v42 = vadd.f32 %v3500_v37, %v8094_v12 }
 0x2b1   : > { %v5293_v49 = vadd.f32 %v5292_v17, %v5262_v26  ;;  %v5331_v44 = vmul.f32 %v5262_v26, %v5262_v26  ;;  %v4485_v41 = vadd.f32 %v4430_v25, %v4203_v31 }
 0x2b2   : > { %v5115_v24 = vpop.f32.mrf.mxu0 }
 0x2b3   : > { %v5362_v36 = vadd.f32 %v5361_v5, %v5331_v44  ;;  %v5167_v1 = vadd.f32 %v5112_v51, %v4485_v41 }
 0x2b5   : > { %v5199_v34 = vpack.c.bf16 %v5167_v1, %v5167_v1  ;;  %v6261_v29 = vpack.c.bf16 %v5167_v1, %v5166_v57 }
 0x2b6   : > { %v4151_v33 = vpop.f32.mrf.mxu2 }
 0x2b7   : > { %6305 = vst [vmem:[%s7824_s1 + $0x40] sm:$0xff] %v6261_v29   ;;  %v5263_v47 = vunpack.c.l.bf16 %v5199_v34  ;;  %v4204_v13 = vadd.f32 %v4151_v33, %v3553_v42  ;;  %v4433_v16 = vpop.f32.mrf.mxu3  ;;  %v3502_v32 = vpop.f32.mrf.mxu1 }
 0x2b8   : > { %v3554_v19 = vadd.f32 %v3502_v32, %v8095_v43 }
 0x2b9   : > { %v5294_v30 = vadd.f32 %v5293_v49, %v5263_v47  ;;  %v5332_v46 = vmul.f32 %v5263_v47, %v5263_v47  ;;  %v4486_v7 = vadd.f32 %v4433_v16, %v4204_v13 }
 0x2ba   : > { %v5117_v52 = vpop.f32.mrf.mxu0 }
 0x2bb   : > { %v5363_v56 = vadd.f32 %v5362_v36, %v5332_v46  ;;  %v5168_v39 = vadd.f32 %v5115_v24, %v4486_v7 }
 0x2bd   : > { %v5200_v60 = vpack.c.bf16 %v5168_v39, %v5168_v39 }
 0x2be   : > { %v4153_v23 = vpop.f32.mrf.mxu2 }
 0x2bf   : > { %v5264_v55 = vunpack.c.l.bf16 %v5200_v60  ;;  %v4205_v22 = vadd.f32 %v4153_v23, %v3554_v19  ;;  %v4435_v18 = vpop.f32.mrf.mxu3  ;;  %v3505_v27 = vpop.f32.mrf.mxu1 }
 0x2c0   : > { %v3555_v8 = vadd.f32 %v3505_v27, %v7562_v3 }
 0x2c1   : > { %v5295_v6 = vadd.f32 %v5294_v30, %v5264_v55  ;;  %v5333_v2 = vmul.f32 %v5264_v55, %v5264_v55  ;;  %v4487_v40 = vadd.f32 %v4435_v18, %v4205_v22 }
 0x2c2   : > { %v5120_v21 = vpop.f32.mrf.mxu0 }
 0x2c3   : > { %v5364_v48 = vadd.f32 %v5363_v56, %v5333_v2  ;;  %v5169_v0 = vadd.f32 %v5117_v52, %v4487_v40 }
 0x2c5   : > { %v5201_v45 = vpack.c.bf16 %v5169_v0, %v5169_v0  ;;  %v6266_v38 = vpack.c.bf16 %v5169_v0, %v5168_v39 }
 0x2c6   : > { %v4156_v10 = vpop.f32.mrf.mxu2 }
 0x2c7   : > { %6306 = vst [vmem:[%s7824_s1 + $0x48] sm:$0xff] %v6266_v38   ;;  %v5265_v28 = vunpack.c.l.bf16 %v5201_v45  ;;  %v4206_v14 = vadd.f32 %v4156_v10, %v3555_v8  ;;  %v4438_v17 = vpop.f32.mrf.mxu3  ;;  %v3507_v9 = vpop.f32.mrf.mxu1 }
 0x2c8   : > { %v3556_v26 = vadd.f32 %v3507_v9, %v7566_v58 }
 0x2c9   : > { %v5296_v35 = vadd.f32 %v5295_v6, %v5265_v28  ;;  %v5334_v51 = vmul.f32 %v5265_v28, %v5265_v28  ;;  %v4488_v5 = vadd.f32 %v4438_v17, %v4206_v14 }
 0x2ca   : > { %v5122_v57 = vpop.f32.mrf.mxu0 }
 0x2cb   : > { %v5365_v54 = vadd.f32 %v5364_v48, %v5334_v51  ;;  %v5170_v15 = vadd.f32 %v5120_v21, %v4488_v5 }
 0x2cd   : > { %v5202_v59 = vpack.c.bf16 %v5170_v15, %v5170_v15 }
 0x2ce   : > { %v4158_v31 = vpop.f32.mrf.mxu2 }
 0x2cf   : > { %v5266_v25 = vunpack.c.l.bf16 %v5202_v59  ;;  %v4207_v37 = vadd.f32 %v4158_v31, %v3556_v26  ;;  %v4440_v3 = vpop.f32.mrf.mxu3  ;;  %v3510_v49 = vpop.f32.mrf.mxu1 }
 0x2d0   : > { %v3557_v42 = vadd.f32 %v3510_v49, %v7612_v50 }
 0x2d1   : > { %v5297_v44 = vadd.f32 %v5296_v35, %v5266_v25  ;;  %v5335_v41 = vmul.f32 %v5266_v25, %v5266_v25  ;;  %v4489_v24 = vadd.f32 %v4440_v3, %v4207_v37 }
 0x2d2   : > { %v5125_v36 = vpop.f32.mrf.mxu0 }
 0x2d3   : > { %v5366_v1 = vadd.f32 %v5365_v54, %v5335_v41  ;;  %v5171_v34 = vadd.f32 %v5122_v57, %v4489_v24 }
 0x2d5   : > { %v5203_v29 = vpack.c.bf16 %v5171_v34, %v5171_v34  ;;  %v6271_v12 = vpack.c.bf16 %v5171_v34, %v5170_v15 }
 0x2d6   : > { %v4161_v33 = vpop.f32.mrf.mxu2 }
 0x2d7   : > { %6307 = vst [vmem:[%s7824_s1 + $0x50] sm:$0xff] %v6271_v12   ;;  %v5267_v47 = vunpack.c.l.bf16 %v5203_v29  ;;  %v4208_v58 = vadd.f32 %v4161_v33, %v3557_v42  ;;  %v4443_v13 = vpop.f32.mrf.mxu3  ;;  %v3512_v16 = vpop.f32.mrf.mxu1 }
 0x2d8   : > { %v3558_v60 = vadd.f32 %v3512_v16, %v7618_v11 }
 0x2d9   : > { %v5298_v32 = vadd.f32 %v5297_v44, %v5267_v47  ;;  %v5336_v30 = vmul.f32 %v5267_v47, %v5267_v47  ;;  %v4490_v46 = vadd.f32 %v4443_v13, %v4208_v58 }
 0x2da   : > { %v5127_v7 = vpop.f32.mrf.mxu0 }
 0x2db   : > { %v5367_v52 = vadd.f32 %v5366_v1, %v5336_v30  ;;  %v5172_v56 = vadd.f32 %v5125_v36, %v4490_v46 }
 0x2dd   : > { %v5204_v39 = vpack.c.bf16 %v5172_v56, %v5172_v56 }
 0x2de   : > { %v4163_v43 = vpop.f32.mrf.mxu2 }
 0x2df   : > { %v5268_v19 = vunpack.c.l.bf16 %v5204_v39  ;;  %v4209_v23 = vadd.f32 %v4163_v43, %v3558_v60  ;;  %v4445_v50 = vpop.f32.mrf.mxu3  ;;  %v3515_v55 = vpop.f32.mrf.mxu1 }
 0x2e0   : > { %v3559_v0 = vadd.f32 %v3515_v55, %v7660_v63 }
 0x2e1   : > { %v5299_v22 = vadd.f32 %v5298_v32, %v5268_v19  ;;  %v5337_v18 = vmul.f32 %v5268_v19, %v5268_v19  ;;  %v4491_v27 = vadd.f32 %v4445_v50, %v4209_v23 }
 0x2e2   : > { %v5130_v6 = vpop.f32.mrf.mxu0 }
 0x2e3   : > { %v5368_v2 = vadd.f32 %v5367_v52, %v5337_v18  ;;  %v5173_v40 = vadd.f32 %v5127_v7, %v4491_v27 }
 0x2e5   : > { %v5205_v21 = vpack.c.bf16 %v5173_v40, %v5173_v40  ;;  %v6276_v48 = vpack.c.bf16 %v5173_v40, %v5172_v56 }
 0x2e6   : > { %v4166_v45 = vpop.f32.mrf.mxu2 }
 0x2e7   : > { %6308 = vst [vmem:[%s7824_s1 + $0x58] sm:$0xff] %v6276_v48   ;;  %v5269_v38 = vunpack.c.l.bf16 %v5205_v21  ;;  %v4210_v11 = vadd.f32 %v4166_v45, %v3559_v0  ;;  %v4448_v8 = vpop.f32.mrf.mxu3  ;;  %v3517_v10 = vpop.f32.mrf.mxu1 }
 0x2e8   : > { %v3560_v57 = vadd.f32 %v3517_v10, %v7663_v53 }
 0x2e9   : > { %v5300_v28 = vadd.f32 %v5299_v22, %v5269_v38  ;;  %v5338_v14 = vmul.f32 %v5269_v38, %v5269_v38  ;;  %v4492_v17 = vadd.f32 %v4448_v8, %v4210_v11  ;;  %v8096_v8 = vld [vmem:[#allocation23_spill] sm:$0xff] }
 0x2ea   : > { %v5132_v9 = vpop.f32.mrf.mxu0 }
 0x2eb   : > { %v5369_v35 = vadd.f32 %v5368_v2, %v5338_v14  ;;  %v5174_v51 = vadd.f32 %v5130_v6, %v4492_v17 }
 0x2ed   : > { %v5206_v5 = vpack.c.bf16 %v5174_v51, %v5174_v51 }
 0x2ee   : > { %v4168_v54 = vpop.f32.mrf.mxu2 }
 0x2ef   : > { %v5270_v15 = vunpack.c.l.bf16 %v5206_v5  ;;  %v4211_v59 = vadd.f32 %v4168_v54, %v3560_v57  ;;  %v4450_v63 = vpop.f32.mrf.mxu3  ;;  %v3520_v26 = vpop.f32.mrf.mxu1 }
 0x2f0   : > { %v3561_v36 = vadd.f32 %v3520_v26, %v7678_v61  ;;  %v8097_v26 = vld [vmem:[#allocation25_spill] sm:$0xff] }
 0x2f1   : > { %v5301_v31 = vadd.f32 %v5300_v28, %v5270_v15  ;;  %v5339_v25 = vmul.f32 %v5270_v15, %v5270_v15  ;;  %v4493_v37 = vadd.f32 %v4450_v63, %v4211_v59 }
 0x2f2   : > { %v5135_v3 = vpop.f32.mrf.mxu0 }
 0x2f3   : > { %v5370_v49 = vadd.f32 %v5369_v35, %v5339_v25  ;;  %v5175_v44 = vadd.f32 %v5132_v9, %v4493_v37 }
 0x2f5   : > { %v5207_v41 = vpack.c.bf16 %v5175_v44, %v5175_v44  ;;  %v6281_v24 = vpack.c.bf16 %v5175_v44, %v5174_v51 }
 0x2f6   : > { %v4171_v1 = vpop.f32.mrf.mxu2 }
 0x2f7   : > { %6309 = vst [vmem:[%s7824_s1 + $0x60] sm:$0xff] %v6281_v24   ;;  %v5271_v34 = vunpack.c.l.bf16 %v5207_v41  ;;  %v4212_v53 = vadd.f32 %v4171_v1, %v3561_v36  ;;  %v4453_v29 = vpop.f32.mrf.mxu3  ;;  %v3522_v12 = vpop.f32.mrf.mxu1 }
 0x2f8   : > { %v3562_v30 = vadd.f32 %v3522_v12, %v7698_v62 }
 0x2f9   : > { %v5302_v42 = vadd.f32 %v5301_v31, %v5271_v34  ;;  %v5340_v33 = vmul.f32 %v5271_v34, %v5271_v34  ;;  %v4494_v47 = vadd.f32 %v4453_v29, %v4212_v53 }
 0x2fa   : > { %v5137_v58 = vpop.f32.mrf.mxu0 }
 0x2fb   : > { %v5371_v13 = vadd.f32 %v5370_v49, %v5340_v33  ;;  %v5176_v16 = vadd.f32 %v5135_v3, %v4494_v47 }
 0x2fd   : > { %v5208_v32 = vpack.c.bf16 %v5176_v16, %v5176_v16 }
 0x2fe   : > { %v4173_v46 = vpop.f32.mrf.mxu2 }
 0x2ff   : > { %v5272_v7 = vunpack.c.l.bf16 %v5208_v32  ;;  %v4213_v52 = vadd.f32 %v4173_v46, %v3562_v30  ;;  %v4455_v61 = vpop.f32.mrf.mxu3  ;;  %v3525_v56 = vpop.f32.mrf.mxu1 }
 0x300   : > { %v3563_v18 = vadd.f32 %v3525_v56, %v7721_v20 }
 0x301   : > { %v5303_v39 = vadd.f32 %v5302_v42, %v5272_v7  ;;  %v5341_v60 = vmul.f32 %v5272_v7, %v5272_v7  ;;  %v4495_v43 = vadd.f32 %v4455_v61, %v4213_v52 }
 0x303   : > { %v5372_v19 = vadd.f32 %v5371_v13, %v5341_v60  ;;  %v5177_v23 = vadd.f32 %v5137_v58, %v4495_v43  ;;  %v5140_v50 = vpop.f32.mrf.mxu0 }
 0x305   : > { %v5209_v55 = vpack.c.bf16 %v5177_v23, %v5177_v23  ;;  %v6286_v22 = vpack.c.bf16 %v5177_v23, %v5176_v16 }
 0x306   : > { %v4176_v27 = vpop.f32.mrf.mxu2 }
 0x307   : > { %6310 = vst [vmem:[%s7824_s1 + $0x68] sm:$0xff] %v6286_v22   ;;  %v5273_v6 = vunpack.c.l.bf16 %v5209_v55  ;;  %v4214_v62 = vadd.f32 %v4176_v27, %v3563_v18  ;;  %v4458_v2 = vpop.f32.mrf.mxu3  ;;  %v3527_v40 = vpop.f32.mrf.mxu1 }
 0x308   : > { %v3564_v10 = vadd.f32 %v3527_v40, %v8096_v8 }
 0x309   : > { %v5304_v21 = vadd.f32 %v5303_v39, %v5273_v6  ;;  %v5342_v48 = vmul.f32 %v5273_v6, %v5273_v6  ;;  %v4496_v0 = vadd.f32 %v4458_v2, %v4214_v62 }
 0x30b   : > { %v5373_v45 = vadd.f32 %v5372_v19, %v5342_v48  ;;  %v5178_v38 = vadd.f32 %v5140_v50, %v4496_v0  ;;  %v5142_v28 = vpop.f32.mrf.mxu0 }
 0x30d   : > { %v5210_v11 = vpack.c.bf16 %v5178_v38, %v5178_v38 }
 0x30e   : > { %v4178_v14 = vpop.f32.mrf.mxu2 }
 0x30f   : > { %v5274_v17 = vunpack.c.l.bf16 %v5210_v11  ;;  %v4215_v9 = vadd.f32 %v4178_v14, %v3564_v10  ;;  %v4460_v20 = vpop.f32.mrf.mxu3  ;;  %v3530_v35 = vpop.f32.mrf.mxu1 }
 0x310   : > { %v3565_v31 = vadd.f32 %v3530_v35, %v8097_v26 }
 0x311   : > { %v5305_v51 = vadd.f32 %v5304_v21, %v5274_v17  ;;  %v5343_v5 = vmul.f32 %v5274_v17, %v5274_v17  ;;  %v4497_v57 = vadd.f32 %v4460_v20, %v4215_v9 }
 0x313   : > { %v5374_v54 = vadd.f32 %v5373_v45, %v5343_v5  ;;  %v5179_v15 = vadd.f32 %v5142_v28, %v4497_v57 }
 0x315   : > { %v5211_v59 = vpack.c.bf16 %v5179_v15, %v5179_v15  ;;  %v6291_v63 = vpack.c.bf16 %v5179_v15, %v5178_v38  ;;  %v5145_v44 = vpop.f32.mrf.mxu0 }
 0x316   : > { %v4181_v25 = vpop.f32.mrf.mxu2 }
 0x317   : > { %6311 = vst [vmem:[%s7824_s1 + $0x70] sm:$0xff] %v6291_v63   ;;  %v5275_v37 = vunpack.c.l.bf16 %v5211_v59  ;;  %v4216_v3 = vadd.f32 %v4181_v25, %v3565_v31  ;;  %v4463_v49 = vpop.f32.mrf.mxu3  ;;  %v3532_v1 = vpop.f32.mrf.mxu1 }
 0x318   : > { %v3566_v12 = vadd.f32 %v3532_v1, %v7801_v4 }
 0x319   : > { %v5306_v41 = vadd.f32 %v5305_v51, %v5275_v37  ;;  %v5344_v24 = vmul.f32 %v5275_v37, %v5275_v37  ;;  %v4498_v36 = vadd.f32 %v4463_v49, %v4216_v3 }
 0x31b   : > { %v5375_v34 = vadd.f32 %v5374_v54, %v5344_v24  ;;  %v5180_v53 = vadd.f32 %v5145_v44, %v4498_v36 }
 0x31d   : > { %v5212_v29 = vpack.c.bf16 %v5180_v53, %v5180_v53  ;;  %v5147_v30 = vpop.f32.mrf.mxu0 }
 0x31e   : > { %v4183_v42 = vpop.f32.mrf.mxu2 }
 0x31f   : > { %v5276_v33 = vunpack.c.l.bf16 %v5212_v29  ;;  %v4217_v47 = vadd.f32 %v4183_v42, %v3566_v12  ;;  %v4465_v58 = vpop.f32.mrf.mxu3 }
 0x321   : > { %v5307_v13 = vadd.f32 %v5306_v41, %v5276_v33  ;;  %v5345_v16 = vmul.f32 %v5276_v33, %v5276_v33  ;;  %v4499_v32 = vadd.f32 %v4465_v58, %v4217_v47 }
 0x323   : > { %v5376_v46 = vadd.f32 %v5375_v34, %v5345_v16  ;;  %v5181_v7 = vadd.f32 %v5147_v30, %v4499_v32 }
 0x325   : > { %v5213_v4 = vpack.c.bf16 %v5181_v7, %v5181_v7  ;;  %v6296_v52 = vpack.c.bf16 %v5181_v7, %v5180_v53 }
 0x327   : > { %6312 = vst [vmem:[%s7824_s1 + $0x78] sm:$0xff] %v6296_v52   ;;  %v5277_v61 = vunpack.c.l.bf16 %v5213_v4 }
 0x328   : > { %6531 = shalt.err (!%p6528_p8)
}
 0x329   : > { %s6613_s8 = smov 64   ;;  %s6614_s7 = smov 4   ;;  %v5308_v56 = vadd.f32 %v5307_v13, %v5277_v61  ;;  %v5346_v39 = vmul.f32 %v5277_v61, %v5277_v61  ;;  %vm5384_vm6 = vcmask 1040384  }
 0x32a   : > { %6347 = dma.vmem_to_hbm [thread:$0]  (%p6697_p11), %s5406_s24, 2048, %s5408_s25, %s5388_s13, %s6613_s8, %s6613_s8, %s6614_s7  }
 0x32b   : > { %v5309_v60 = vrot.slane %v5308_v56, 4  ;;  %v5377_v43 = vadd.f32 %v5376_v46, %v5346_v39  ;;  %s5560_s12 = sshll.u32 %s6745_s22, 1  ;;  %s6093_s3 = sshll.u32 %s6666_s21, 1 }
 0x32c   : > { %s5420_s28 = scalar_lea.hbm %s8040_s5, %s6093_s3  ;;  %s286_s6 = scalar_lea.vmem [#allocation10], %s5560_s12 }
 0x32d   : > { %v5310_v19 = vadd.f32 %v5309_v60, %v5308_v56  ;;  %v5378_v23 = vrot.slane %v5377_v43, 4  ;;  %s5422_s15 = sshll.u32 %s286_s6, 4  ;;  %s5424_s24 = sshll.u32 %s5420_s28, 4  ;;  %s5423_s15 = int_to_ptr.vmem [resolvable:$true] %s5422_s15  ;;  %s5425_s24 = int_to_ptr.hbm [resolvable:$true] %s5424_s24 }
 0x32e   : > { %s5393_s21 = scalar_lea.sflag [#allocation11], %s6745_s22  ;;  %s6546_s25 = sshra.s32 %s5425_s24, 4  ;;  %s6547_s25 = int_to_ptr.hbm [resolvable:$true] %s6546_s25 }
 0x32f   : > { %v5311_v50 = vrot.slane %v5310_v19, 2  ;;  %v5379_v55 = vadd.f32 %v5378_v23, %v5377_v43  ;;  %s6548_s13 = scalar_lea.hbm %s6547_s25, 2  ;;  %s6552_s11 = scalar_lea.hbm %s8040_s5, 4 }
 0x330   : > { %p6549_p9 = scmp.ne.s32.totalorder %s6547_s25, %s6548_s13  ;;  %p6553_p2 = scmp.lt.s32.totalorder %s6547_s25, %s8040_s5 }
 0x331   : > { %v5312_v22 = vadd.f32 %v5311_v50, %v5310_v19  ;;  %v5380_v18 = vrot.slane %v5379_v55, 2  ;;  %p6554_p3 = scmp.lt.s32.totalorder %s6552_s11, %s6548_s13 }
 0x332   : > { %p6550_p10 = pnand %p6549_p9, %p6697_p11 }
 0x333   : > { %v5313_v27 = vrot.slane %v5312_v22, 1  ;;  %v5381_v6 = vadd.f32 %v5380_v18, %v5379_v55  ;;  %p6555_p4 = por %p6554_p3, %p6553_p2 }
 0x334   : > { %p6551_p1 = pneg %p6550_p10 }
 0x335   : > { %v5382_v62 = vrot.slane %v5381_v6, 1  ;;  %v5314_v2 = vadd.f32 %v5313_v27, %v5312_v22 }
 0x336   : > { %p6556_p6 = pnand %p6555_p4, %p6551_p1 }
 0x337   : > { %v5383_v40 = vadd.f32 %v5382_v62, %v5381_v6 }
 0x339   : > { %v5385_v21 = vsel %vm5384_vm6, %v5314_v2, %v5383_v40 }
 0x33a   : > { %5386 = vst [vmem:[%s286_s6] sm:$0x3] %v5385_v21 }
 0x33b   : > { %6559 = shalt.err (!%p6556_p6)
}
 0x33c   : > { %6348 = dma.vmem_to_hbm [thread:$0]  (%p6697_p11), %s5423_s15, 32, %s5425_s24, %s5393_s21  }
 0x33d PF: > { %s5436_s22 = sand.u32 1, %s6594_s18   ;;  %p8098_p13 = scmp.ge.s32.totalorder %s6606_s20, 2 }
 0x33e   : > { %s5437_s17 = scalar_lea.sflag [#allocation5], %s5436_s22 }
 0x33f   : > { %p6363_p0 = pnand %p8098_p13, %p6701_p12 }
 0x341   : > { %p6364_p7 = pneg %p6363_p0 }
 0x343   : > { %6585 = dma.done.wait (%p6364_p7), %s5437_s17, 2048  }
 0x344   : > { %6587 = vsyncadd (%p6364_p7), %s5437_s17, 4294965248  ;;  %s5447_s10 = scalar_lea.sflag [#allocation11], %s5436_s22 }
 0x345   : > { %6589 = dma.done.wait (%p6364_p7), %s5447_s10, 32  }
 0x346   : > { %6591 = vsyncadd (%p6364_p7), %s5447_s10, 4294967264  ;;  %s8099_s29 = sld [smem:[#allocation16_spill]]  ;;  %p23_p11 = scmp.ge.s32.totalorder %s6670_s23, 4  }
 0x347   : > { %s8100_s18 = smov %s6598_s19  ;;  %s8101_s19 = smov %s6602_s2 }
 0x348   : > { %s8103_s20 = smov %s6670_s23  ;;  %25 = sbr.rel (!%p23_p11) target bundleno = 11 (0xb), region = 117 }
 0x34c   : > { %s8102_s2 = smov %s8099_s29 }
 0x34d   :  { %5453 = vsyncpa [#allocation4], 1 }
 0x34e   :  { %5455 = vsyncpa [#allocation4 + $0x1], 1 }
 0x34f   :  { %5456 = vsyncpa [#allocation7], 1 }
 0x350   :  { %5457 = vsyncpa [#allocation5], 1 }
 0x351   :  { %5459 = vsyncpa [#allocation5 + $0x1], 1 }
 0x352   :  { %5460 = vsyncpa [#allocation11], 1 }
 0x353   :  { %5462 = vsyncpa [#allocation11 + $0x1], 1 }

</bundles_post_ra>
